<compile_context>
chip_gen: v7x
topology: tpu7x:2x2x1
jax: 0.10.0
libtpu: 0.0.40
codegen_flags: <defaults>
</compile_context>

<pallas_src>
import jax
import jax.numpy as jnp
from jax import lax
from jax.experimental import pallas as pl
from jax.experimental.pallas import tpu as pltpu


def _same_pad(in_dim, stride, k):
    out_dim = (in_dim + stride - 1) // stride
    p = max(0, (out_dim - 1) * stride + k - in_dim)
    return out_dim, p // 2, p - p // 2


def _pick_lane_block(n, per_lane_bytes, budget_bytes=6 << 20, max_lanes=512):
    """Batch-lane block: a multiple of 128 lanes that fits the VMEM budget."""
    need = max(128, ((n + 127) // 128) * 128)
    cap = (budget_bytes // max(per_lane_bytes, 1)) // 128 * 128
    cap = max(128, min(max_lanes, cap))
    if need >= 256:
        # keep >= 2 grid steps so the "parallel" axis can shard across v7x's 2 TCs
        cap = min(cap, max(128, (need // 2) // 128 * 128))
    return min(need, cap)


def basic_block_forward(x, params, *, kernel_size, downsample_stride,
                        downsample, use_bn, is_first_block):
    """x: (N, C_in, L) float32 -> (N, C_out, L_out) float32 (eval mode)."""
    f32 = jnp.float32
    N, C_in, L = x.shape
    C_out = params["w1"].shape[0]
    K = kernel_size
    s = downsample_stride if downsample else 1
    assert C_out >= C_in and K >= 1 and s >= 1

    # ---------------- geometry ----------------
    L1, p1l, _ = _same_pad(L, s, K)            # conv1 (SAME, stride s)
    _, p2l, p2r = _same_pad(L1, 1, K)          # conv2 (SAME, stride 1)
    nmax = L1 + (K - 1) // s                   # rows per decimated phase (conv1)
    ch1 = (C_out - C_in) // 2                  # identity channel padding (left)
    S1 = s                                     # phases for the conv path
    S_ID = s if (downsample and s > 1) else 1  # phases for the identity max-pool

    # ------------- fold eval-mode BN + conv1 bias -------------
    eps = 1e-5
    w1 = params["w1"].astype(f32)
    b1 = params["b1"].astype(f32)
    w2 = params["w2"].astype(f32)
    b2 = params["b2"].astype(f32)
    if use_bn:
        sc1v = params["gamma1"].astype(f32) / jnp.sqrt(params["var1"].astype(f32) + eps)
        sh1v = params["beta1"].astype(f32) - params["mean1"].astype(f32) * sc1v
        sc2v = params["gamma2"].astype(f32) / jnp.sqrt(params["var2"].astype(f32) + eps)
        sh2v = params["beta2"].astype(f32) - params["mean2"].astype(f32) * sc2v
        w1_eff = w1 * sc2v[:, None, None]      # fold BN2 scale into conv1 weights
        shift12 = sh2v + sc2v * b1             # fold conv1 bias into the BN2 shift
    else:
        sc1v = jnp.ones((C_in,), f32)
        sh1v = jnp.zeros((C_in,), f32)
        w1_eff = w1
        shift12 = b1

    # all tiny constants in ONE flat SMEM array (static offsets)
    nw1 = C_out * C_in * K
    nw2 = C_out * C_out * K
    off_w1 = 0
    off_s12 = off_w1 + nw1
    off_w2 = off_s12 + C_out
    off_b2 = off_w2 + nw2
    off_sc1 = off_b2 + C_out
    off_sh1 = off_sc1 + C_in
    consts = jnp.concatenate(
        [w1_eff.reshape(-1), shift12.reshape(-1), w2.reshape(-1),
         b2.reshape(-1), sc1v.reshape(-1), sh1v.reshape(-1)]).astype(f32)

    # ------------- batch-lane blocking & VMEM budget -------------
    per_lane = 4 * (2 * S1 * C_in * nmax          # conv-path input block (x2 buffers)
                    + 2 * S_ID * C_in * L1        # identity input block  (x2 buffers)
                    + 2 * C_out * L1              # output block          (x2 buffers)
                    + C_out * (L1 + K - 1)        # conv2 scratch
                    + S1 * C_in * nmax + C_in * L1 + 4 * L1)   # live registers
    NL = _pick_lane_block(N, per_lane)
    G = -(-N // NL)
    N_pad = G * NL
    vmem_limit = int(min(32 << 20, max(8 << 20, 2 * per_lane * NL)))

    xb = x.astype(f32)
    if N_pad != N:
        xb = jnp.pad(xb, ((0, N_pad - N), (0, 0), (0, 0)))

    # conv path: SAME-pad + phase-decimate once in the wrapper (layout only).
    # xc[r, c, j, n] == conv1-padded input at padded position j*s + r (zeros at pads).
    LT = S1 * nmax
    xpc = jnp.pad(xb, ((0, 0), (0, 0), (p1l, LT - L - p1l)))
    xc = jnp.transpose(xpc.reshape(N_pad, C_in, nmax, S1), (3, 1, 2, 0))

    # identity path: max-pool padding (MyMaxPool1dPadSame stride-1 formula) + decimate.
    if downsample and s > 1:
        _, pml, _ = _same_pad(L, 1, s)
        LTI = S_ID * L1
        right = LTI - L - pml
        xpi = jnp.pad(xb, ((0, 0), (0, 0), (pml, max(0, right))))[:, :, :LTI]
        xi = jnp.transpose(xpi.reshape(N_pad, C_in, L1, S_ID), (3, 1, 2, 0))
    else:
        xi = jnp.transpose(xb, (1, 2, 0))[None]      # (1, C_in, L1(==L), N_pad)

    # ---------------- kernel ----------------
    def kernel(cst_ref, xc_ref, xi_ref, o_ref, h2_ref):
        # -- BN1 + ReLU on the decimated conv input (SAME-pad rows stay exactly 0) --
        if (not is_first_block) and use_bn:
            sc1 = [cst_ref[off_sc1 + c] for c in range(C_in)]   # hoisted scalar reads
            sh1 = [cst_ref[off_sh1 + c] for c in range(C_in)]
        h = [[None] * C_in for _ in range(S1)]
        for r in range(S1):
            if (not is_first_block) and use_bn:
                pos = lax.broadcasted_iota(jnp.int32, (nmax, NL), 0) * s + r
                interior = jnp.logical_and(pos >= p1l, pos < p1l + L)
            for c in range(C_in):
                xs = xc_ref[r, c]                                # (nmax, NL)
                if is_first_block:
                    hc = xs
                elif use_bn:
                    hc = jnp.maximum(xs * sc1[c] + jnp.where(interior, sh1[c], 0.0), 0.0)
                else:
                    hc = jnp.maximum(xs, 0.0)
                h[r][c] = hc

        # -- conv1 (+ folded bias/BN2) + ReLU -> zero-padded VMEM scratch for conv2 --
        for o in range(C_out):
            acc = None
            for c in range(C_in):
                for k in range(K):
                    r, q = k % s, k // s
                    w = cst_ref[off_w1 + (o * C_in + c) * K + k]
                    t = h[r][c][q:q + L1, :] * w
                    acc = t if acc is None else acc + t
            acc = jnp.maximum(acc + cst_ref[off_s12 + o], 0.0)
            if p2l > 0:
                h2_ref[o, 0:p2l, :] = jnp.zeros((p2l, NL), jnp.float32)
            if p2r > 0:
                h2_ref[o, p2l + L1:p2l + L1 + p2r, :] = jnp.zeros((p2r, NL), jnp.float32)
            h2_ref[o, p2l:p2l + L1, :] = acc

        # -- identity: max over phases (torch pads with 0 and includes it in the max) --
        idn = []
        for c in range(C_in):
            m = xi_ref[0, c]
            for r in range(1, S_ID):
                m = jnp.maximum(m, xi_ref[r, c])
            idn.append(m)                                        # (L1, NL)

        # -- conv2 + bias + channel-padded residual; lane-dense store --
        for o in range(C_out):
            acc = None
            for c in range(C_out):
                for k in range(K):
                    w = cst_ref[off_w2 + (o * C_out + c) * K + k]
                    t = h2_ref[c, k:k + L1, :] * w
                    acc = t if acc is None else acc + t
            acc = acc + cst_ref[off_b2 + o]
            if ch1 <= o < ch1 + C_in:
                acc = acc + idn[o - ch1]
            o_ref[o] = acc

    out = pl.pallas_call(
        kernel,
        out_shape=jax.ShapeDtypeStruct((C_out, L1, N_pad), f32),
        grid=(G,),
        in_specs=[
            pl.BlockSpec(memory_space=pltpu.MemorySpace.SMEM),
            pl.BlockSpec((S1, C_in, nmax, NL), lambda g: (0, 0, 0, g)),
            pl.BlockSpec((S_ID, C_in, L1, NL), lambda g: (0, 0, 0, g)),
        ],
        out_specs=pl.BlockSpec((C_out, L1, NL), lambda g: (0, 0, g)),
        scratch_shapes=[pltpu.VMEM((C_out, L1 + K - 1, NL), f32)],
        compiler_params=pltpu.CompilerParams(
            dimension_semantics=("parallel",),
            vmem_limit_bytes=vmem_limit),
    )(consts, xc, xi)

    # drop batch-lane padding, back to the PyTorch (N, C_out, L_out) layout
    return jnp.transpose(out[:, :, :N], (2, 0, 1))


def reference_forward(x, params, *, kernel_size, downsample_stride,
                      downsample, use_bn, is_first_block):
    """Pure-JAX replica of BasicBlock.forward (eval-mode BN, dropout = identity)."""
    N, C_in, L = x.shape
    C_out = params["w1"].shape[0]
    K = kernel_size
    s = downsample_stride if downsample else 1
    eps = 1e-5

    def bn(h, g, b, m, v):
        sc = g / jnp.sqrt(v + eps)
        return h * sc[None, :, None] + (b - m * sc)[None, :, None]

    def conv_same(h, w, bias, st):
        Lin = h.shape[-1]
        Lout = (Lin + st - 1) // st
        p = max(0, (Lout - 1) * st + K - Lin)
        hp = jnp.pad(h, ((0, 0), (0, 0), (p // 2, p - p // 2)))
        wins = jnp.stack([hp[:, :, l * st:l * st + K] for l in range(Lout)], axis=2)
        return jnp.einsum("nclk,ock->nol", wins, w) + bias[None, :, None]

    out = x
    if not is_first_block:
        if use_bn:
            out = bn(out, params["gamma1"], params["beta1"], params["mean1"], params["var1"])
        out = jnp.maximum(out, 0.0)
    out = conv_same(out, params["w1"], params["b1"], s)
    if use_bn:
        out = bn(out, params["gamma2"], params["beta2"], params["mean2"], params["var2"])
    out = jnp.maximum(out, 0.0)
    out = conv_same(out, params["w2"], params["b2"], 1)

    identity = x
    if downsample:
        p = max(0, (L - 1) * 1 + s - L)
        ip = jnp.pad(identity, ((0, 0), (0, 0), (p // 2, p - p // 2)))
        Lmp = (ip.shape[-1] - s) // s + 1
        identity = jnp.max(
            jnp.stack([ip[:, :, l * s:l * s + s] for l in range(Lmp)], axis=2), axis=-1)
    if C_out != C_in:
        c1 = (C_out - C_in) // 2
        c2 = C_out - C_in - c1
        identity = jnp.pad(identity, ((0, 0), (c1, c2), (0, 0)))
    return out + identity


if __name__ == "__main__":
    # small, deterministic config matching the module's intended use
    N, C_in, C_out, L = 2, 4, 8, 16
    K, DS_STRIDE = 3, 2
    cfg = dict(kernel_size=K, downsample_stride=DS_STRIDE,
               downsample=True, use_bn=True, is_first_block=False)

    key = jax.random.PRNGKey(0)
    keys = jax.random.split(key, 13)
    params = {
        "w1": 0.1 * jax.random.normal(keys[0], (C_out, C_in, K), jnp.float32),
        "b1": 0.05 * jax.random.normal(keys[1], (C_out,), jnp.float32),
        "w2": 0.1 * jax.random.normal(keys[2], (C_out, C_out, K), jnp.float32),
        "b2": 0.05 * jax.random.normal(keys[3], (C_out,), jnp.float32),
        "gamma1": 1.0 + 0.1 * jax.random.normal(keys[4], (C_in,), jnp.float32),
        "beta1": 0.1 * jax.random.normal(keys[5], (C_in,), jnp.float32),
        "mean1": 0.05 * jax.random.normal(keys[6], (C_in,), jnp.float32),
        "var1": 0.5 + jnp.abs(jax.random.normal(keys[7], (C_in,), jnp.float32)) * 0.5,
        "gamma2": 1.0 + 0.1 * jax.random.normal(keys[8], (C_out,), jnp.float32),
        "beta2": 0.1 * jax.random.normal(keys[9], (C_out,), jnp.float32),
        "mean2": 0.05 * jax.random.normal(keys[10], (C_out,), jnp.float32),
        "var2": 0.5 + jnp.abs(jax.random.normal(keys[11], (C_out,), jnp.float32)) * 0.5,
    }
    x = jax.random.normal(keys[12], (N, C_in, L), jnp.float32)

    y = basic_block_forward(x, params, **cfg)
    y = jax.block_until_ready(y)
    assert y.shape == (N, C_out, (L + DS_STRIDE - 1) // DS_STRIDE), y.shape

    y_ref = reference_forward(x, params, **cfg)
    assert jnp.allclose(y, y_ref, atol=1e-4, rtol=1e-4), \
        float(jnp.max(jnp.abs(y - y_ref)))

    print("KERNEL_OK")
</pallas_src>

<mosaic_0001>
module attributes {stable_mosaic.version = 11 : i64} {
  func.func @kernel(%arg0: i32, %arg1: memref<312xf32, #tpu.memory_space<smem>>, %arg2: memref<2x4x9x128xf32, #tpu.memory_space<vmem>>, %arg3: memref<2x4x8x128xf32, #tpu.memory_space<vmem>>, %arg4: memref<8x8x128xf32, #tpu.memory_space<vmem>>, %arg5: memref<8x10x128xf32, #tpu.memory_space<vmem>>) attributes {dimension_semantics = [#tpu.dimension_semantics<parallel>], iteration_bounds = array<i64: 1>, scalar_prefetch = 0 : i64, scratch_operands = 1 : i64, tpu.core_type = #tpu.core_type<tc>, window_params = [{transform_indices = @transform_0, window_bounds = array<i64: 312>}, {transform_indices = @transform_1, window_bounds = array<i64: 2, 4, 9, 128>}, {transform_indices = @transform_2, window_bounds = array<i64: 2, 4, 8, 128>}, {transform_indices = @transform_3, window_bounds = array<i64: 8, 8, 128>}]} {
    %c304 = arith.constant 304 : index
    %0 = memref.load %arg1[%c304] : memref<312xf32, #tpu.memory_space<smem>>
    %c305 = arith.constant 305 : index
    %1 = memref.load %arg1[%c305] : memref<312xf32, #tpu.memory_space<smem>>
    %c306 = arith.constant 306 : index
    %2 = memref.load %arg1[%c306] : memref<312xf32, #tpu.memory_space<smem>>
    %c307 = arith.constant 307 : index
    %3 = memref.load %arg1[%c307] : memref<312xf32, #tpu.memory_space<smem>>
    %c308 = arith.constant 308 : index
    %4 = memref.load %arg1[%c308] : memref<312xf32, #tpu.memory_space<smem>>
    %c309 = arith.constant 309 : index
    %5 = memref.load %arg1[%c309] : memref<312xf32, #tpu.memory_space<smem>>
    %c310 = arith.constant 310 : index
    %6 = memref.load %arg1[%c310] : memref<312xf32, #tpu.memory_space<smem>>
    %c311 = arith.constant 311 : index
    %7 = memref.load %arg1[%c311] : memref<312xf32, #tpu.memory_space<smem>>
    %8 = tpu.iota {dimensions = array<i32: 0>} : vector<9x128xi32>
    %c2_i32 = arith.constant 2 : i32
    %9 = vector.broadcast %c2_i32 : i32 to vector<9x128xi32>
    %10 = arith.muli %8, %9 : vector<9x128xi32>
    %c0_i32 = arith.constant 0 : i32
    %11 = vector.broadcast %c0_i32 : i32 to vector<9x128xi32>
    %12 = arith.addi %10, %11 : vector<9x128xi32>
    %c0_i32_0 = arith.constant 0 : i32
    %13 = vector.broadcast %c0_i32_0 : i32 to vector<9x128xi32>
    %14 = arith.cmpi sge, %12, %13 : vector<9x128xi32>
    %c16_i32 = arith.constant 16 : i32
    %15 = vector.broadcast %c16_i32 : i32 to vector<9x128xi32>
    %16 = arith.cmpi slt, %12, %15 : vector<9x128xi32>
    %17 = arith.andi %14, %16 : vector<9x128xi1>
    %c0 = arith.constant 0 : index
    %c0_1 = arith.constant 0 : index
    %c0_2 = arith.constant 0 : index
    %c0_3 = arith.constant 0 : index
    %18 = vector.load %arg2[%c0, %c0_1, %c0_2, %c0_3] : memref<2x4x9x128xf32, #tpu.memory_space<vmem>>, vector<1x1x9x128xf32>
    %19 = vector.shape_cast %18 : vector<1x1x9x128xf32> to vector<9x128xf32>
    %20 = vector.broadcast %0 : f32 to vector<9x128xf32>
    %21 = arith.mulf %19, %20 : vector<9x128xf32>
    %cst = arith.constant 0.000000e+00 : f32
    %22 = vector.broadcast %4 : f32 to vector<9x128xf32>
    %23 = vector.broadcast %cst : f32 to vector<9x128xf32>
    %24 = arith.select %17, %22, %23 : vector<9x128xi1>, vector<9x128xf32>
    %25 = arith.addf %21, %24 : vector<9x128xf32>
    %cst_4 = arith.constant 0.000000e+00 : f32
    %26 = vector.broadcast %cst_4 : f32 to vector<9x128xf32>
    %27 = arith.maximumf %25, %26 : vector<9x128xf32>
    %c0_5 = arith.constant 0 : index
    %c1 = arith.constant 1 : index
    %c0_6 = arith.constant 0 : index
    %c0_7 = arith.constant 0 : index
    %28 = vector.load %arg2[%c0_5, %c1, %c0_6, %c0_7] : memref<2x4x9x128xf32, #tpu.memory_space<vmem>>, vector<1x1x9x128xf32>
    %29 = vector.shape_cast %28 : vector<1x1x9x128xf32> to vector<9x128xf32>
    %30 = vector.broadcast %1 : f32 to vector<9x128xf32>
    %31 = arith.mulf %29, %30 : vector<9x128xf32>
    %cst_8 = arith.constant 0.000000e+00 : f32
    %32 = vector.broadcast %5 : f32 to vector<9x128xf32>
    %33 = vector.broadcast %cst_8 : f32 to vector<9x128xf32>
    %34 = arith.select %17, %32, %33 : vector<9x128xi1>, vector<9x128xf32>
    %35 = arith.addf %31, %34 : vector<9x128xf32>
    %cst_9 = arith.constant 0.000000e+00 : f32
    %36 = vector.broadcast %cst_9 : f32 to vector<9x128xf32>
    %37 = arith.maximumf %35, %36 : vector<9x128xf32>
    %c0_10 = arith.constant 0 : index
    %c2 = arith.constant 2 : index
    %c0_11 = arith.constant 0 : index
    %c0_12 = arith.constant 0 : index
    %38 = vector.load %arg2[%c0_10, %c2, %c0_11, %c0_12] : memref<2x4x9x128xf32, #tpu.memory_space<vmem>>, vector<1x1x9x128xf32>
    %39 = vector.shape_cast %38 : vector<1x1x9x128xf32> to vector<9x128xf32>
    %40 = vector.broadcast %2 : f32 to vector<9x128xf32>
    %41 = arith.mulf %39, %40 : vector<9x128xf32>
    %cst_13 = arith.constant 0.000000e+00 : f32
    %42 = vector.broadcast %6 : f32 to vector<9x128xf32>
    %43 = vector.broadcast %cst_13 : f32 to vector<9x128xf32>
    %44 = arith.select %17, %42, %43 : vector<9x128xi1>, vector<9x128xf32>
    %45 = arith.addf %41, %44 : vector<9x128xf32>
    %cst_14 = arith.constant 0.000000e+00 : f32
    %46 = vector.broadcast %cst_14 : f32 to vector<9x128xf32>
    %47 = arith.maximumf %45, %46 : vector<9x128xf32>
    %c0_15 = arith.constant 0 : index
    %c3 = arith.constant 3 : index
    %c0_16 = arith.constant 0 : index
    %c0_17 = arith.constant 0 : index
    %48 = vector.load %arg2[%c0_15, %c3, %c0_16, %c0_17] : memref<2x4x9x128xf32, #tpu.memory_space<vmem>>, vector<1x1x9x128xf32>
    %49 = vector.shape_cast %48 : vector<1x1x9x128xf32> to vector<9x128xf32>
    %50 = vector.broadcast %3 : f32 to vector<9x128xf32>
    %51 = arith.mulf %49, %50 : vector<9x128xf32>
    %cst_18 = arith.constant 0.000000e+00 : f32
    %52 = vector.broadcast %7 : f32 to vector<9x128xf32>
    %53 = vector.broadcast %cst_18 : f32 to vector<9x128xf32>
    %54 = arith.select %17, %52, %53 : vector<9x128xi1>, vector<9x128xf32>
    %55 = arith.addf %51, %54 : vector<9x128xf32>
    %cst_19 = arith.constant 0.000000e+00 : f32
    %56 = vector.broadcast %cst_19 : f32 to vector<9x128xf32>
    %57 = arith.maximumf %55, %56 : vector<9x128xf32>
    %58 = tpu.iota {dimensions = array<i32: 0>} : vector<9x128xi32>
    %c2_i32_20 = arith.constant 2 : i32
    %59 = vector.broadcast %c2_i32_20 : i32 to vector<9x128xi32>
    %60 = arith.muli %58, %59 : vector<9x128xi32>
    %c1_i32 = arith.constant 1 : i32
    %61 = vector.broadcast %c1_i32 : i32 to vector<9x128xi32>
    %62 = arith.addi %60, %61 : vector<9x128xi32>
    %c0_i32_21 = arith.constant 0 : i32
    %63 = vector.broadcast %c0_i32_21 : i32 to vector<9x128xi32>
    %64 = arith.cmpi sge, %62, %63 : vector<9x128xi32>
    %c16_i32_22 = arith.constant 16 : i32
    %65 = vector.broadcast %c16_i32_22 : i32 to vector<9x128xi32>
    %66 = arith.cmpi slt, %62, %65 : vector<9x128xi32>
    %67 = arith.andi %64, %66 : vector<9x128xi1>
    %c1_23 = arith.constant 1 : index
    %c0_24 = arith.constant 0 : index
    %c0_25 = arith.constant 0 : index
    %c0_26 = arith.constant 0 : index
    %68 = vector.load %arg2[%c1_23, %c0_24, %c0_25, %c0_26] : memref<2x4x9x128xf32, #tpu.memory_space<vmem>>, vector<1x1x9x128xf32>
    %69 = vector.shape_cast %68 : vector<1x1x9x128xf32> to vector<9x128xf32>
    %70 = vector.broadcast %0 : f32 to vector<9x128xf32>
    %71 = arith.mulf %69, %70 : vector<9x128xf32>
    %cst_27 = arith.constant 0.000000e+00 : f32
    %72 = vector.broadcast %4 : f32 to vector<9x128xf32>
    %73 = vector.broadcast %cst_27 : f32 to vector<9x128xf32>
    %74 = arith.select %67, %72, %73 : vector<9x128xi1>, vector<9x128xf32>
    %75 = arith.addf %71, %74 : vector<9x128xf32>
    %cst_28 = arith.constant 0.000000e+00 : f32
    %76 = vector.broadcast %cst_28 : f32 to vector<9x128xf32>
    %77 = arith.maximumf %75, %76 : vector<9x128xf32>
    %c1_29 = arith.constant 1 : index
    %c1_30 = arith.constant 1 : index
    %c0_31 = arith.constant 0 : index
    %c0_32 = arith.constant 0 : index
    %78 = vector.load %arg2[%c1_29, %c1_30, %c0_31, %c0_32] : memref<2x4x9x128xf32, #tpu.memory_space<vmem>>, vector<1x1x9x128xf32>
    %79 = vector.shape_cast %78 : vector<1x1x9x128xf32> to vector<9x128xf32>
    %80 = vector.broadcast %1 : f32 to vector<9x128xf32>
    %81 = arith.mulf %79, %80 : vector<9x128xf32>
    %cst_33 = arith.constant 0.000000e+00 : f32
    %82 = vector.broadcast %5 : f32 to vector<9x128xf32>
    %83 = vector.broadcast %cst_33 : f32 to vector<9x128xf32>
    %84 = arith.select %67, %82, %83 : vector<9x128xi1>, vector<9x128xf32>
    %85 = arith.addf %81, %84 : vector<9x128xf32>
    %cst_34 = arith.constant 0.000000e+00 : f32
    %86 = vector.broadcast %cst_34 : f32 to vector<9x128xf32>
    %87 = arith.maximumf %85, %86 : vector<9x128xf32>
    %c1_35 = arith.constant 1 : index
    %c2_36 = arith.constant 2 : index
    %c0_37 = arith.constant 0 : index
    %c0_38 = arith.constant 0 : index
    %88 = vector.load %arg2[%c1_35, %c2_36, %c0_37, %c0_38] : memref<2x4x9x128xf32, #tpu.memory_space<vmem>>, vector<1x1x9x128xf32>
    %89 = vector.shape_cast %88 : vector<1x1x9x128xf32> to vector<9x128xf32>
    %90 = vector.broadcast %2 : f32 to vector<9x128xf32>
    %91 = arith.mulf %89, %90 : vector<9x128xf32>
    %cst_39 = arith.constant 0.000000e+00 : f32
    %92 = vector.broadcast %6 : f32 to vector<9x128xf32>
    %93 = vector.broadcast %cst_39 : f32 to vector<9x128xf32>
    %94 = arith.select %67, %92, %93 : vector<9x128xi1>, vector<9x128xf32>
    %95 = arith.addf %91, %94 : vector<9x128xf32>
    %cst_40 = arith.constant 0.000000e+00 : f32
    %96 = vector.broadcast %cst_40 : f32 to vector<9x128xf32>
    %97 = arith.maximumf %95, %96 : vector<9x128xf32>
    %c1_41 = arith.constant 1 : index
    %c3_42 = arith.constant 3 : index
    %c0_43 = arith.constant 0 : index
    %c0_44 = arith.constant 0 : index
    %98 = vector.load %arg2[%c1_41, %c3_42, %c0_43, %c0_44] : memref<2x4x9x128xf32, #tpu.memory_space<vmem>>, vector<1x1x9x128xf32>
    %99 = vector.shape_cast %98 : vector<1x1x9x128xf32> to vector<9x128xf32>
    %100 = vector.broadcast %3 : f32 to vector<9x128xf32>
    %101 = arith.mulf %99, %100 : vector<9x128xf32>
    %cst_45 = arith.constant 0.000000e+00 : f32
    %102 = vector.broadcast %7 : f32 to vector<9x128xf32>
    %103 = vector.broadcast %cst_45 : f32 to vector<9x128xf32>
    %104 = arith.select %67, %102, %103 : vector<9x128xi1>, vector<9x128xf32>
    %105 = arith.addf %101, %104 : vector<9x128xf32>
    %cst_46 = arith.constant 0.000000e+00 : f32
    %106 = vector.broadcast %cst_46 : f32 to vector<9x128xf32>
    %107 = arith.maximumf %105, %106 : vector<9x128xf32>
    %c0_47 = arith.constant 0 : index
    %108 = memref.load %arg1[%c0_47] : memref<312xf32, #tpu.memory_space<smem>>
    %109 = vector.extract_strided_slice %27 {offsets = [0, 0], sizes = [8, 128], strides = [1, 1]} : vector<9x128xf32> to vector<8x128xf32>
    %110 = vector.broadcast %108 : f32 to vector<8x128xf32>
    %111 = arith.mulf %109, %110 : vector<8x128xf32>
    %c1_48 = arith.constant 1 : index
    %112 = memref.load %arg1[%c1_48] : memref<312xf32, #tpu.memory_space<smem>>
    %113 = vector.extract_strided_slice %77 {offsets = [0, 0], sizes = [8, 128], strides = [1, 1]} : vector<9x128xf32> to vector<8x128xf32>
    %114 = vector.broadcast %112 : f32 to vector<8x128xf32>
    %115 = arith.mulf %113, %114 : vector<8x128xf32>
    %116 = arith.addf %111, %115 : vector<8x128xf32>
    %c2_49 = arith.constant 2 : index
    %117 = memref.load %arg1[%c2_49] : memref<312xf32, #tpu.memory_space<smem>>
    %118 = vector.extract_strided_slice %27 {offsets = [1, 0], sizes = [8, 128], strides = [1, 1]} : vector<9x128xf32> to vector<8x128xf32>
    %119 = vector.broadcast %117 : f32 to vector<8x128xf32>
    %120 = arith.mulf %118, %119 : vector<8x128xf32>
    %121 = arith.addf %116, %120 : vector<8x128xf32>
    %c3_50 = arith.constant 3 : index
    %122 = memref.load %arg1[%c3_50] : memref<312xf32, #tpu.memory_space<smem>>
    %123 = vector.extract_strided_slice %37 {offsets = [0, 0], sizes = [8, 128], strides = [1, 1]} : vector<9x128xf32> to vector<8x128xf32>
    %124 = vector.broadcast %122 : f32 to vector<8x128xf32>
    %125 = arith.mulf %123, %124 : vector<8x128xf32>
    %126 = arith.addf %121, %125 : vector<8x128xf32>
    %c4 = arith.constant 4 : index
    %127 = memref.load %arg1[%c4] : memref<312xf32, #tpu.memory_space<smem>>
    %128 = vector.extract_strided_slice %87 {offsets = [0, 0], sizes = [8, 128], strides = [1, 1]} : vector<9x128xf32> to vector<8x128xf32>
    %129 = vector.broadcast %127 : f32 to vector<8x128xf32>
    %130 = arith.mulf %128, %129 : vector<8x128xf32>
    %131 = arith.addf %126, %130 : vector<8x128xf32>
    %c5 = arith.constant 5 : index
    %132 = memref.load %arg1[%c5] : memref<312xf32, #tpu.memory_space<smem>>
    %133 = vector.extract_strided_slice %37 {offsets = [1, 0], sizes = [8, 128], strides = [1, 1]} : vector<9x128xf32> to vector<8x128xf32>
    %134 = vector.broadcast %132 : f32 to vector<8x128xf32>
    %135 = arith.mulf %133, %134 : vector<8x128xf32>
    %136 = arith.addf %131, %135 : vector<8x128xf32>
    %c6 = arith.constant 6 : index
    %137 = memref.load %arg1[%c6] : memref<312xf32, #tpu.memory_space<smem>>
    %138 = vector.extract_strided_slice %47 {offsets = [0, 0], sizes = [8, 128], strides = [1, 1]} : vector<9x128xf32> to vector<8x128xf32>
    %139 = vector.broadcast %137 : f32 to vector<8x128xf32>
    %140 = arith.mulf %138, %139 : vector<8x128xf32>
    %141 = arith.addf %136, %140 : vector<8x128xf32>
    %c7 = arith.constant 7 : index
    %142 = memref.load %arg1[%c7] : memref<312xf32, #tpu.memory_space<smem>>
    %143 = vector.extract_strided_slice %97 {offsets = [0, 0], sizes = [8, 128], strides = [1, 1]} : vector<9x128xf32> to vector<8x128xf32>
    %144 = vector.broadcast %142 : f32 to vector<8x128xf32>
    %145 = arith.mulf %143, %144 : vector<8x128xf32>
    %146 = arith.addf %141, %145 : vector<8x128xf32>
    %c8 = arith.constant 8 : index
    %147 = memref.load %arg1[%c8] : memref<312xf32, #tpu.memory_space<smem>>
    %148 = vector.extract_strided_slice %47 {offsets = [1, 0], sizes = [8, 128], strides = [1, 1]} : vector<9x128xf32> to vector<8x128xf32>
    %149 = vector.broadcast %147 : f32 to vector<8x128xf32>
    %150 = arith.mulf %148, %149 : vector<8x128xf32>
    %151 = arith.addf %146, %150 : vector<8x128xf32>
    %c9 = arith.constant 9 : index
    %152 = memref.load %arg1[%c9] : memref<312xf32, #tpu.memory_space<smem>>
    %153 = vector.extract_strided_slice %57 {offsets = [0, 0], sizes = [8, 128], strides = [1, 1]} : vector<9x128xf32> to vector<8x128xf32>
    %154 = vector.broadcast %152 : f32 to vector<8x128xf32>
    %155 = arith.mulf %153, %154 : vector<8x128xf32>
    %156 = arith.addf %151, %155 : vector<8x128xf32>
    %c10 = arith.constant 10 : index
    %157 = memref.load %arg1[%c10] : memref<312xf32, #tpu.memory_space<smem>>
    %158 = vector.extract_strided_slice %107 {offsets = [0, 0], sizes = [8, 128], strides = [1, 1]} : vector<9x128xf32> to vector<8x128xf32>
    %159 = vector.broadcast %157 : f32 to vector<8x128xf32>
    %160 = arith.mulf %158, %159 : vector<8x128xf32>
    %161 = arith.addf %156, %160 : vector<8x128xf32>
    %c11 = arith.constant 11 : index
    %162 = memref.load %arg1[%c11] : memref<312xf32, #tpu.memory_space<smem>>
    %163 = vector.extract_strided_slice %57 {offsets = [1, 0], sizes = [8, 128], strides = [1, 1]} : vector<9x128xf32> to vector<8x128xf32>
    %164 = vector.broadcast %162 : f32 to vector<8x128xf32>
    %165 = arith.mulf %163, %164 : vector<8x128xf32>
    %166 = arith.addf %161, %165 : vector<8x128xf32>
    %c96 = arith.constant 96 : index
    %167 = memref.load %arg1[%c96] : memref<312xf32, #tpu.memory_space<smem>>
    %168 = vector.broadcast %167 : f32 to vector<8x128xf32>
    %169 = arith.addf %166, %168 : vector<8x128xf32>
    %cst_51 = arith.constant 0.000000e+00 : f32
    %170 = vector.broadcast %cst_51 : f32 to vector<8x128xf32>
    %171 = arith.maximumf %169, %170 : vector<8x128xf32>
    %cst_52 = arith.constant 0.000000e+00 : f32
    %172 = vector.broadcast %cst_52 : f32 to vector<1x128xf32>
    %c0_53 = arith.constant 0 : index
    %c0_54 = arith.constant 0 : index
    %c0_55 = arith.constant 0 : index
    %173 = vector.load %arg5[%c0_53, %c0_54, %c0_55] : memref<8x10x128xf32, #tpu.memory_space<vmem>>, vector<1x1x128xf32>
    %174 = vector.shape_cast %173 : vector<1x1x128xf32> to vector<1x128xf32>
    %175 = vector.shape_cast %172 : vector<1x128xf32> to vector<1x1x128xf32>
    tpu.vector_store %arg5[%c0_53, %c0_54, %c0_55], %175 {strides = array<i32>} : memref<8x10x128xf32, #tpu.memory_space<vmem>>, vector<1x1x128xf32>,
    %cst_56 = arith.constant 0.000000e+00 : f32
    %176 = vector.broadcast %cst_56 : f32 to vector<1x128xf32>
    %c0_57 = arith.constant 0 : index
    %c9_58 = arith.constant 9 : index
    %c0_59 = arith.constant 0 : index
    %177 = vector.load %arg5[%c0_57, %c9_58, %c0_59] : memref<8x10x128xf32, #tpu.memory_space<vmem>>, vector<1x1x128xf32>
    %178 = vector.shape_cast %177 : vector<1x1x128xf32> to vector<1x128xf32>
    %179 = vector.shape_cast %176 : vector<1x128xf32> to vector<1x1x128xf32>
    tpu.vector_store %arg5[%c0_57, %c9_58, %c0_59], %179 {strides = array<i32>} : memref<8x10x128xf32, #tpu.memory_space<vmem>>, vector<1x1x128xf32>,
    %c0_60 = arith.constant 0 : index
    %c1_61 = arith.constant 1 : index
    %c0_62 = arith.constant 0 : index
    %180 = vector.load %arg5[%c0_60, %c1_61, %c0_62] : memref<8x10x128xf32, #tpu.memory_space<vmem>>, vector<1x8x128xf32>
    %181 = vector.shape_cast %180 : vector<1x8x128xf32> to vector<8x128xf32>
    %182 = vector.shape_cast %171 : vector<8x128xf32> to vector<1x8x128xf32>
    tpu.vector_store %arg5[%c0_60, %c1_61, %c0_62], %182 {strides = array<i32>} : memref<8x10x128xf32, #tpu.memory_space<vmem>>, vector<1x8x128xf32>,
    %c12 = arith.constant 12 : index
    %183 = memref.load %arg1[%c12] : memref<312xf32, #tpu.memory_space<smem>>
    %184 = vector.extract_strided_slice %27 {offsets = [0, 0], sizes = [8, 128], strides = [1, 1]} : vector<9x128xf32> to vector<8x128xf32>
    %185 = vector.broadcast %183 : f32 to vector<8x128xf32>
    %186 = arith.mulf %184, %185 : vector<8x128xf32>
    %c13 = arith.constant 13 : index
    %187 = memref.load %arg1[%c13] : memref<312xf32, #tpu.memory_space<smem>>
    %188 = vector.extract_strided_slice %77 {offsets = [0, 0], sizes = [8, 128], strides = [1, 1]} : vector<9x128xf32> to vector<8x128xf32>
    %189 = vector.broadcast %187 : f32 to vector<8x128xf32>
    %190 = arith.mulf %188, %189 : vector<8x128xf32>
    %191 = arith.addf %186, %190 : vector<8x128xf32>
    %c14 = arith.constant 14 : index
    %192 = memref.load %arg1[%c14] : memref<312xf32, #tpu.memory_space<smem>>
    %193 = vector.extract_strided_slice %27 {offsets = [1, 0], sizes = [8, 128], strides = [1, 1]} : vector<9x128xf32> to vector<8x128xf32>
    %194 = vector.broadcast %192 : f32 to vector<8x128xf32>
    %195 = arith.mulf %193, %194 : vector<8x128xf32>
    %196 = arith.addf %191, %195 : vector<8x128xf32>
    %c15 = arith.constant 15 : index
    %197 = memref.load %arg1[%c15] : memref<312xf32, #tpu.memory_space<smem>>
    %198 = vector.extract_strided_slice %37 {offsets = [0, 0], sizes = [8, 128], strides = [1, 1]} : vector<9x128xf32> to vector<8x128xf32>
    %199 = vector.broadcast %197 : f32 to vector<8x128xf32>
    %200 = arith.mulf %198, %199 : vector<8x128xf32>
    %201 = arith.addf %196, %200 : vector<8x128xf32>
    %c16 = arith.constant 16 : index
    %202 = memref.load %arg1[%c16] : memref<312xf32, #tpu.memory_space<smem>>
    %203 = vector.extract_strided_slice %87 {offsets = [0, 0], sizes = [8, 128], strides = [1, 1]} : vector<9x128xf32> to vector<8x128xf32>
    %204 = vector.broadcast %202 : f32 to vector<8x128xf32>
    %205 = arith.mulf %203, %204 : vector<8x128xf32>
    %206 = arith.addf %201, %205 : vector<8x128xf32>
    %c17 = arith.constant 17 : index
    %207 = memref.load %arg1[%c17] : memref<312xf32, #tpu.memory_space<smem>>
    %208 = vector.extract_strided_slice %37 {offsets = [1, 0], sizes = [8, 128], strides = [1, 1]} : vector<9x128xf32> to vector<8x128xf32>
    %209 = vector.broadcast %207 : f32 to vector<8x128xf32>
    %210 = arith.mulf %208, %209 : vector<8x128xf32>
    %211 = arith.addf %206, %210 : vector<8x128xf32>
    %c18 = arith.constant 18 : index
    %212 = memref.load %arg1[%c18] : memref<312xf32, #tpu.memory_space<smem>>
    %213 = vector.extract_strided_slice %47 {offsets = [0, 0], sizes = [8, 128], strides = [1, 1]} : vector<9x128xf32> to vector<8x128xf32>
    %214 = vector.broadcast %212 : f32 to vector<8x128xf32>
    %215 = arith.mulf %213, %214 : vector<8x128xf32>
    %216 = arith.addf %211, %215 : vector<8x128xf32>
    %c19 = arith.constant 19 : index
    %217 = memref.load %arg1[%c19] : memref<312xf32, #tpu.memory_space<smem>>
    %218 = vector.extract_strided_slice %97 {offsets = [0, 0], sizes = [8, 128], strides = [1, 1]} : vector<9x128xf32> to vector<8x128xf32>
    %219 = vector.broadcast %217 : f32 to vector<8x128xf32>
    %220 = arith.mulf %218, %219 : vector<8x128xf32>
    %221 = arith.addf %216, %220 : vector<8x128xf32>
    %c20 = arith.constant 20 : index
    %222 = memref.load %arg1[%c20] : memref<312xf32, #tpu.memory_space<smem>>
    %223 = vector.extract_strided_slice %47 {offsets = [1, 0], sizes = [8, 128], strides = [1, 1]} : vector<9x128xf32> to vector<8x128xf32>
    %224 = vector.broadcast %222 : f32 to vector<8x128xf32>
    %225 = arith.mulf %223, %224 : vector<8x128xf32>
    %226 = arith.addf %221, %225 : vector<8x128xf32>
    %c21 = arith.constant 21 : index
    %227 = memref.load %arg1[%c21] : memref<312xf32, #tpu.memory_space<smem>>
    %228 = vector.extract_strided_slice %57 {offsets = [0, 0], sizes = [8, 128], strides = [1, 1]} : vector<9x128xf32> to vector<8x128xf32>
    %229 = vector.broadcast %227 : f32 to vector<8x128xf32>
    %230 = arith.mulf %228, %229 : vector<8x128xf32>
    %231 = arith.addf %226, %230 : vector<8x128xf32>
    %c22 = arith.constant 22 : index
    %232 = memref.load %arg1[%c22] : memref<312xf32, #tpu.memory_space<smem>>
    %233 = vector.extract_strided_slice %107 {offsets = [0, 0], sizes = [8, 128], strides = [1, 1]} : vector<9x128xf32> to vector<8x128xf32>
    %234 = vector.broadcast %232 : f32 to vector<8x128xf32>
    %235 = arith.mulf %233, %234 : vector<8x128xf32>
    %236 = arith.addf %231, %235 : vector<8x128xf32>
    %c23 = arith.constant 23 : index
    %237 = memref.load %arg1[%c23] : memref<312xf32, #tpu.memory_space<smem>>
    %238 = vector.extract_strided_slice %57 {offsets = [1, 0], sizes = [8, 128], strides = [1, 1]} : vector<9x128xf32> to vector<8x128xf32>
    %239 = vector.broadcast %237 : f32 to vector<8x128xf32>
    %240 = arith.mulf %238, %239 : vector<8x128xf32>
    %241 = arith.addf %236, %240 : vector<8x128xf32>
    %c97 = arith.constant 97 : index
    %242 = memref.load %arg1[%c97] : memref<312xf32, #tpu.memory_space<smem>>
    %243 = vector.broadcast %242 : f32 to vector<8x128xf32>
    %244 = arith.addf %241, %243 : vector<8x128xf32>
    %cst_63 = arith.constant 0.000000e+00 : f32
    %245 = vector.broadcast %cst_63 : f32 to vector<8x128xf32>
    %246 = arith.maximumf %244, %245 : vector<8x128xf32>
    %cst_64 = arith.constant 0.000000e+00 : f32
    %247 = vector.broadcast %cst_64 : f32 to vector<1x128xf32>
    %c1_65 = arith.constant 1 : index
    %c0_66 = arith.constant 0 : index
    %c0_67 = arith.constant 0 : index
    %248 = vector.load %arg5[%c1_65, %c0_66, %c0_67] : memref<8x10x128xf32, #tpu.memory_space<vmem>>, vector<1x1x128xf32>
    %249 = vector.shape_cast %248 : vector<1x1x128xf32> to vector<1x128xf32>
    %250 = vector.shape_cast %247 : vector<1x128xf32> to vector<1x1x128xf32>
    tpu.vector_store %arg5[%c1_65, %c0_66, %c0_67], %250 {strides = array<i32>} : memref<8x10x128xf32, #tpu.memory_space<vmem>>, vector<1x1x128xf32>,
    %cst_68 = arith.constant 0.000000e+00 : f32
    %251 = vector.broadcast %cst_68 : f32 to vector<1x128xf32>
    %c1_69 = arith.constant 1 : index
    %c9_70 = arith.constant 9 : index
    %c0_71 = arith.constant 0 : index
    %252 = vector.load %arg5[%c1_69, %c9_70, %c0_71] : memref<8x10x128xf32, #tpu.memory_space<vmem>>, vector<1x1x128xf32>
    %253 = vector.shape_cast %252 : vector<1x1x128xf32> to vector<1x128xf32>
    %254 = vector.shape_cast %251 : vector<1x128xf32> to vector<1x1x128xf32>
    tpu.vector_store %arg5[%c1_69, %c9_70, %c0_71], %254 {strides = array<i32>} : memref<8x10x128xf32, #tpu.memory_space<vmem>>, vector<1x1x128xf32>,
    %c1_72 = arith.constant 1 : index
    %c1_73 = arith.constant 1 : index
    %c0_74 = arith.constant 0 : index
    %255 = vector.load %arg5[%c1_72, %c1_73, %c0_74] : memref<8x10x128xf32, #tpu.memory_space<vmem>>, vector<1x8x128xf32>
    %256 = vector.shape_cast %255 : vector<1x8x128xf32> to vector<8x128xf32>
    %257 = vector.shape_cast %246 : vector<8x128xf32> to vector<1x8x128xf32>
    tpu.vector_store %arg5[%c1_72, %c1_73, %c0_74], %257 {strides = array<i32>} : memref<8x10x128xf32, #tpu.memory_space<vmem>>, vector<1x8x128xf32>,
    %c24 = arith.constant 24 : index
    %258 = memref.load %arg1[%c24] : memref<312xf32, #tpu.memory_space<smem>>
    %259 = vector.extract_strided_slice %27 {offsets = [0, 0], sizes = [8, 128], strides = [1, 1]} : vector<9x128xf32> to vector<8x128xf32>
    %260 = vector.broadcast %258 : f32 to vector<8x128xf32>
    %261 = arith.mulf %259, %260 : vector<8x128xf32>
    %c25 = arith.constant 25 : index
    %262 = memref.load %arg1[%c25] : memref<312xf32, #tpu.memory_space<smem>>
    %263 = vector.extract_strided_slice %77 {offsets = [0, 0], sizes = [8, 128], strides = [1, 1]} : vector<9x128xf32> to vector<8x128xf32>
    %264 = vector.broadcast %262 : f32 to vector<8x128xf32>
    %265 = arith.mulf %263, %264 : vector<8x128xf32>
    %266 = arith.addf %261, %265 : vector<8x128xf32>
    %c26 = arith.constant 26 : index
    %267 = memref.load %arg1[%c26] : memref<312xf32, #tpu.memory_space<smem>>
    %268 = vector.extract_strided_slice %27 {offsets = [1, 0], sizes = [8, 128], strides = [1, 1]} : vector<9x128xf32> to vector<8x128xf32>
    %269 = vector.broadcast %267 : f32 to vector<8x128xf32>
    %270 = arith.mulf %268, %269 : vector<8x128xf32>
    %271 = arith.addf %266, %270 : vector<8x128xf32>
    %c27 = arith.constant 27 : index
    %272 = memref.load %arg1[%c27] : memref<312xf32, #tpu.memory_space<smem>>
    %273 = vector.extract_strided_slice %37 {offsets = [0, 0], sizes = [8, 128], strides = [1, 1]} : vector<9x128xf32> to vector<8x128xf32>
    %274 = vector.broadcast %272 : f32 to vector<8x128xf32>
    %275 = arith.mulf %273, %274 : vector<8x128xf32>
    %276 = arith.addf %271, %275 : vector<8x128xf32>
    %c28 = arith.constant 28 : index
    %277 = memref.load %arg1[%c28] : memref<312xf32, #tpu.memory_space<smem>>
    %278 = vector.extract_strided_slice %87 {offsets = [0, 0], sizes = [8, 128], strides = [1, 1]} : vector<9x128xf32> to vector<8x128xf32>
    %279 = vector.broadcast %277 : f32 to vector<8x128xf32>
    %280 = arith.mulf %278, %279 : vector<8x128xf32>
    %281 = arith.addf %276, %280 : vector<8x128xf32>
    %c29 = arith.constant 29 : index
    %282 = memref.load %arg1[%c29] : memref<312xf32, #tpu.memory_space<smem>>
    %283 = vector.extract_strided_slice %37 {offsets = [1, 0], sizes = [8, 128], strides = [1, 1]} : vector<9x128xf32> to vector<8x128xf32>
    %284 = vector.broadcast %282 : f32 to vector<8x128xf32>
    %285 = arith.mulf %283, %284 : vector<8x128xf32>
    %286 = arith.addf %281, %285 : vector<8x128xf32>
    %c30 = arith.constant 30 : index
    %287 = memref.load %arg1[%c30] : memref<312xf32, #tpu.memory_space<smem>>
    %288 = vector.extract_strided_slice %47 {offsets = [0, 0], sizes = [8, 128], strides = [1, 1]} : vector<9x128xf32> to vector<8x128xf32>
    %289 = vector.broadcast %287 : f32 to vector<8x128xf32>
    %290 = arith.mulf %288, %289 : vector<8x128xf32>
    %291 = arith.addf %286, %290 : vector<8x128xf32>
    %c31 = arith.constant 31 : index
    %292 = memref.load %arg1[%c31] : memref<312xf32, #tpu.memory_space<smem>>
    %293 = vector.extract_strided_slice %97 {offsets = [0, 0], sizes = [8, 128], strides = [1, 1]} : vector<9x128xf32> to vector<8x128xf32>
    %294 = vector.broadcast %292 : f32 to vector<8x128xf32>
    %295 = arith.mulf %293, %294 : vector<8x128xf32>
    %296 = arith.addf %291, %295 : vector<8x128xf32>
    %c32 = arith.constant 32 : index
    %297 = memref.load %arg1[%c32] : memref<312xf32, #tpu.memory_space<smem>>
    %298 = vector.extract_strided_slice %47 {offsets = [1, 0], sizes = [8, 128], strides = [1, 1]} : vector<9x128xf32> to vector<8x128xf32>
    %299 = vector.broadcast %297 : f32 to vector<8x128xf32>
    %300 = arith.mulf %298, %299 : vector<8x128xf32>
    %301 = arith.addf %296, %300 : vector<8x128xf32>
    %c33 = arith.constant 33 : index
    %302 = memref.load %arg1[%c33] : memref<312xf32, #tpu.memory_space<smem>>
    %303 = vector.extract_strided_slice %57 {offsets = [0, 0], sizes = [8, 128], strides = [1, 1]} : vector<9x128xf32> to vector<8x128xf32>
    %304 = vector.broadcast %302 : f32 to vector<8x128xf32>
    %305 = arith.mulf %303, %304 : vector<8x128xf32>
    %306 = arith.addf %301, %305 : vector<8x128xf32>
    %c34 = arith.constant 34 : index
    %307 = memref.load %arg1[%c34] : memref<312xf32, #tpu.memory_space<smem>>
    %308 = vector.extract_strided_slice %107 {offsets = [0, 0], sizes = [8, 128], strides = [1, 1]} : vector<9x128xf32> to vector<8x128xf32>
    %309 = vector.broadcast %307 : f32 to vector<8x128xf32>
    %310 = arith.mulf %308, %309 : vector<8x128xf32>
    %311 = arith.addf %306, %310 : vector<8x128xf32>
    %c35 = arith.constant 35 : index
    %312 = memref.load %arg1[%c35] : memref<312xf32, #tpu.memory_space<smem>>
    %313 = vector.extract_strided_slice %57 {offsets = [1, 0], sizes = [8, 128], strides = [1, 1]} : vector<9x128xf32> to vector<8x128xf32>
    %314 = vector.broadcast %312 : f32 to vector<8x128xf32>
    %315 = arith.mulf %313, %314 : vector<8x128xf32>
    %316 = arith.addf %311, %315 : vector<8x128xf32>
    %c98 = arith.constant 98 : index
    %317 = memref.load %arg1[%c98] : memref<312xf32, #tpu.memory_space<smem>>
    %318 = vector.broadcast %317 : f32 to vector<8x128xf32>
    %319 = arith.addf %316, %318 : vector<8x128xf32>
    %cst_75 = arith.constant 0.000000e+00 : f32
    %320 = vector.broadcast %cst_75 : f32 to vector<8x128xf32>
    %321 = arith.maximumf %319, %320 : vector<8x128xf32>
    %cst_76 = arith.constant 0.000000e+00 : f32
    %322 = vector.broadcast %cst_76 : f32 to vector<1x128xf32>
    %c2_77 = arith.constant 2 : index
    %c0_78 = arith.constant 0 : index
    %c0_79 = arith.constant 0 : index
    %323 = vector.load %arg5[%c2_77, %c0_78, %c0_79] : memref<8x10x128xf32, #tpu.memory_space<vmem>>, vector<1x1x128xf32>
    %324 = vector.shape_cast %323 : vector<1x1x128xf32> to vector<1x128xf32>
    %325 = vector.shape_cast %322 : vector<1x128xf32> to vector<1x1x128xf32>
    tpu.vector_store %arg5[%c2_77, %c0_78, %c0_79], %325 {strides = array<i32>} : memref<8x10x128xf32, #tpu.memory_space<vmem>>, vector<1x1x128xf32>,
    %cst_80 = arith.constant 0.000000e+00 : f32
    %326 = vector.broadcast %cst_80 : f32 to vector<1x128xf32>
    %c2_81 = arith.constant 2 : index
    %c9_82 = arith.constant 9 : index
    %c0_83 = arith.constant 0 : index
    %327 = vector.load %arg5[%c2_81, %c9_82, %c0_83] : memref<8x10x128xf32, #tpu.memory_space<vmem>>, vector<1x1x128xf32>
    %328 = vector.shape_cast %327 : vector<1x1x128xf32> to vector<1x128xf32>
    %329 = vector.shape_cast %326 : vector<1x128xf32> to vector<1x1x128xf32>
    tpu.vector_store %arg5[%c2_81, %c9_82, %c0_83], %329 {strides = array<i32>} : memref<8x10x128xf32, #tpu.memory_space<vmem>>, vector<1x1x128xf32>,
    %c2_84 = arith.constant 2 : index
    %c1_85 = arith.constant 1 : index
    %c0_86 = arith.constant 0 : index
    %330 = vector.load %arg5[%c2_84, %c1_85, %c0_86] : memref<8x10x128xf32, #tpu.memory_space<vmem>>, vector<1x8x128xf32>
    %331 = vector.shape_cast %330 : vector<1x8x128xf32> to vector<8x128xf32>
    %332 = vector.shape_cast %321 : vector<8x128xf32> to vector<1x8x128xf32>
    tpu.vector_store %arg5[%c2_84, %c1_85, %c0_86], %332 {strides = array<i32>} : memref<8x10x128xf32, #tpu.memory_space<vmem>>, vector<1x8x128xf32>,
    %c36 = arith.constant 36 : index
    %333 = memref.load %arg1[%c36] : memref<312xf32, #tpu.memory_space<smem>>
    %334 = vector.extract_strided_slice %27 {offsets = [0, 0], sizes = [8, 128], strides = [1, 1]} : vector<9x128xf32> to vector<8x128xf32>
    %335 = vector.broadcast %333 : f32 to vector<8x128xf32>
    %336 = arith.mulf %334, %335 : vector<8x128xf32>
    %c37 = arith.constant 37 : index
    %337 = memref.load %arg1[%c37] : memref<312xf32, #tpu.memory_space<smem>>
    %338 = vector.extract_strided_slice %77 {offsets = [0, 0], sizes = [8, 128], strides = [1, 1]} : vector<9x128xf32> to vector<8x128xf32>
    %339 = vector.broadcast %337 : f32 to vector<8x128xf32>
    %340 = arith.mulf %338, %339 : vector<8x128xf32>
    %341 = arith.addf %336, %340 : vector<8x128xf32>
    %c38 = arith.constant 38 : index
    %342 = memref.load %arg1[%c38] : memref<312xf32, #tpu.memory_space<smem>>
    %343 = vector.extract_strided_slice %27 {offsets = [1, 0], sizes = [8, 128], strides = [1, 1]} : vector<9x128xf32> to vector<8x128xf32>
    %344 = vector.broadcast %342 : f32 to vector<8x128xf32>
    %345 = arith.mulf %343, %344 : vector<8x128xf32>
    %346 = arith.addf %341, %345 : vector<8x128xf32>
    %c39 = arith.constant 39 : index
    %347 = memref.load %arg1[%c39] : memref<312xf32, #tpu.memory_space<smem>>
    %348 = vector.extract_strided_slice %37 {offsets = [0, 0], sizes = [8, 128], strides = [1, 1]} : vector<9x128xf32> to vector<8x128xf32>
    %349 = vector.broadcast %347 : f32 to vector<8x128xf32>
    %350 = arith.mulf %348, %349 : vector<8x128xf32>
    %351 = arith.addf %346, %350 : vector<8x128xf32>
    %c40 = arith.constant 40 : index
    %352 = memref.load %arg1[%c40] : memref<312xf32, #tpu.memory_space<smem>>
    %353 = vector.extract_strided_slice %87 {offsets = [0, 0], sizes = [8, 128], strides = [1, 1]} : vector<9x128xf32> to vector<8x128xf32>
    %354 = vector.broadcast %352 : f32 to vector<8x128xf32>
    %355 = arith.mulf %353, %354 : vector<8x128xf32>
    %356 = arith.addf %351, %355 : vector<8x128xf32>
    %c41 = arith.constant 41 : index
    %357 = memref.load %arg1[%c41] : memref<312xf32, #tpu.memory_space<smem>>
    %358 = vector.extract_strided_slice %37 {offsets = [1, 0], sizes = [8, 128], strides = [1, 1]} : vector<9x128xf32> to vector<8x128xf32>
    %359 = vector.broadcast %357 : f32 to vector<8x128xf32>
    %360 = arith.mulf %358, %359 : vector<8x128xf32>
    %361 = arith.addf %356, %360 : vector<8x128xf32>
    %c42 = arith.constant 42 : index
    %362 = memref.load %arg1[%c42] : memref<312xf32, #tpu.memory_space<smem>>
    %363 = vector.extract_strided_slice %47 {offsets = [0, 0], sizes = [8, 128], strides = [1, 1]} : vector<9x128xf32> to vector<8x128xf32>
    %364 = vector.broadcast %362 : f32 to vector<8x128xf32>
    %365 = arith.mulf %363, %364 : vector<8x128xf32>
    %366 = arith.addf %361, %365 : vector<8x128xf32>
    %c43 = arith.constant 43 : index
    %367 = memref.load %arg1[%c43] : memref<312xf32, #tpu.memory_space<smem>>
    %368 = vector.extract_strided_slice %97 {offsets = [0, 0], sizes = [8, 128], strides = [1, 1]} : vector<9x128xf32> to vector<8x128xf32>
    %369 = vector.broadcast %367 : f32 to vector<8x128xf32>
    %370 = arith.mulf %368, %369 : vector<8x128xf32>
    %371 = arith.addf %366, %370 : vector<8x128xf32>
    %c44 = arith.constant 44 : index
    %372 = memref.load %arg1[%c44] : memref<312xf32, #tpu.memory_space<smem>>
    %373 = vector.extract_strided_slice %47 {offsets = [1, 0], sizes = [8, 128], strides = [1, 1]} : vector<9x128xf32> to vector<8x128xf32>
    %374 = vector.broadcast %372 : f32 to vector<8x128xf32>
    %375 = arith.mulf %373, %374 : vector<8x128xf32>
    %376 = arith.addf %371, %375 : vector<8x128xf32>
    %c45 = arith.constant 45 : index
    %377 = memref.load %arg1[%c45] : memref<312xf32, #tpu.memory_space<smem>>
    %378 = vector.extract_strided_slice %57 {offsets = [0, 0], sizes = [8, 128], strides = [1, 1]} : vector<9x128xf32> to vector<8x128xf32>
    %379 = vector.broadcast %377 : f32 to vector<8x128xf32>
    %380 = arith.mulf %378, %379 : vector<8x128xf32>
    %381 = arith.addf %376, %380 : vector<8x128xf32>
    %c46 = arith.constant 46 : index
    %382 = memref.load %arg1[%c46] : memref<312xf32, #tpu.memory_space<smem>>
    %383 = vector.extract_strided_slice %107 {offsets = [0, 0], sizes = [8, 128], strides = [1, 1]} : vector<9x128xf32> to vector<8x128xf32>
    %384 = vector.broadcast %382 : f32 to vector<8x128xf32>
    %385 = arith.mulf %383, %384 : vector<8x128xf32>
    %386 = arith.addf %381, %385 : vector<8x128xf32>
    %c47 = arith.constant 47 : index
    %387 = memref.load %arg1[%c47] : memref<312xf32, #tpu.memory_space<smem>>
    %388 = vector.extract_strided_slice %57 {offsets = [1, 0], sizes = [8, 128], strides = [1, 1]} : vector<9x128xf32> to vector<8x128xf32>
    %389 = vector.broadcast %387 : f32 to vector<8x128xf32>
    %390 = arith.mulf %388, %389 : vector<8x128xf32>
    %391 = arith.addf %386, %390 : vector<8x128xf32>
    %c99 = arith.constant 99 : index
    %392 = memref.load %arg1[%c99] : memref<312xf32, #tpu.memory_space<smem>>
    %393 = vector.broadcast %392 : f32 to vector<8x128xf32>
    %394 = arith.addf %391, %393 : vector<8x128xf32>
    %cst_87 = arith.constant 0.000000e+00 : f32
    %395 = vector.broadcast %cst_87 : f32 to vector<8x128xf32>
    %396 = arith.maximumf %394, %395 : vector<8x128xf32>
    %cst_88 = arith.constant 0.000000e+00 : f32
    %397 = vector.broadcast %cst_88 : f32 to vector<1x128xf32>
    %c3_89 = arith.constant 3 : index
    %c0_90 = arith.constant 0 : index
    %c0_91 = arith.constant 0 : index
    %398 = vector.load %arg5[%c3_89, %c0_90, %c0_91] : memref<8x10x128xf32, #tpu.memory_space<vmem>>, vector<1x1x128xf32>
    %399 = vector.shape_cast %398 : vector<1x1x128xf32> to vector<1x128xf32>
    %400 = vector.shape_cast %397 : vector<1x128xf32> to vector<1x1x128xf32>
    tpu.vector_store %arg5[%c3_89, %c0_90, %c0_91], %400 {strides = array<i32>} : memref<8x10x128xf32, #tpu.memory_space<vmem>>, vector<1x1x128xf32>,
    %cst_92 = arith.constant 0.000000e+00 : f32
    %401 = vector.broadcast %cst_92 : f32 to vector<1x128xf32>
    %c3_93 = arith.constant 3 : index
    %c9_94 = arith.constant 9 : index
    %c0_95 = arith.constant 0 : index
    %402 = vector.load %arg5[%c3_93, %c9_94, %c0_95] : memref<8x10x128xf32, #tpu.memory_space<vmem>>, vector<1x1x128xf32>
    %403 = vector.shape_cast %402 : vector<1x1x128xf32> to vector<1x128xf32>
    %404 = vector.shape_cast %401 : vector<1x128xf32> to vector<1x1x128xf32>
    tpu.vector_store %arg5[%c3_93, %c9_94, %c0_95], %404 {strides = array<i32>} : memref<8x10x128xf32, #tpu.memory_space<vmem>>, vector<1x1x128xf32>,
    %c3_96 = arith.constant 3 : index
    %c1_97 = arith.constant 1 : index
    %c0_98 = arith.constant 0 : index
    %405 = vector.load %arg5[%c3_96, %c1_97, %c0_98] : memref<8x10x128xf32, #tpu.memory_space<vmem>>, vector<1x8x128xf32>
    %406 = vector.shape_cast %405 : vector<1x8x128xf32> to vector<8x128xf32>
    %407 = vector.shape_cast %396 : vector<8x128xf32> to vector<1x8x128xf32>
    tpu.vector_store %arg5[%c3_96, %c1_97, %c0_98], %407 {strides = array<i32>} : memref<8x10x128xf32, #tpu.memory_space<vmem>>, vector<1x8x128xf32>,
    %c48 = arith.constant 48 : index
    %408 = memref.load %arg1[%c48] : memref<312xf32, #tpu.memory_space<smem>>
    %409 = vector.extract_strided_slice %27 {offsets = [0, 0], sizes = [8, 128], strides = [1, 1]} : vector<9x128xf32> to vector<8x128xf32>
    %410 = vector.broadcast %408 : f32 to vector<8x128xf32>
    %411 = arith.mulf %409, %410 : vector<8x128xf32>
    %c49 = arith.constant 49 : index
    %412 = memref.load %arg1[%c49] : memref<312xf32, #tpu.memory_space<smem>>
    %413 = vector.extract_strided_slice %77 {offsets = [0, 0], sizes = [8, 128], strides = [1, 1]} : vector<9x128xf32> to vector<8x128xf32>
    %414 = vector.broadcast %412 : f32 to vector<8x128xf32>
    %415 = arith.mulf %413, %414 : vector<8x128xf32>
    %416 = arith.addf %411, %415 : vector<8x128xf32>
    %c50 = arith.constant 50 : index
    %417 = memref.load %arg1[%c50] : memref<312xf32, #tpu.memory_space<smem>>
    %418 = vector.extract_strided_slice %27 {offsets = [1, 0], sizes = [8, 128], strides = [1, 1]} : vector<9x128xf32> to vector<8x128xf32>
    %419 = vector.broadcast %417 : f32 to vector<8x128xf32>
    %420 = arith.mulf %418, %419 : vector<8x128xf32>
    %421 = arith.addf %416, %420 : vector<8x128xf32>
    %c51 = arith.constant 51 : index
    %422 = memref.load %arg1[%c51] : memref<312xf32, #tpu.memory_space<smem>>
    %423 = vector.extract_strided_slice %37 {offsets = [0, 0], sizes = [8, 128], strides = [1, 1]} : vector<9x128xf32> to vector<8x128xf32>
    %424 = vector.broadcast %422 : f32 to vector<8x128xf32>
    %425 = arith.mulf %423, %424 : vector<8x128xf32>
    %426 = arith.addf %421, %425 : vector<8x128xf32>
    %c52 = arith.constant 52 : index
    %427 = memref.load %arg1[%c52] : memref<312xf32, #tpu.memory_space<smem>>
    %428 = vector.extract_strided_slice %87 {offsets = [0, 0], sizes = [8, 128], strides = [1, 1]} : vector<9x128xf32> to vector<8x128xf32>
    %429 = vector.broadcast %427 : f32 to vector<8x128xf32>
    %430 = arith.mulf %428, %429 : vector<8x128xf32>
    %431 = arith.addf %426, %430 : vector<8x128xf32>
    %c53 = arith.constant 53 : index
    %432 = memref.load %arg1[%c53] : memref<312xf32, #tpu.memory_space<smem>>
    %433 = vector.extract_strided_slice %37 {offsets = [1, 0], sizes = [8, 128], strides = [1, 1]} : vector<9x128xf32> to vector<8x128xf32>
    %434 = vector.broadcast %432 : f32 to vector<8x128xf32>
    %435 = arith.mulf %433, %434 : vector<8x128xf32>
    %436 = arith.addf %431, %435 : vector<8x128xf32>
    %c54 = arith.constant 54 : index
    %437 = memref.load %arg1[%c54] : memref<312xf32, #tpu.memory_space<smem>>
    %438 = vector.extract_strided_slice %47 {offsets = [0, 0], sizes = [8, 128], strides = [1, 1]} : vector<9x128xf32> to vector<8x128xf32>
    %439 = vector.broadcast %437 : f32 to vector<8x128xf32>
    %440 = arith.mulf %438, %439 : vector<8x128xf32>
    %441 = arith.addf %436, %440 : vector<8x128xf32>
    %c55 = arith.constant 55 : index
    %442 = memref.load %arg1[%c55] : memref<312xf32, #tpu.memory_space<smem>>
    %443 = vector.extract_strided_slice %97 {offsets = [0, 0], sizes = [8, 128], strides = [1, 1]} : vector<9x128xf32> to vector<8x128xf32>
    %444 = vector.broadcast %442 : f32 to vector<8x128xf32>
    %445 = arith.mulf %443, %444 : vector<8x128xf32>
    %446 = arith.addf %441, %445 : vector<8x128xf32>
    %c56 = arith.constant 56 : index
    %447 = memref.load %arg1[%c56] : memref<312xf32, #tpu.memory_space<smem>>
    %448 = vector.extract_strided_slice %47 {offsets = [1, 0], sizes = [8, 128], strides = [1, 1]} : vector<9x128xf32> to vector<8x128xf32>
    %449 = vector.broadcast %447 : f32 to vector<8x128xf32>
    %450 = arith.mulf %448, %449 : vector<8x128xf32>
    %451 = arith.addf %446, %450 : vector<8x128xf32>
    %c57 = arith.constant 57 : index
    %452 = memref.load %arg1[%c57] : memref<312xf32, #tpu.memory_space<smem>>
    %453 = vector.extract_strided_slice %57 {offsets = [0, 0], sizes = [8, 128], strides = [1, 1]} : vector<9x128xf32> to vector<8x128xf32>
    %454 = vector.broadcast %452 : f32 to vector<8x128xf32>
    %455 = arith.mulf %453, %454 : vector<8x128xf32>
    %456 = arith.addf %451, %455 : vector<8x128xf32>
    %c58 = arith.constant 58 : index
    %457 = memref.load %arg1[%c58] : memref<312xf32, #tpu.memory_space<smem>>
    %458 = vector.extract_strided_slice %107 {offsets = [0, 0], sizes = [8, 128], strides = [1, 1]} : vector<9x128xf32> to vector<8x128xf32>
    %459 = vector.broadcast %457 : f32 to vector<8x128xf32>
    %460 = arith.mulf %458, %459 : vector<8x128xf32>
    %461 = arith.addf %456, %460 : vector<8x128xf32>
    %c59 = arith.constant 59 : index
    %462 = memref.load %arg1[%c59] : memref<312xf32, #tpu.memory_space<smem>>
    %463 = vector.extract_strided_slice %57 {offsets = [1, 0], sizes = [8, 128], strides = [1, 1]} : vector<9x128xf32> to vector<8x128xf32>
    %464 = vector.broadcast %462 : f32 to vector<8x128xf32>
    %465 = arith.mulf %463, %464 : vector<8x128xf32>
    %466 = arith.addf %461, %465 : vector<8x128xf32>
    %c100 = arith.constant 100 : index
    %467 = memref.load %arg1[%c100] : memref<312xf32, #tpu.memory_space<smem>>
    %468 = vector.broadcast %467 : f32 to vector<8x128xf32>
    %469 = arith.addf %466, %468 : vector<8x128xf32>
    %cst_99 = arith.constant 0.000000e+00 : f32
    %470 = vector.broadcast %cst_99 : f32 to vector<8x128xf32>
    %471 = arith.maximumf %469, %470 : vector<8x128xf32>
    %cst_100 = arith.constant 0.000000e+00 : f32
    %472 = vector.broadcast %cst_100 : f32 to vector<1x128xf32>
    %c4_101 = arith.constant 4 : index
    %c0_102 = arith.constant 0 : index
    %c0_103 = arith.constant 0 : index
    %473 = vector.load %arg5[%c4_101, %c0_102, %c0_103] : memref<8x10x128xf32, #tpu.memory_space<vmem>>, vector<1x1x128xf32>
    %474 = vector.shape_cast %473 : vector<1x1x128xf32> to vector<1x128xf32>
    %475 = vector.shape_cast %472 : vector<1x128xf32> to vector<1x1x128xf32>
    tpu.vector_store %arg5[%c4_101, %c0_102, %c0_103], %475 {strides = array<i32>} : memref<8x10x128xf32, #tpu.memory_space<vmem>>, vector<1x1x128xf32>,
    %cst_104 = arith.constant 0.000000e+00 : f32
    %476 = vector.broadcast %cst_104 : f32 to vector<1x128xf32>
    %c4_105 = arith.constant 4 : index
    %c9_106 = arith.constant 9 : index
    %c0_107 = arith.constant 0 : index
    %477 = vector.load %arg5[%c4_105, %c9_106, %c0_107] : memref<8x10x128xf32, #tpu.memory_space<vmem>>, vector<1x1x128xf32>
    %478 = vector.shape_cast %477 : vector<1x1x128xf32> to vector<1x128xf32>
    %479 = vector.shape_cast %476 : vector<1x128xf32> to vector<1x1x128xf32>
    tpu.vector_store %arg5[%c4_105, %c9_106, %c0_107], %479 {strides = array<i32>} : memref<8x10x128xf32, #tpu.memory_space<vmem>>, vector<1x1x128xf32>,
    %c4_108 = arith.constant 4 : index
    %c1_109 = arith.constant 1 : index
    %c0_110 = arith.constant 0 : index
    %480 = vector.load %arg5[%c4_108, %c1_109, %c0_110] : memref<8x10x128xf32, #tpu.memory_space<vmem>>, vector<1x8x128xf32>
    %481 = vector.shape_cast %480 : vector<1x8x128xf32> to vector<8x128xf32>
    %482 = vector.shape_cast %471 : vector<8x128xf32> to vector<1x8x128xf32>
    tpu.vector_store %arg5[%c4_108, %c1_109, %c0_110], %482 {strides = array<i32>} : memref<8x10x128xf32, #tpu.memory_space<vmem>>, vector<1x8x128xf32>,
    %c60 = arith.constant 60 : index
    %483 = memref.load %arg1[%c60] : memref<312xf32, #tpu.memory_space<smem>>
    %484 = vector.extract_strided_slice %27 {offsets = [0, 0], sizes = [8, 128], strides = [1, 1]} : vector<9x128xf32> to vector<8x128xf32>
    %485 = vector.broadcast %483 : f32 to vector<8x128xf32>
    %486 = arith.mulf %484, %485 : vector<8x128xf32>
    %c61 = arith.constant 61 : index
    %487 = memref.load %arg1[%c61] : memref<312xf32, #tpu.memory_space<smem>>
    %488 = vector.extract_strided_slice %77 {offsets = [0, 0], sizes = [8, 128], strides = [1, 1]} : vector<9x128xf32> to vector<8x128xf32>
    %489 = vector.broadcast %487 : f32 to vector<8x128xf32>
    %490 = arith.mulf %488, %489 : vector<8x128xf32>
    %491 = arith.addf %486, %490 : vector<8x128xf32>
    %c62 = arith.constant 62 : index
    %492 = memref.load %arg1[%c62] : memref<312xf32, #tpu.memory_space<smem>>
    %493 = vector.extract_strided_slice %27 {offsets = [1, 0], sizes = [8, 128], strides = [1, 1]} : vector<9x128xf32> to vector<8x128xf32>
    %494 = vector.broadcast %492 : f32 to vector<8x128xf32>
    %495 = arith.mulf %493, %494 : vector<8x128xf32>
    %496 = arith.addf %491, %495 : vector<8x128xf32>
    %c63 = arith.constant 63 : index
    %497 = memref.load %arg1[%c63] : memref<312xf32, #tpu.memory_space<smem>>
    %498 = vector.extract_strided_slice %37 {offsets = [0, 0], sizes = [8, 128], strides = [1, 1]} : vector<9x128xf32> to vector<8x128xf32>
    %499 = vector.broadcast %497 : f32 to vector<8x128xf32>
    %500 = arith.mulf %498, %499 : vector<8x128xf32>
    %501 = arith.addf %496, %500 : vector<8x128xf32>
    %c64 = arith.constant 64 : index
    %502 = memref.load %arg1[%c64] : memref<312xf32, #tpu.memory_space<smem>>
    %503 = vector.extract_strided_slice %87 {offsets = [0, 0], sizes = [8, 128], strides = [1, 1]} : vector<9x128xf32> to vector<8x128xf32>
    %504 = vector.broadcast %502 : f32 to vector<8x128xf32>
    %505 = arith.mulf %503, %504 : vector<8x128xf32>
    %506 = arith.addf %501, %505 : vector<8x128xf32>
    %c65 = arith.constant 65 : index
    %507 = memref.load %arg1[%c65] : memref<312xf32, #tpu.memory_space<smem>>
    %508 = vector.extract_strided_slice %37 {offsets = [1, 0], sizes = [8, 128], strides = [1, 1]} : vector<9x128xf32> to vector<8x128xf32>
    %509 = vector.broadcast %507 : f32 to vector<8x128xf32>
    %510 = arith.mulf %508, %509 : vector<8x128xf32>
    %511 = arith.addf %506, %510 : vector<8x128xf32>
    %c66 = arith.constant 66 : index
    %512 = memref.load %arg1[%c66] : memref<312xf32, #tpu.memory_space<smem>>
    %513 = vector.extract_strided_slice %47 {offsets = [0, 0], sizes = [8, 128], strides = [1, 1]} : vector<9x128xf32> to vector<8x128xf32>
    %514 = vector.broadcast %512 : f32 to vector<8x128xf32>
    %515 = arith.mulf %513, %514 : vector<8x128xf32>
    %516 = arith.addf %511, %515 : vector<8x128xf32>
    %c67 = arith.constant 67 : index
    %517 = memref.load %arg1[%c67] : memref<312xf32, #tpu.memory_space<smem>>
    %518 = vector.extract_strided_slice %97 {offsets = [0, 0], sizes = [8, 128], strides = [1, 1]} : vector<9x128xf32> to vector<8x128xf32>
    %519 = vector.broadcast %517 : f32 to vector<8x128xf32>
    %520 = arith.mulf %518, %519 : vector<8x128xf32>
    %521 = arith.addf %516, %520 : vector<8x128xf32>
    %c68 = arith.constant 68 : index
    %522 = memref.load %arg1[%c68] : memref<312xf32, #tpu.memory_space<smem>>
    %523 = vector.extract_strided_slice %47 {offsets = [1, 0], sizes = [8, 128], strides = [1, 1]} : vector<9x128xf32> to vector<8x128xf32>
    %524 = vector.broadcast %522 : f32 to vector<8x128xf32>
    %525 = arith.mulf %523, %524 : vector<8x128xf32>
    %526 = arith.addf %521, %525 : vector<8x128xf32>
    %c69 = arith.constant 69 : index
    %527 = memref.load %arg1[%c69] : memref<312xf32, #tpu.memory_space<smem>>
    %528 = vector.extract_strided_slice %57 {offsets = [0, 0], sizes = [8, 128], strides = [1, 1]} : vector<9x128xf32> to vector<8x128xf32>
    %529 = vector.broadcast %527 : f32 to vector<8x128xf32>
    %530 = arith.mulf %528, %529 : vector<8x128xf32>
    %531 = arith.addf %526, %530 : vector<8x128xf32>
    %c70 = arith.constant 70 : index
    %532 = memref.load %arg1[%c70] : memref<312xf32, #tpu.memory_space<smem>>
    %533 = vector.extract_strided_slice %107 {offsets = [0, 0], sizes = [8, 128], strides = [1, 1]} : vector<9x128xf32> to vector<8x128xf32>
    %534 = vector.broadcast %532 : f32 to vector<8x128xf32>
    %535 = arith.mulf %533, %534 : vector<8x128xf32>
    %536 = arith.addf %531, %535 : vector<8x128xf32>
    %c71 = arith.constant 71 : index
    %537 = memref.load %arg1[%c71] : memref<312xf32, #tpu.memory_space<smem>>
    %538 = vector.extract_strided_slice %57 {offsets = [1, 0], sizes = [8, 128], strides = [1, 1]} : vector<9x128xf32> to vector<8x128xf32>
    %539 = vector.broadcast %537 : f32 to vector<8x128xf32>
    %540 = arith.mulf %538, %539 : vector<8x128xf32>
    %541 = arith.addf %536, %540 : vector<8x128xf32>
    %c101 = arith.constant 101 : index
    %542 = memref.load %arg1[%c101] : memref<312xf32, #tpu.memory_space<smem>>
    %543 = vector.broadcast %542 : f32 to vector<8x128xf32>
    %544 = arith.addf %541, %543 : vector<8x128xf32>
    %cst_111 = arith.constant 0.000000e+00 : f32
    %545 = vector.broadcast %cst_111 : f32 to vector<8x128xf32>
    %546 = arith.maximumf %544, %545 : vector<8x128xf32>
    %cst_112 = arith.constant 0.000000e+00 : f32
    %547 = vector.broadcast %cst_112 : f32 to vector<1x128xf32>
    %c5_113 = arith.constant 5 : index
    %c0_114 = arith.constant 0 : index
    %c0_115 = arith.constant 0 : index
    %548 = vector.load %arg5[%c5_113, %c0_114, %c0_115] : memref<8x10x128xf32, #tpu.memory_space<vmem>>, vector<1x1x128xf32>
    %549 = vector.shape_cast %548 : vector<1x1x128xf32> to vector<1x128xf32>
    %550 = vector.shape_cast %547 : vector<1x128xf32> to vector<1x1x128xf32>
    tpu.vector_store %arg5[%c5_113, %c0_114, %c0_115], %550 {strides = array<i32>} : memref<8x10x128xf32, #tpu.memory_space<vmem>>, vector<1x1x128xf32>,
    %cst_116 = arith.constant 0.000000e+00 : f32
    %551 = vector.broadcast %cst_116 : f32 to vector<1x128xf32>
    %c5_117 = arith.constant 5 : index
    %c9_118 = arith.constant 9 : index
    %c0_119 = arith.constant 0 : index
    %552 = vector.load %arg5[%c5_117, %c9_118, %c0_119] : memref<8x10x128xf32, #tpu.memory_space<vmem>>, vector<1x1x128xf32>
    %553 = vector.shape_cast %552 : vector<1x1x128xf32> to vector<1x128xf32>
    %554 = vector.shape_cast %551 : vector<1x128xf32> to vector<1x1x128xf32>
    tpu.vector_store %arg5[%c5_117, %c9_118, %c0_119], %554 {strides = array<i32>} : memref<8x10x128xf32, #tpu.memory_space<vmem>>, vector<1x1x128xf32>,
    %c5_120 = arith.constant 5 : index
    %c1_121 = arith.constant 1 : index
    %c0_122 = arith.constant 0 : index
    %555 = vector.load %arg5[%c5_120, %c1_121, %c0_122] : memref<8x10x128xf32, #tpu.memory_space<vmem>>, vector<1x8x128xf32>
    %556 = vector.shape_cast %555 : vector<1x8x128xf32> to vector<8x128xf32>
    %557 = vector.shape_cast %546 : vector<8x128xf32> to vector<1x8x128xf32>
    tpu.vector_store %arg5[%c5_120, %c1_121, %c0_122], %557 {strides = array<i32>} : memref<8x10x128xf32, #tpu.memory_space<vmem>>, vector<1x8x128xf32>,
    %c72 = arith.constant 72 : index
    %558 = memref.load %arg1[%c72] : memref<312xf32, #tpu.memory_space<smem>>
    %559 = vector.extract_strided_slice %27 {offsets = [0, 0], sizes = [8, 128], strides = [1, 1]} : vector<9x128xf32> to vector<8x128xf32>
    %560 = vector.broadcast %558 : f32 to vector<8x128xf32>
    %561 = arith.mulf %559, %560 : vector<8x128xf32>
    %c73 = arith.constant 73 : index
    %562 = memref.load %arg1[%c73] : memref<312xf32, #tpu.memory_space<smem>>
    %563 = vector.extract_strided_slice %77 {offsets = [0, 0], sizes = [8, 128], strides = [1, 1]} : vector<9x128xf32> to vector<8x128xf32>
    %564 = vector.broadcast %562 : f32 to vector<8x128xf32>
    %565 = arith.mulf %563, %564 : vector<8x128xf32>
    %566 = arith.addf %561, %565 : vector<8x128xf32>
    %c74 = arith.constant 74 : index
    %567 = memref.load %arg1[%c74] : memref<312xf32, #tpu.memory_space<smem>>
    %568 = vector.extract_strided_slice %27 {offsets = [1, 0], sizes = [8, 128], strides = [1, 1]} : vector<9x128xf32> to vector<8x128xf32>
    %569 = vector.broadcast %567 : f32 to vector<8x128xf32>
    %570 = arith.mulf %568, %569 : vector<8x128xf32>
    %571 = arith.addf %566, %570 : vector<8x128xf32>
    %c75 = arith.constant 75 : index
    %572 = memref.load %arg1[%c75] : memref<312xf32, #tpu.memory_space<smem>>
    %573 = vector.extract_strided_slice %37 {offsets = [0, 0], sizes = [8, 128], strides = [1, 1]} : vector<9x128xf32> to vector<8x128xf32>
    %574 = vector.broadcast %572 : f32 to vector<8x128xf32>
    %575 = arith.mulf %573, %574 : vector<8x128xf32>
    %576 = arith.addf %571, %575 : vector<8x128xf32>
    %c76 = arith.constant 76 : index
    %577 = memref.load %arg1[%c76] : memref<312xf32, #tpu.memory_space<smem>>
    %578 = vector.extract_strided_slice %87 {offsets = [0, 0], sizes = [8, 128], strides = [1, 1]} : vector<9x128xf32> to vector<8x128xf32>
    %579 = vector.broadcast %577 : f32 to vector<8x128xf32>
    %580 = arith.mulf %578, %579 : vector<8x128xf32>
    %581 = arith.addf %576, %580 : vector<8x128xf32>
    %c77 = arith.constant 77 : index
    %582 = memref.load %arg1[%c77] : memref<312xf32, #tpu.memory_space<smem>>
    %583 = vector.extract_strided_slice %37 {offsets = [1, 0], sizes = [8, 128], strides = [1, 1]} : vector<9x128xf32> to vector<8x128xf32>
    %584 = vector.broadcast %582 : f32 to vector<8x128xf32>
    %585 = arith.mulf %583, %584 : vector<8x128xf32>
    %586 = arith.addf %581, %585 : vector<8x128xf32>
    %c78 = arith.constant 78 : index
    %587 = memref.load %arg1[%c78] : memref<312xf32, #tpu.memory_space<smem>>
    %588 = vector.extract_strided_slice %47 {offsets = [0, 0], sizes = [8, 128], strides = [1, 1]} : vector<9x128xf32> to vector<8x128xf32>
    %589 = vector.broadcast %587 : f32 to vector<8x128xf32>
    %590 = arith.mulf %588, %589 : vector<8x128xf32>
    %591 = arith.addf %586, %590 : vector<8x128xf32>
    %c79 = arith.constant 79 : index
    %592 = memref.load %arg1[%c79] : memref<312xf32, #tpu.memory_space<smem>>
    %593 = vector.extract_strided_slice %97 {offsets = [0, 0], sizes = [8, 128], strides = [1, 1]} : vector<9x128xf32> to vector<8x128xf32>
    %594 = vector.broadcast %592 : f32 to vector<8x128xf32>
    %595 = arith.mulf %593, %594 : vector<8x128xf32>
    %596 = arith.addf %591, %595 : vector<8x128xf32>
    %c80 = arith.constant 80 : index
    %597 = memref.load %arg1[%c80] : memref<312xf32, #tpu.memory_space<smem>>
    %598 = vector.extract_strided_slice %47 {offsets = [1, 0], sizes = [8, 128], strides = [1, 1]} : vector<9x128xf32> to vector<8x128xf32>
    %599 = vector.broadcast %597 : f32 to vector<8x128xf32>
    %600 = arith.mulf %598, %599 : vector<8x128xf32>
    %601 = arith.addf %596, %600 : vector<8x128xf32>
    %c81 = arith.constant 81 : index
    %602 = memref.load %arg1[%c81] : memref<312xf32, #tpu.memory_space<smem>>
    %603 = vector.extract_strided_slice %57 {offsets = [0, 0], sizes = [8, 128], strides = [1, 1]} : vector<9x128xf32> to vector<8x128xf32>
    %604 = vector.broadcast %602 : f32 to vector<8x128xf32>
    %605 = arith.mulf %603, %604 : vector<8x128xf32>
    %606 = arith.addf %601, %605 : vector<8x128xf32>
    %c82 = arith.constant 82 : index
    %607 = memref.load %arg1[%c82] : memref<312xf32, #tpu.memory_space<smem>>
    %608 = vector.extract_strided_slice %107 {offsets = [0, 0], sizes = [8, 128], strides = [1, 1]} : vector<9x128xf32> to vector<8x128xf32>
    %609 = vector.broadcast %607 : f32 to vector<8x128xf32>
    %610 = arith.mulf %608, %609 : vector<8x128xf32>
    %611 = arith.addf %606, %610 : vector<8x128xf32>
    %c83 = arith.constant 83 : index
    %612 = memref.load %arg1[%c83] : memref<312xf32, #tpu.memory_space<smem>>
    %613 = vector.extract_strided_slice %57 {offsets = [1, 0], sizes = [8, 128], strides = [1, 1]} : vector<9x128xf32> to vector<8x128xf32>
    %614 = vector.broadcast %612 : f32 to vector<8x128xf32>
    %615 = arith.mulf %613, %614 : vector<8x128xf32>
    %616 = arith.addf %611, %615 : vector<8x128xf32>
    %c102 = arith.constant 102 : index
    %617 = memref.load %arg1[%c102] : memref<312xf32, #tpu.memory_space<smem>>
    %618 = vector.broadcast %617 : f32 to vector<8x128xf32>
    %619 = arith.addf %616, %618 : vector<8x128xf32>
    %cst_123 = arith.constant 0.000000e+00 : f32
    %620 = vector.broadcast %cst_123 : f32 to vector<8x128xf32>
    %621 = arith.maximumf %619, %620 : vector<8x128xf32>
    %cst_124 = arith.constant 0.000000e+00 : f32
    %622 = vector.broadcast %cst_124 : f32 to vector<1x128xf32>
    %c6_125 = arith.constant 6 : index
    %c0_126 = arith.constant 0 : index
    %c0_127 = arith.constant 0 : index
    %623 = vector.load %arg5[%c6_125, %c0_126, %c0_127] : memref<8x10x128xf32, #tpu.memory_space<vmem>>, vector<1x1x128xf32>
    %624 = vector.shape_cast %623 : vector<1x1x128xf32> to vector<1x128xf32>
    %625 = vector.shape_cast %622 : vector<1x128xf32> to vector<1x1x128xf32>
    tpu.vector_store %arg5[%c6_125, %c0_126, %c0_127], %625 {strides = array<i32>} : memref<8x10x128xf32, #tpu.memory_space<vmem>>, vector<1x1x128xf32>,
    %cst_128 = arith.constant 0.000000e+00 : f32
    %626 = vector.broadcast %cst_128 : f32 to vector<1x128xf32>
    %c6_129 = arith.constant 6 : index
    %c9_130 = arith.constant 9 : index
    %c0_131 = arith.constant 0 : index
    %627 = vector.load %arg5[%c6_129, %c9_130, %c0_131] : memref<8x10x128xf32, #tpu.memory_space<vmem>>, vector<1x1x128xf32>
    %628 = vector.shape_cast %627 : vector<1x1x128xf32> to vector<1x128xf32>
    %629 = vector.shape_cast %626 : vector<1x128xf32> to vector<1x1x128xf32>
    tpu.vector_store %arg5[%c6_129, %c9_130, %c0_131], %629 {strides = array<i32>} : memref<8x10x128xf32, #tpu.memory_space<vmem>>, vector<1x1x128xf32>,
    %c6_132 = arith.constant 6 : index
    %c1_133 = arith.constant 1 : index
    %c0_134 = arith.constant 0 : index
    %630 = vector.load %arg5[%c6_132, %c1_133, %c0_134] : memref<8x10x128xf32, #tpu.memory_space<vmem>>, vector<1x8x128xf32>
    %631 = vector.shape_cast %630 : vector<1x8x128xf32> to vector<8x128xf32>
    %632 = vector.shape_cast %621 : vector<8x128xf32> to vector<1x8x128xf32>
    tpu.vector_store %arg5[%c6_132, %c1_133, %c0_134], %632 {strides = array<i32>} : memref<8x10x128xf32, #tpu.memory_space<vmem>>, vector<1x8x128xf32>,
    %c84 = arith.constant 84 : index
    %633 = memref.load %arg1[%c84] : memref<312xf32, #tpu.memory_space<smem>>
    %634 = vector.extract_strided_slice %27 {offsets = [0, 0], sizes = [8, 128], strides = [1, 1]} : vector<9x128xf32> to vector<8x128xf32>
    %635 = vector.broadcast %633 : f32 to vector<8x128xf32>
    %636 = arith.mulf %634, %635 : vector<8x128xf32>
    %c85 = arith.constant 85 : index
    %637 = memref.load %arg1[%c85] : memref<312xf32, #tpu.memory_space<smem>>
    %638 = vector.extract_strided_slice %77 {offsets = [0, 0], sizes = [8, 128], strides = [1, 1]} : vector<9x128xf32> to vector<8x128xf32>
    %639 = vector.broadcast %637 : f32 to vector<8x128xf32>
    %640 = arith.mulf %638, %639 : vector<8x128xf32>
    %641 = arith.addf %636, %640 : vector<8x128xf32>
    %c86 = arith.constant 86 : index
    %642 = memref.load %arg1[%c86] : memref<312xf32, #tpu.memory_space<smem>>
    %643 = vector.extract_strided_slice %27 {offsets = [1, 0], sizes = [8, 128], strides = [1, 1]} : vector<9x128xf32> to vector<8x128xf32>
    %644 = vector.broadcast %642 : f32 to vector<8x128xf32>
    %645 = arith.mulf %643, %644 : vector<8x128xf32>
    %646 = arith.addf %641, %645 : vector<8x128xf32>
    %c87 = arith.constant 87 : index
    %647 = memref.load %arg1[%c87] : memref<312xf32, #tpu.memory_space<smem>>
    %648 = vector.extract_strided_slice %37 {offsets = [0, 0], sizes = [8, 128], strides = [1, 1]} : vector<9x128xf32> to vector<8x128xf32>
    %649 = vector.broadcast %647 : f32 to vector<8x128xf32>
    %650 = arith.mulf %648, %649 : vector<8x128xf32>
    %651 = arith.addf %646, %650 : vector<8x128xf32>
    %c88 = arith.constant 88 : index
    %652 = memref.load %arg1[%c88] : memref<312xf32, #tpu.memory_space<smem>>
    %653 = vector.extract_strided_slice %87 {offsets = [0, 0], sizes = [8, 128], strides = [1, 1]} : vector<9x128xf32> to vector<8x128xf32>
    %654 = vector.broadcast %652 : f32 to vector<8x128xf32>
    %655 = arith.mulf %653, %654 : vector<8x128xf32>
    %656 = arith.addf %651, %655 : vector<8x128xf32>
    %c89 = arith.constant 89 : index
    %657 = memref.load %arg1[%c89] : memref<312xf32, #tpu.memory_space<smem>>
    %658 = vector.extract_strided_slice %37 {offsets = [1, 0], sizes = [8, 128], strides = [1, 1]} : vector<9x128xf32> to vector<8x128xf32>
    %659 = vector.broadcast %657 : f32 to vector<8x128xf32>
    %660 = arith.mulf %658, %659 : vector<8x128xf32>
    %661 = arith.addf %656, %660 : vector<8x128xf32>
    %c90 = arith.constant 90 : index
    %662 = memref.load %arg1[%c90] : memref<312xf32, #tpu.memory_space<smem>>
    %663 = vector.extract_strided_slice %47 {offsets = [0, 0], sizes = [8, 128], strides = [1, 1]} : vector<9x128xf32> to vector<8x128xf32>
    %664 = vector.broadcast %662 : f32 to vector<8x128xf32>
    %665 = arith.mulf %663, %664 : vector<8x128xf32>
    %666 = arith.addf %661, %665 : vector<8x128xf32>
    %c91 = arith.constant 91 : index
    %667 = memref.load %arg1[%c91] : memref<312xf32, #tpu.memory_space<smem>>
    %668 = vector.extract_strided_slice %97 {offsets = [0, 0], sizes = [8, 128], strides = [1, 1]} : vector<9x128xf32> to vector<8x128xf32>
    %669 = vector.broadcast %667 : f32 to vector<8x128xf32>
    %670 = arith.mulf %668, %669 : vector<8x128xf32>
    %671 = arith.addf %666, %670 : vector<8x128xf32>
    %c92 = arith.constant 92 : index
    %672 = memref.load %arg1[%c92] : memref<312xf32, #tpu.memory_space<smem>>
    %673 = vector.extract_strided_slice %47 {offsets = [1, 0], sizes = [8, 128], strides = [1, 1]} : vector<9x128xf32> to vector<8x128xf32>
    %674 = vector.broadcast %672 : f32 to vector<8x128xf32>
    %675 = arith.mulf %673, %674 : vector<8x128xf32>
    %676 = arith.addf %671, %675 : vector<8x128xf32>
    %c93 = arith.constant 93 : index
    %677 = memref.load %arg1[%c93] : memref<312xf32, #tpu.memory_space<smem>>
    %678 = vector.extract_strided_slice %57 {offsets = [0, 0], sizes = [8, 128], strides = [1, 1]} : vector<9x128xf32> to vector<8x128xf32>
    %679 = vector.broadcast %677 : f32 to vector<8x128xf32>
    %680 = arith.mulf %678, %679 : vector<8x128xf32>
    %681 = arith.addf %676, %680 : vector<8x128xf32>
    %c94 = arith.constant 94 : index
    %682 = memref.load %arg1[%c94] : memref<312xf32, #tpu.memory_space<smem>>
    %683 = vector.extract_strided_slice %107 {offsets = [0, 0], sizes = [8, 128], strides = [1, 1]} : vector<9x128xf32> to vector<8x128xf32>
    %684 = vector.broadcast %682 : f32 to vector<8x128xf32>
    %685 = arith.mulf %683, %684 : vector<8x128xf32>
    %686 = arith.addf %681, %685 : vector<8x128xf32>
    %c95 = arith.constant 95 : index
    %687 = memref.load %arg1[%c95] : memref<312xf32, #tpu.memory_space<smem>>
    %688 = vector.extract_strided_slice %57 {offsets = [1, 0], sizes = [8, 128], strides = [1, 1]} : vector<9x128xf32> to vector<8x128xf32>
    %689 = vector.broadcast %687 : f32 to vector<8x128xf32>
    %690 = arith.mulf %688, %689 : vector<8x128xf32>
    %691 = arith.addf %686, %690 : vector<8x128xf32>
    %c103 = arith.constant 103 : index
    %692 = memref.load %arg1[%c103] : memref<312xf32, #tpu.memory_space<smem>>
    %693 = vector.broadcast %692 : f32 to vector<8x128xf32>
    %694 = arith.addf %691, %693 : vector<8x128xf32>
    %cst_135 = arith.constant 0.000000e+00 : f32
    %695 = vector.broadcast %cst_135 : f32 to vector<8x128xf32>
    %696 = arith.maximumf %694, %695 : vector<8x128xf32>
    %cst_136 = arith.constant 0.000000e+00 : f32
    %697 = vector.broadcast %cst_136 : f32 to vector<1x128xf32>
    %c7_137 = arith.constant 7 : index
    %c0_138 = arith.constant 0 : index
    %c0_139 = arith.constant 0 : index
    %698 = vector.load %arg5[%c7_137, %c0_138, %c0_139] : memref<8x10x128xf32, #tpu.memory_space<vmem>>, vector<1x1x128xf32>
    %699 = vector.shape_cast %698 : vector<1x1x128xf32> to vector<1x128xf32>
    %700 = vector.shape_cast %697 : vector<1x128xf32> to vector<1x1x128xf32>
    tpu.vector_store %arg5[%c7_137, %c0_138, %c0_139], %700 {strides = array<i32>} : memref<8x10x128xf32, #tpu.memory_space<vmem>>, vector<1x1x128xf32>,
    %cst_140 = arith.constant 0.000000e+00 : f32
    %701 = vector.broadcast %cst_140 : f32 to vector<1x128xf32>
    %c7_141 = arith.constant 7 : index
    %c9_142 = arith.constant 9 : index
    %c0_143 = arith.constant 0 : index
    %702 = vector.load %arg5[%c7_141, %c9_142, %c0_143] : memref<8x10x128xf32, #tpu.memory_space<vmem>>, vector<1x1x128xf32>
    %703 = vector.shape_cast %702 : vector<1x1x128xf32> to vector<1x128xf32>
    %704 = vector.shape_cast %701 : vector<1x128xf32> to vector<1x1x128xf32>
    tpu.vector_store %arg5[%c7_141, %c9_142, %c0_143], %704 {strides = array<i32>} : memref<8x10x128xf32, #tpu.memory_space<vmem>>, vector<1x1x128xf32>,
    %c7_144 = arith.constant 7 : index
    %c1_145 = arith.constant 1 : index
    %c0_146 = arith.constant 0 : index
    %705 = vector.load %arg5[%c7_144, %c1_145, %c0_146] : memref<8x10x128xf32, #tpu.memory_space<vmem>>, vector<1x8x128xf32>
    %706 = vector.shape_cast %705 : vector<1x8x128xf32> to vector<8x128xf32>
    %707 = vector.shape_cast %696 : vector<8x128xf32> to vector<1x8x128xf32>
    tpu.vector_store %arg5[%c7_144, %c1_145, %c0_146], %707 {strides = array<i32>} : memref<8x10x128xf32, #tpu.memory_space<vmem>>, vector<1x8x128xf32>,
    %c0_147 = arith.constant 0 : index
    %c0_148 = arith.constant 0 : index
    %c0_149 = arith.constant 0 : index
    %c0_150 = arith.constant 0 : index
    %708 = vector.load %arg3[%c0_147, %c0_148, %c0_149, %c0_150] : memref<2x4x8x128xf32, #tpu.memory_space<vmem>>, vector<1x1x8x128xf32>
    %709 = vector.shape_cast %708 : vector<1x1x8x128xf32> to vector<8x128xf32>
    %c1_151 = arith.constant 1 : index
    %c0_152 = arith.constant 0 : index
    %c0_153 = arith.constant 0 : index
    %c0_154 = arith.constant 0 : index
    %710 = vector.load %arg3[%c1_151, %c0_152, %c0_153, %c0_154] : memref<2x4x8x128xf32, #tpu.memory_space<vmem>>, vector<1x1x8x128xf32>
    %711 = vector.shape_cast %710 : vector<1x1x8x128xf32> to vector<8x128xf32>
    %712 = arith.maximumf %709, %711 : vector<8x128xf32>
    %c0_155 = arith.constant 0 : index
    %c1_156 = arith.constant 1 : index
    %c0_157 = arith.constant 0 : index
    %c0_158 = arith.constant 0 : index
    %713 = vector.load %arg3[%c0_155, %c1_156, %c0_157, %c0_158] : memref<2x4x8x128xf32, #tpu.memory_space<vmem>>, vector<1x1x8x128xf32>
    %714 = vector.shape_cast %713 : vector<1x1x8x128xf32> to vector<8x128xf32>
    %c1_159 = arith.constant 1 : index
    %c1_160 = arith.constant 1 : index
    %c0_161 = arith.constant 0 : index
    %c0_162 = arith.constant 0 : index
    %715 = vector.load %arg3[%c1_159, %c1_160, %c0_161, %c0_162] : memref<2x4x8x128xf32, #tpu.memory_space<vmem>>, vector<1x1x8x128xf32>
    %716 = vector.shape_cast %715 : vector<1x1x8x128xf32> to vector<8x128xf32>
    %717 = arith.maximumf %714, %716 : vector<8x128xf32>
    %c0_163 = arith.constant 0 : index
    %c2_164 = arith.constant 2 : index
    %c0_165 = arith.constant 0 : index
    %c0_166 = arith.constant 0 : index
    %718 = vector.load %arg3[%c0_163, %c2_164, %c0_165, %c0_166] : memref<2x4x8x128xf32, #tpu.memory_space<vmem>>, vector<1x1x8x128xf32>
    %719 = vector.shape_cast %718 : vector<1x1x8x128xf32> to vector<8x128xf32>
    %c1_167 = arith.constant 1 : index
    %c2_168 = arith.constant 2 : index
    %c0_169 = arith.constant 0 : index
    %c0_170 = arith.constant 0 : index
    %720 = vector.load %arg3[%c1_167, %c2_168, %c0_169, %c0_170] : memref<2x4x8x128xf32, #tpu.memory_space<vmem>>, vector<1x1x8x128xf32>
    %721 = vector.shape_cast %720 : vector<1x1x8x128xf32> to vector<8x128xf32>
    %722 = arith.maximumf %719, %721 : vector<8x128xf32>
    %c0_171 = arith.constant 0 : index
    %c3_172 = arith.constant 3 : index
    %c0_173 = arith.constant 0 : index
    %c0_174 = arith.constant 0 : index
    %723 = vector.load %arg3[%c0_171, %c3_172, %c0_173, %c0_174] : memref<2x4x8x128xf32, #tpu.memory_space<vmem>>, vector<1x1x8x128xf32>
    %724 = vector.shape_cast %723 : vector<1x1x8x128xf32> to vector<8x128xf32>
    %c1_175 = arith.constant 1 : index
    %c3_176 = arith.constant 3 : index
    %c0_177 = arith.constant 0 : index
    %c0_178 = arith.constant 0 : index
    %725 = vector.load %arg3[%c1_175, %c3_176, %c0_177, %c0_178] : memref<2x4x8x128xf32, #tpu.memory_space<vmem>>, vector<1x1x8x128xf32>
    %726 = vector.shape_cast %725 : vector<1x1x8x128xf32> to vector<8x128xf32>
    %727 = arith.maximumf %724, %726 : vector<8x128xf32>
    %c104 = arith.constant 104 : index
    %728 = memref.load %arg1[%c104] : memref<312xf32, #tpu.memory_space<smem>>
    %c0_179 = arith.constant 0 : index
    %c0_180 = arith.constant 0 : index
    %c0_181 = arith.constant 0 : index
    %729 = vector.load %arg5[%c0_179, %c0_180, %c0_181] : memref<8x10x128xf32, #tpu.memory_space<vmem>>, vector<1x8x128xf32>
    %730 = vector.shape_cast %729 : vector<1x8x128xf32> to vector<8x128xf32>
    %731 = vector.broadcast %728 : f32 to vector<8x128xf32>
    %732 = arith.mulf %730, %731 : vector<8x128xf32>
    %c105 = arith.constant 105 : index
    %733 = memref.load %arg1[%c105] : memref<312xf32, #tpu.memory_space<smem>>
    %c0_182 = arith.constant 0 : index
    %c1_183 = arith.constant 1 : index
    %c0_184 = arith.constant 0 : index
    %734 = vector.load %arg5[%c0_182, %c1_183, %c0_184] : memref<8x10x128xf32, #tpu.memory_space<vmem>>, vector<1x8x128xf32>
    %735 = vector.shape_cast %734 : vector<1x8x128xf32> to vector<8x128xf32>
    %736 = vector.broadcast %733 : f32 to vector<8x128xf32>
    %737 = arith.mulf %735, %736 : vector<8x128xf32>
    %738 = arith.addf %732, %737 : vector<8x128xf32>
    %c106 = arith.constant 106 : index
    %739 = memref.load %arg1[%c106] : memref<312xf32, #tpu.memory_space<smem>>
    %c0_185 = arith.constant 0 : index
    %c2_186 = arith.constant 2 : index
    %c0_187 = arith.constant 0 : index
    %740 = vector.load %arg5[%c0_185, %c2_186, %c0_187] : memref<8x10x128xf32, #tpu.memory_space<vmem>>, vector<1x8x128xf32>
    %741 = vector.shape_cast %740 : vector<1x8x128xf32> to vector<8x128xf32>
    %742 = vector.broadcast %739 : f32 to vector<8x128xf32>
    %743 = arith.mulf %741, %742 : vector<8x128xf32>
    %744 = arith.addf %738, %743 : vector<8x128xf32>
    %c107 = arith.constant 107 : index
    %745 = memref.load %arg1[%c107] : memref<312xf32, #tpu.memory_space<smem>>
    %c1_188 = arith.constant 1 : index
    %c0_189 = arith.constant 0 : index
    %c0_190 = arith.constant 0 : index
    %746 = vector.load %arg5[%c1_188, %c0_189, %c0_190] : memref<8x10x128xf32, #tpu.memory_space<vmem>>, vector<1x8x128xf32>
    %747 = vector.shape_cast %746 : vector<1x8x128xf32> to vector<8x128xf32>
    %748 = vector.broadcast %745 : f32 to vector<8x128xf32>
    %749 = arith.mulf %747, %748 : vector<8x128xf32>
    %750 = arith.addf %744, %749 : vector<8x128xf32>
    %c108 = arith.constant 108 : index
    %751 = memref.load %arg1[%c108] : memref<312xf32, #tpu.memory_space<smem>>
    %c1_191 = arith.constant 1 : index
    %c1_192 = arith.constant 1 : index
    %c0_193 = arith.constant 0 : index
    %752 = vector.load %arg5[%c1_191, %c1_192, %c0_193] : memref<8x10x128xf32, #tpu.memory_space<vmem>>, vector<1x8x128xf32>
    %753 = vector.shape_cast %752 : vector<1x8x128xf32> to vector<8x128xf32>
    %754 = vector.broadcast %751 : f32 to vector<8x128xf32>
    %755 = arith.mulf %753, %754 : vector<8x128xf32>
    %756 = arith.addf %750, %755 : vector<8x128xf32>
    %c109 = arith.constant 109 : index
    %757 = memref.load %arg1[%c109] : memref<312xf32, #tpu.memory_space<smem>>
    %c1_194 = arith.constant 1 : index
    %c2_195 = arith.constant 2 : index
    %c0_196 = arith.constant 0 : index
    %758 = vector.load %arg5[%c1_194, %c2_195, %c0_196] : memref<8x10x128xf32, #tpu.memory_space<vmem>>, vector<1x8x128xf32>
    %759 = vector.shape_cast %758 : vector<1x8x128xf32> to vector<8x128xf32>
    %760 = vector.broadcast %757 : f32 to vector<8x128xf32>
    %761 = arith.mulf %759, %760 : vector<8x128xf32>
    %762 = arith.addf %756, %761 : vector<8x128xf32>
    %c110 = arith.constant 110 : index
    %763 = memref.load %arg1[%c110] : memref<312xf32, #tpu.memory_space<smem>>
    %c2_197 = arith.constant 2 : index
    %c0_198 = arith.constant 0 : index
    %c0_199 = arith.constant 0 : index
    %764 = vector.load %arg5[%c2_197, %c0_198, %c0_199] : memref<8x10x128xf32, #tpu.memory_space<vmem>>, vector<1x8x128xf32>
    %765 = vector.shape_cast %764 : vector<1x8x128xf32> to vector<8x128xf32>
    %766 = vector.broadcast %763 : f32 to vector<8x128xf32>
    %767 = arith.mulf %765, %766 : vector<8x128xf32>
    %768 = arith.addf %762, %767 : vector<8x128xf32>
    %c111 = arith.constant 111 : index
    %769 = memref.load %arg1[%c111] : memref<312xf32, #tpu.memory_space<smem>>
    %c2_200 = arith.constant 2 : index
    %c1_201 = arith.constant 1 : index
    %c0_202 = arith.constant 0 : index
    %770 = vector.load %arg5[%c2_200, %c1_201, %c0_202] : memref<8x10x128xf32, #tpu.memory_space<vmem>>, vector<1x8x128xf32>
    %771 = vector.shape_cast %770 : vector<1x8x128xf32> to vector<8x128xf32>
    %772 = vector.broadcast %769 : f32 to vector<8x128xf32>
    %773 = arith.mulf %771, %772 : vector<8x128xf32>
    %774 = arith.addf %768, %773 : vector<8x128xf32>
    %c112 = arith.constant 112 : index
    %775 = memref.load %arg1[%c112] : memref<312xf32, #tpu.memory_space<smem>>
    %c2_203 = arith.constant 2 : index
    %c2_204 = arith.constant 2 : index
    %c0_205 = arith.constant 0 : index
    %776 = vector.load %arg5[%c2_203, %c2_204, %c0_205] : memref<8x10x128xf32, #tpu.memory_space<vmem>>, vector<1x8x128xf32>
    %777 = vector.shape_cast %776 : vector<1x8x128xf32> to vector<8x128xf32>
    %778 = vector.broadcast %775 : f32 to vector<8x128xf32>
    %779 = arith.mulf %777, %778 : vector<8x128xf32>
    %780 = arith.addf %774, %779 : vector<8x128xf32>
    %c113 = arith.constant 113 : index
    %781 = memref.load %arg1[%c113] : memref<312xf32, #tpu.memory_space<smem>>
    %c3_206 = arith.constant 3 : index
    %c0_207 = arith.constant 0 : index
    %c0_208 = arith.constant 0 : index
    %782 = vector.load %arg5[%c3_206, %c0_207, %c0_208] : memref<8x10x128xf32, #tpu.memory_space<vmem>>, vector<1x8x128xf32>
    %783 = vector.shape_cast %782 : vector<1x8x128xf32> to vector<8x128xf32>
    %784 = vector.broadcast %781 : f32 to vector<8x128xf32>
    %785 = arith.mulf %783, %784 : vector<8x128xf32>
    %786 = arith.addf %780, %785 : vector<8x128xf32>
    %c114 = arith.constant 114 : index
    %787 = memref.load %arg1[%c114] : memref<312xf32, #tpu.memory_space<smem>>
    %c3_209 = arith.constant 3 : index
    %c1_210 = arith.constant 1 : index
    %c0_211 = arith.constant 0 : index
    %788 = vector.load %arg5[%c3_209, %c1_210, %c0_211] : memref<8x10x128xf32, #tpu.memory_space<vmem>>, vector<1x8x128xf32>
    %789 = vector.shape_cast %788 : vector<1x8x128xf32> to vector<8x128xf32>
    %790 = vector.broadcast %787 : f32 to vector<8x128xf32>
    %791 = arith.mulf %789, %790 : vector<8x128xf32>
    %792 = arith.addf %786, %791 : vector<8x128xf32>
    %c115 = arith.constant 115 : index
    %793 = memref.load %arg1[%c115] : memref<312xf32, #tpu.memory_space<smem>>
    %c3_212 = arith.constant 3 : index
    %c2_213 = arith.constant 2 : index
    %c0_214 = arith.constant 0 : index
    %794 = vector.load %arg5[%c3_212, %c2_213, %c0_214] : memref<8x10x128xf32, #tpu.memory_space<vmem>>, vector<1x8x128xf32>
    %795 = vector.shape_cast %794 : vector<1x8x128xf32> to vector<8x128xf32>
    %796 = vector.broadcast %793 : f32 to vector<8x128xf32>
    %797 = arith.mulf %795, %796 : vector<8x128xf32>
    %798 = arith.addf %792, %797 : vector<8x128xf32>
    %c116 = arith.constant 116 : index
    %799 = memref.load %arg1[%c116] : memref<312xf32, #tpu.memory_space<smem>>
    %c4_215 = arith.constant 4 : index
    %c0_216 = arith.constant 0 : index
    %c0_217 = arith.constant 0 : index
    %800 = vector.load %arg5[%c4_215, %c0_216, %c0_217] : memref<8x10x128xf32, #tpu.memory_space<vmem>>, vector<1x8x128xf32>
    %801 = vector.shape_cast %800 : vector<1x8x128xf32> to vector<8x128xf32>
    %802 = vector.broadcast %799 : f32 to vector<8x128xf32>
    %803 = arith.mulf %801, %802 : vector<8x128xf32>
    %804 = arith.addf %798, %803 : vector<8x128xf32>
    %c117 = arith.constant 117 : index
    %805 = memref.load %arg1[%c117] : memref<312xf32, #tpu.memory_space<smem>>
    %c4_218 = arith.constant 4 : index
    %c1_219 = arith.constant 1 : index
    %c0_220 = arith.constant 0 : index
    %806 = vector.load %arg5[%c4_218, %c1_219, %c0_220] : memref<8x10x128xf32, #tpu.memory_space<vmem>>, vector<1x8x128xf32>
    %807 = vector.shape_cast %806 : vector<1x8x128xf32> to vector<8x128xf32>
    %808 = vector.broadcast %805 : f32 to vector<8x128xf32>
    %809 = arith.mulf %807, %808 : vector<8x128xf32>
    %810 = arith.addf %804, %809 : vector<8x128xf32>
    %c118 = arith.constant 118 : index
    %811 = memref.load %arg1[%c118] : memref<312xf32, #tpu.memory_space<smem>>
    %c4_221 = arith.constant 4 : index
    %c2_222 = arith.constant 2 : index
    %c0_223 = arith.constant 0 : index
    %812 = vector.load %arg5[%c4_221, %c2_222, %c0_223] : memref<8x10x128xf32, #tpu.memory_space<vmem>>, vector<1x8x128xf32>
    %813 = vector.shape_cast %812 : vector<1x8x128xf32> to vector<8x128xf32>
    %814 = vector.broadcast %811 : f32 to vector<8x128xf32>
    %815 = arith.mulf %813, %814 : vector<8x128xf32>
    %816 = arith.addf %810, %815 : vector<8x128xf32>
    %c119 = arith.constant 119 : index
    %817 = memref.load %arg1[%c119] : memref<312xf32, #tpu.memory_space<smem>>
    %c5_224 = arith.constant 5 : index
    %c0_225 = arith.constant 0 : index
    %c0_226 = arith.constant 0 : index
    %818 = vector.load %arg5[%c5_224, %c0_225, %c0_226] : memref<8x10x128xf32, #tpu.memory_space<vmem>>, vector<1x8x128xf32>
    %819 = vector.shape_cast %818 : vector<1x8x128xf32> to vector<8x128xf32>
    %820 = vector.broadcast %817 : f32 to vector<8x128xf32>
    %821 = arith.mulf %819, %820 : vector<8x128xf32>
    %822 = arith.addf %816, %821 : vector<8x128xf32>
    %c120 = arith.constant 120 : index
    %823 = memref.load %arg1[%c120] : memref<312xf32, #tpu.memory_space<smem>>
    %c5_227 = arith.constant 5 : index
    %c1_228 = arith.constant 1 : index
    %c0_229 = arith.constant 0 : index
    %824 = vector.load %arg5[%c5_227, %c1_228, %c0_229] : memref<8x10x128xf32, #tpu.memory_space<vmem>>, vector<1x8x128xf32>
    %825 = vector.shape_cast %824 : vector<1x8x128xf32> to vector<8x128xf32>
    %826 = vector.broadcast %823 : f32 to vector<8x128xf32>
    %827 = arith.mulf %825, %826 : vector<8x128xf32>
    %828 = arith.addf %822, %827 : vector<8x128xf32>
    %c121 = arith.constant 121 : index
    %829 = memref.load %arg1[%c121] : memref<312xf32, #tpu.memory_space<smem>>
    %c5_230 = arith.constant 5 : index
    %c2_231 = arith.constant 2 : index
    %c0_232 = arith.constant 0 : index
    %830 = vector.load %arg5[%c5_230, %c2_231, %c0_232] : memref<8x10x128xf32, #tpu.memory_space<vmem>>, vector<1x8x128xf32>
    %831 = vector.shape_cast %830 : vector<1x8x128xf32> to vector<8x128xf32>
    %832 = vector.broadcast %829 : f32 to vector<8x128xf32>
    %833 = arith.mulf %831, %832 : vector<8x128xf32>
    %834 = arith.addf %828, %833 : vector<8x128xf32>
    %c122 = arith.constant 122 : index
    %835 = memref.load %arg1[%c122] : memref<312xf32, #tpu.memory_space<smem>>
    %c6_233 = arith.constant 6 : index
    %c0_234 = arith.constant 0 : index
    %c0_235 = arith.constant 0 : index
    %836 = vector.load %arg5[%c6_233, %c0_234, %c0_235] : memref<8x10x128xf32, #tpu.memory_space<vmem>>, vector<1x8x128xf32>
    %837 = vector.shape_cast %836 : vector<1x8x128xf32> to vector<8x128xf32>
    %838 = vector.broadcast %835 : f32 to vector<8x128xf32>
    %839 = arith.mulf %837, %838 : vector<8x128xf32>
    %840 = arith.addf %834, %839 : vector<8x128xf32>
    %c123 = arith.constant 123 : index
    %841 = memref.load %arg1[%c123] : memref<312xf32, #tpu.memory_space<smem>>
    %c6_236 = arith.constant 6 : index
    %c1_237 = arith.constant 1 : index
    %c0_238 = arith.constant 0 : index
    %842 = vector.load %arg5[%c6_236, %c1_237, %c0_238] : memref<8x10x128xf32, #tpu.memory_space<vmem>>, vector<1x8x128xf32>
    %843 = vector.shape_cast %842 : vector<1x8x128xf32> to vector<8x128xf32>
    %844 = vector.broadcast %841 : f32 to vector<8x128xf32>
    %845 = arith.mulf %843, %844 : vector<8x128xf32>
    %846 = arith.addf %840, %845 : vector<8x128xf32>
    %c124 = arith.constant 124 : index
    %847 = memref.load %arg1[%c124] : memref<312xf32, #tpu.memory_space<smem>>
    %c6_239 = arith.constant 6 : index
    %c2_240 = arith.constant 2 : index
    %c0_241 = arith.constant 0 : index
    %848 = vector.load %arg5[%c6_239, %c2_240, %c0_241] : memref<8x10x128xf32, #tpu.memory_space<vmem>>, vector<1x8x128xf32>
    %849 = vector.shape_cast %848 : vector<1x8x128xf32> to vector<8x128xf32>
    %850 = vector.broadcast %847 : f32 to vector<8x128xf32>
    %851 = arith.mulf %849, %850 : vector<8x128xf32>
    %852 = arith.addf %846, %851 : vector<8x128xf32>
    %c125 = arith.constant 125 : index
    %853 = memref.load %arg1[%c125] : memref<312xf32, #tpu.memory_space<smem>>
    %c7_242 = arith.constant 7 : index
    %c0_243 = arith.constant 0 : index
    %c0_244 = arith.constant 0 : index
    %854 = vector.load %arg5[%c7_242, %c0_243, %c0_244] : memref<8x10x128xf32, #tpu.memory_space<vmem>>, vector<1x8x128xf32>
    %855 = vector.shape_cast %854 : vector<1x8x128xf32> to vector<8x128xf32>
    %856 = vector.broadcast %853 : f32 to vector<8x128xf32>
    %857 = arith.mulf %855, %856 : vector<8x128xf32>
    %858 = arith.addf %852, %857 : vector<8x128xf32>
    %c126 = arith.constant 126 : index
    %859 = memref.load %arg1[%c126] : memref<312xf32, #tpu.memory_space<smem>>
    %c7_245 = arith.constant 7 : index
    %c1_246 = arith.constant 1 : index
    %c0_247 = arith.constant 0 : index
    %860 = vector.load %arg5[%c7_245, %c1_246, %c0_247] : memref<8x10x128xf32, #tpu.memory_space<vmem>>, vector<1x8x128xf32>
    %861 = vector.shape_cast %860 : vector<1x8x128xf32> to vector<8x128xf32>
    %862 = vector.broadcast %859 : f32 to vector<8x128xf32>
    %863 = arith.mulf %861, %862 : vector<8x128xf32>
    %864 = arith.addf %858, %863 : vector<8x128xf32>
    %c127 = arith.constant 127 : index
    %865 = memref.load %arg1[%c127] : memref<312xf32, #tpu.memory_space<smem>>
    %c7_248 = arith.constant 7 : index
    %c2_249 = arith.constant 2 : index
    %c0_250 = arith.constant 0 : index
    %866 = vector.load %arg5[%c7_248, %c2_249, %c0_250] : memref<8x10x128xf32, #tpu.memory_space<vmem>>, vector<1x8x128xf32>
    %867 = vector.shape_cast %866 : vector<1x8x128xf32> to vector<8x128xf32>
    %868 = vector.broadcast %865 : f32 to vector<8x128xf32>
    %869 = arith.mulf %867, %868 : vector<8x128xf32>
    %870 = arith.addf %864, %869 : vector<8x128xf32>
    %c296 = arith.constant 296 : index
    %871 = memref.load %arg1[%c296] : memref<312xf32, #tpu.memory_space<smem>>
    %872 = vector.broadcast %871 : f32 to vector<8x128xf32>
    %873 = arith.addf %870, %872 : vector<8x128xf32>
    %c0_251 = arith.constant 0 : index
    %c0_252 = arith.constant 0 : index
    %c0_253 = arith.constant 0 : index
    %874 = vector.load %arg4[%c0_251, %c0_252, %c0_253] : memref<8x8x128xf32, #tpu.memory_space<vmem>>, vector<1x8x128xf32>
    %875 = vector.shape_cast %874 : vector<1x8x128xf32> to vector<8x128xf32>
    %876 = vector.shape_cast %873 : vector<8x128xf32> to vector<1x8x128xf32>
    tpu.vector_store %arg4[%c0_251, %c0_252, %c0_253], %876 {strides = array<i32>} : memref<8x8x128xf32, #tpu.memory_space<vmem>>, vector<1x8x128xf32>,
    %c128 = arith.constant 128 : index
    %877 = memref.load %arg1[%c128] : memref<312xf32, #tpu.memory_space<smem>>
    %c0_254 = arith.constant 0 : index
    %c0_255 = arith.constant 0 : index
    %c0_256 = arith.constant 0 : index
    %878 = vector.load %arg5[%c0_254, %c0_255, %c0_256] : memref<8x10x128xf32, #tpu.memory_space<vmem>>, vector<1x8x128xf32>
    %879 = vector.shape_cast %878 : vector<1x8x128xf32> to vector<8x128xf32>
    %880 = vector.broadcast %877 : f32 to vector<8x128xf32>
    %881 = arith.mulf %879, %880 : vector<8x128xf32>
    %c129 = arith.constant 129 : index
    %882 = memref.load %arg1[%c129] : memref<312xf32, #tpu.memory_space<smem>>
    %c0_257 = arith.constant 0 : index
    %c1_258 = arith.constant 1 : index
    %c0_259 = arith.constant 0 : index
    %883 = vector.load %arg5[%c0_257, %c1_258, %c0_259] : memref<8x10x128xf32, #tpu.memory_space<vmem>>, vector<1x8x128xf32>
    %884 = vector.shape_cast %883 : vector<1x8x128xf32> to vector<8x128xf32>
    %885 = vector.broadcast %882 : f32 to vector<8x128xf32>
    %886 = arith.mulf %884, %885 : vector<8x128xf32>
    %887 = arith.addf %881, %886 : vector<8x128xf32>
    %c130 = arith.constant 130 : index
    %888 = memref.load %arg1[%c130] : memref<312xf32, #tpu.memory_space<smem>>
    %c0_260 = arith.constant 0 : index
    %c2_261 = arith.constant 2 : index
    %c0_262 = arith.constant 0 : index
    %889 = vector.load %arg5[%c0_260, %c2_261, %c0_262] : memref<8x10x128xf32, #tpu.memory_space<vmem>>, vector<1x8x128xf32>
    %890 = vector.shape_cast %889 : vector<1x8x128xf32> to vector<8x128xf32>
    %891 = vector.broadcast %888 : f32 to vector<8x128xf32>
    %892 = arith.mulf %890, %891 : vector<8x128xf32>
    %893 = arith.addf %887, %892 : vector<8x128xf32>
    %c131 = arith.constant 131 : index
    %894 = memref.load %arg1[%c131] : memref<312xf32, #tpu.memory_space<smem>>
    %c1_263 = arith.constant 1 : index
    %c0_264 = arith.constant 0 : index
    %c0_265 = arith.constant 0 : index
    %895 = vector.load %arg5[%c1_263, %c0_264, %c0_265] : memref<8x10x128xf32, #tpu.memory_space<vmem>>, vector<1x8x128xf32>
    %896 = vector.shape_cast %895 : vector<1x8x128xf32> to vector<8x128xf32>
    %897 = vector.broadcast %894 : f32 to vector<8x128xf32>
    %898 = arith.mulf %896, %897 : vector<8x128xf32>
    %899 = arith.addf %893, %898 : vector<8x128xf32>
    %c132 = arith.constant 132 : index
    %900 = memref.load %arg1[%c132] : memref<312xf32, #tpu.memory_space<smem>>
    %c1_266 = arith.constant 1 : index
    %c1_267 = arith.constant 1 : index
    %c0_268 = arith.constant 0 : index
    %901 = vector.load %arg5[%c1_266, %c1_267, %c0_268] : memref<8x10x128xf32, #tpu.memory_space<vmem>>, vector<1x8x128xf32>
    %902 = vector.shape_cast %901 : vector<1x8x128xf32> to vector<8x128xf32>
    %903 = vector.broadcast %900 : f32 to vector<8x128xf32>
    %904 = arith.mulf %902, %903 : vector<8x128xf32>
    %905 = arith.addf %899, %904 : vector<8x128xf32>
    %c133 = arith.constant 133 : index
    %906 = memref.load %arg1[%c133] : memref<312xf32, #tpu.memory_space<smem>>
    %c1_269 = arith.constant 1 : index
    %c2_270 = arith.constant 2 : index
    %c0_271 = arith.constant 0 : index
    %907 = vector.load %arg5[%c1_269, %c2_270, %c0_271] : memref<8x10x128xf32, #tpu.memory_space<vmem>>, vector<1x8x128xf32>
    %908 = vector.shape_cast %907 : vector<1x8x128xf32> to vector<8x128xf32>
    %909 = vector.broadcast %906 : f32 to vector<8x128xf32>
    %910 = arith.mulf %908, %909 : vector<8x128xf32>
    %911 = arith.addf %905, %910 : vector<8x128xf32>
    %c134 = arith.constant 134 : index
    %912 = memref.load %arg1[%c134] : memref<312xf32, #tpu.memory_space<smem>>
    %c2_272 = arith.constant 2 : index
    %c0_273 = arith.constant 0 : index
    %c0_274 = arith.constant 0 : index
    %913 = vector.load %arg5[%c2_272, %c0_273, %c0_274] : memref<8x10x128xf32, #tpu.memory_space<vmem>>, vector<1x8x128xf32>
    %914 = vector.shape_cast %913 : vector<1x8x128xf32> to vector<8x128xf32>
    %915 = vector.broadcast %912 : f32 to vector<8x128xf32>
    %916 = arith.mulf %914, %915 : vector<8x128xf32>
    %917 = arith.addf %911, %916 : vector<8x128xf32>
    %c135 = arith.constant 135 : index
    %918 = memref.load %arg1[%c135] : memref<312xf32, #tpu.memory_space<smem>>
    %c2_275 = arith.constant 2 : index
    %c1_276 = arith.constant 1 : index
    %c0_277 = arith.constant 0 : index
    %919 = vector.load %arg5[%c2_275, %c1_276, %c0_277] : memref<8x10x128xf32, #tpu.memory_space<vmem>>, vector<1x8x128xf32>
    %920 = vector.shape_cast %919 : vector<1x8x128xf32> to vector<8x128xf32>
    %921 = vector.broadcast %918 : f32 to vector<8x128xf32>
    %922 = arith.mulf %920, %921 : vector<8x128xf32>
    %923 = arith.addf %917, %922 : vector<8x128xf32>
    %c136 = arith.constant 136 : index
    %924 = memref.load %arg1[%c136] : memref<312xf32, #tpu.memory_space<smem>>
    %c2_278 = arith.constant 2 : index
    %c2_279 = arith.constant 2 : index
    %c0_280 = arith.constant 0 : index
    %925 = vector.load %arg5[%c2_278, %c2_279, %c0_280] : memref<8x10x128xf32, #tpu.memory_space<vmem>>, vector<1x8x128xf32>
    %926 = vector.shape_cast %925 : vector<1x8x128xf32> to vector<8x128xf32>
    %927 = vector.broadcast %924 : f32 to vector<8x128xf32>
    %928 = arith.mulf %926, %927 : vector<8x128xf32>
    %929 = arith.addf %923, %928 : vector<8x128xf32>
    %c137 = arith.constant 137 : index
    %930 = memref.load %arg1[%c137] : memref<312xf32, #tpu.memory_space<smem>>
    %c3_281 = arith.constant 3 : index
    %c0_282 = arith.constant 0 : index
    %c0_283 = arith.constant 0 : index
    %931 = vector.load %arg5[%c3_281, %c0_282, %c0_283] : memref<8x10x128xf32, #tpu.memory_space<vmem>>, vector<1x8x128xf32>
    %932 = vector.shape_cast %931 : vector<1x8x128xf32> to vector<8x128xf32>
    %933 = vector.broadcast %930 : f32 to vector<8x128xf32>
    %934 = arith.mulf %932, %933 : vector<8x128xf32>
    %935 = arith.addf %929, %934 : vector<8x128xf32>
    %c138 = arith.constant 138 : index
    %936 = memref.load %arg1[%c138] : memref<312xf32, #tpu.memory_space<smem>>
    %c3_284 = arith.constant 3 : index
    %c1_285 = arith.constant 1 : index
    %c0_286 = arith.constant 0 : index
    %937 = vector.load %arg5[%c3_284, %c1_285, %c0_286] : memref<8x10x128xf32, #tpu.memory_space<vmem>>, vector<1x8x128xf32>
    %938 = vector.shape_cast %937 : vector<1x8x128xf32> to vector<8x128xf32>
    %939 = vector.broadcast %936 : f32 to vector<8x128xf32>
    %940 = arith.mulf %938, %939 : vector<8x128xf32>
    %941 = arith.addf %935, %940 : vector<8x128xf32>
    %c139 = arith.constant 139 : index
    %942 = memref.load %arg1[%c139] : memref<312xf32, #tpu.memory_space<smem>>
    %c3_287 = arith.constant 3 : index
    %c2_288 = arith.constant 2 : index
    %c0_289 = arith.constant 0 : index
    %943 = vector.load %arg5[%c3_287, %c2_288, %c0_289] : memref<8x10x128xf32, #tpu.memory_space<vmem>>, vector<1x8x128xf32>
    %944 = vector.shape_cast %943 : vector<1x8x128xf32> to vector<8x128xf32>
    %945 = vector.broadcast %942 : f32 to vector<8x128xf32>
    %946 = arith.mulf %944, %945 : vector<8x128xf32>
    %947 = arith.addf %941, %946 : vector<8x128xf32>
    %c140 = arith.constant 140 : index
    %948 = memref.load %arg1[%c140] : memref<312xf32, #tpu.memory_space<smem>>
    %c4_290 = arith.constant 4 : index
    %c0_291 = arith.constant 0 : index
    %c0_292 = arith.constant 0 : index
    %949 = vector.load %arg5[%c4_290, %c0_291, %c0_292] : memref<8x10x128xf32, #tpu.memory_space<vmem>>, vector<1x8x128xf32>
    %950 = vector.shape_cast %949 : vector<1x8x128xf32> to vector<8x128xf32>
    %951 = vector.broadcast %948 : f32 to vector<8x128xf32>
    %952 = arith.mulf %950, %951 : vector<8x128xf32>
    %953 = arith.addf %947, %952 : vector<8x128xf32>
    %c141 = arith.constant 141 : index
    %954 = memref.load %arg1[%c141] : memref<312xf32, #tpu.memory_space<smem>>
    %c4_293 = arith.constant 4 : index
    %c1_294 = arith.constant 1 : index
    %c0_295 = arith.constant 0 : index
    %955 = vector.load %arg5[%c4_293, %c1_294, %c0_295] : memref<8x10x128xf32, #tpu.memory_space<vmem>>, vector<1x8x128xf32>
    %956 = vector.shape_cast %955 : vector<1x8x128xf32> to vector<8x128xf32>
    %957 = vector.broadcast %954 : f32 to vector<8x128xf32>
    %958 = arith.mulf %956, %957 : vector<8x128xf32>
    %959 = arith.addf %953, %958 : vector<8x128xf32>
    %c142 = arith.constant 142 : index
    %960 = memref.load %arg1[%c142] : memref<312xf32, #tpu.memory_space<smem>>
    %c4_296 = arith.constant 4 : index
    %c2_297 = arith.constant 2 : index
    %c0_298 = arith.constant 0 : index
    %961 = vector.load %arg5[%c4_296, %c2_297, %c0_298] : memref<8x10x128xf32, #tpu.memory_space<vmem>>, vector<1x8x128xf32>
    %962 = vector.shape_cast %961 : vector<1x8x128xf32> to vector<8x128xf32>
    %963 = vector.broadcast %960 : f32 to vector<8x128xf32>
    %964 = arith.mulf %962, %963 : vector<8x128xf32>
    %965 = arith.addf %959, %964 : vector<8x128xf32>
    %c143 = arith.constant 143 : index
    %966 = memref.load %arg1[%c143] : memref<312xf32, #tpu.memory_space<smem>>
    %c5_299 = arith.constant 5 : index
    %c0_300 = arith.constant 0 : index
    %c0_301 = arith.constant 0 : index
    %967 = vector.load %arg5[%c5_299, %c0_300, %c0_301] : memref<8x10x128xf32, #tpu.memory_space<vmem>>, vector<1x8x128xf32>
    %968 = vector.shape_cast %967 : vector<1x8x128xf32> to vector<8x128xf32>
    %969 = vector.broadcast %966 : f32 to vector<8x128xf32>
    %970 = arith.mulf %968, %969 : vector<8x128xf32>
    %971 = arith.addf %965, %970 : vector<8x128xf32>
    %c144 = arith.constant 144 : index
    %972 = memref.load %arg1[%c144] : memref<312xf32, #tpu.memory_space<smem>>
    %c5_302 = arith.constant 5 : index
    %c1_303 = arith.constant 1 : index
    %c0_304 = arith.constant 0 : index
    %973 = vector.load %arg5[%c5_302, %c1_303, %c0_304] : memref<8x10x128xf32, #tpu.memory_space<vmem>>, vector<1x8x128xf32>
    %974 = vector.shape_cast %973 : vector<1x8x128xf32> to vector<8x128xf32>
    %975 = vector.broadcast %972 : f32 to vector<8x128xf32>
    %976 = arith.mulf %974, %975 : vector<8x128xf32>
    %977 = arith.addf %971, %976 : vector<8x128xf32>
    %c145 = arith.constant 145 : index
    %978 = memref.load %arg1[%c145] : memref<312xf32, #tpu.memory_space<smem>>
    %c5_305 = arith.constant 5 : index
    %c2_306 = arith.constant 2 : index
    %c0_307 = arith.constant 0 : index
    %979 = vector.load %arg5[%c5_305, %c2_306, %c0_307] : memref<8x10x128xf32, #tpu.memory_space<vmem>>, vector<1x8x128xf32>
    %980 = vector.shape_cast %979 : vector<1x8x128xf32> to vector<8x128xf32>
    %981 = vector.broadcast %978 : f32 to vector<8x128xf32>
    %982 = arith.mulf %980, %981 : vector<8x128xf32>
    %983 = arith.addf %977, %982 : vector<8x128xf32>
    %c146 = arith.constant 146 : index
    %984 = memref.load %arg1[%c146] : memref<312xf32, #tpu.memory_space<smem>>
    %c6_308 = arith.constant 6 : index
    %c0_309 = arith.constant 0 : index
    %c0_310 = arith.constant 0 : index
    %985 = vector.load %arg5[%c6_308, %c0_309, %c0_310] : memref<8x10x128xf32, #tpu.memory_space<vmem>>, vector<1x8x128xf32>
    %986 = vector.shape_cast %985 : vector<1x8x128xf32> to vector<8x128xf32>
    %987 = vector.broadcast %984 : f32 to vector<8x128xf32>
    %988 = arith.mulf %986, %987 : vector<8x128xf32>
    %989 = arith.addf %983, %988 : vector<8x128xf32>
    %c147 = arith.constant 147 : index
    %990 = memref.load %arg1[%c147] : memref<312xf32, #tpu.memory_space<smem>>
    %c6_311 = arith.constant 6 : index
    %c1_312 = arith.constant 1 : index
    %c0_313 = arith.constant 0 : index
    %991 = vector.load %arg5[%c6_311, %c1_312, %c0_313] : memref<8x10x128xf32, #tpu.memory_space<vmem>>, vector<1x8x128xf32>
    %992 = vector.shape_cast %991 : vector<1x8x128xf32> to vector<8x128xf32>
    %993 = vector.broadcast %990 : f32 to vector<8x128xf32>
    %994 = arith.mulf %992, %993 : vector<8x128xf32>
    %995 = arith.addf %989, %994 : vector<8x128xf32>
    %c148 = arith.constant 148 : index
    %996 = memref.load %arg1[%c148] : memref<312xf32, #tpu.memory_space<smem>>
    %c6_314 = arith.constant 6 : index
    %c2_315 = arith.constant 2 : index
    %c0_316 = arith.constant 0 : index
    %997 = vector.load %arg5[%c6_314, %c2_315, %c0_316] : memref<8x10x128xf32, #tpu.memory_space<vmem>>, vector<1x8x128xf32>
    %998 = vector.shape_cast %997 : vector<1x8x128xf32> to vector<8x128xf32>
    %999 = vector.broadcast %996 : f32 to vector<8x128xf32>
    %1000 = arith.mulf %998, %999 : vector<8x128xf32>
    %1001 = arith.addf %995, %1000 : vector<8x128xf32>
    %c149 = arith.constant 149 : index
    %1002 = memref.load %arg1[%c149] : memref<312xf32, #tpu.memory_space<smem>>
    %c7_317 = arith.constant 7 : index
    %c0_318 = arith.constant 0 : index
    %c0_319 = arith.constant 0 : index
    %1003 = vector.load %arg5[%c7_317, %c0_318, %c0_319] : memref<8x10x128xf32, #tpu.memory_space<vmem>>, vector<1x8x128xf32>
    %1004 = vector.shape_cast %1003 : vector<1x8x128xf32> to vector<8x128xf32>
    %1005 = vector.broadcast %1002 : f32 to vector<8x128xf32>
    %1006 = arith.mulf %1004, %1005 : vector<8x128xf32>
    %1007 = arith.addf %1001, %1006 : vector<8x128xf32>
    %c150 = arith.constant 150 : index
    %1008 = memref.load %arg1[%c150] : memref<312xf32, #tpu.memory_space<smem>>
    %c7_320 = arith.constant 7 : index
    %c1_321 = arith.constant 1 : index
    %c0_322 = arith.constant 0 : index
    %1009 = vector.load %arg5[%c7_320, %c1_321, %c0_322] : memref<8x10x128xf32, #tpu.memory_space<vmem>>, vector<1x8x128xf32>
    %1010 = vector.shape_cast %1009 : vector<1x8x128xf32> to vector<8x128xf32>
    %1011 = vector.broadcast %1008 : f32 to vector<8x128xf32>
    %1012 = arith.mulf %1010, %1011 : vector<8x128xf32>
    %1013 = arith.addf %1007, %1012 : vector<8x128xf32>
    %c151 = arith.constant 151 : index
    %1014 = memref.load %arg1[%c151] : memref<312xf32, #tpu.memory_space<smem>>
    %c7_323 = arith.constant 7 : index
    %c2_324 = arith.constant 2 : index
    %c0_325 = arith.constant 0 : index
    %1015 = vector.load %arg5[%c7_323, %c2_324, %c0_325] : memref<8x10x128xf32, #tpu.memory_space<vmem>>, vector<1x8x128xf32>
    %1016 = vector.shape_cast %1015 : vector<1x8x128xf32> to vector<8x128xf32>
    %1017 = vector.broadcast %1014 : f32 to vector<8x128xf32>
    %1018 = arith.mulf %1016, %1017 : vector<8x128xf32>
    %1019 = arith.addf %1013, %1018 : vector<8x128xf32>
    %c297 = arith.constant 297 : index
    %1020 = memref.load %arg1[%c297] : memref<312xf32, #tpu.memory_space<smem>>
    %1021 = vector.broadcast %1020 : f32 to vector<8x128xf32>
    %1022 = arith.addf %1019, %1021 : vector<8x128xf32>
    %c1_326 = arith.constant 1 : index
    %c0_327 = arith.constant 0 : index
    %c0_328 = arith.constant 0 : index
    %1023 = vector.load %arg4[%c1_326, %c0_327, %c0_328] : memref<8x8x128xf32, #tpu.memory_space<vmem>>, vector<1x8x128xf32>
    %1024 = vector.shape_cast %1023 : vector<1x8x128xf32> to vector<8x128xf32>
    %1025 = vector.shape_cast %1022 : vector<8x128xf32> to vector<1x8x128xf32>
    tpu.vector_store %arg4[%c1_326, %c0_327, %c0_328], %1025 {strides = array<i32>} : memref<8x8x128xf32, #tpu.memory_space<vmem>>, vector<1x8x128xf32>,
    %c152 = arith.constant 152 : index
    %1026 = memref.load %arg1[%c152] : memref<312xf32, #tpu.memory_space<smem>>
    %c0_329 = arith.constant 0 : index
    %c0_330 = arith.constant 0 : index
    %c0_331 = arith.constant 0 : index
    %1027 = vector.load %arg5[%c0_329, %c0_330, %c0_331] : memref<8x10x128xf32, #tpu.memory_space<vmem>>, vector<1x8x128xf32>
    %1028 = vector.shape_cast %1027 : vector<1x8x128xf32> to vector<8x128xf32>
    %1029 = vector.broadcast %1026 : f32 to vector<8x128xf32>
    %1030 = arith.mulf %1028, %1029 : vector<8x128xf32>
    %c153 = arith.constant 153 : index
    %1031 = memref.load %arg1[%c153] : memref<312xf32, #tpu.memory_space<smem>>
    %c0_332 = arith.constant 0 : index
    %c1_333 = arith.constant 1 : index
    %c0_334 = arith.constant 0 : index
    %1032 = vector.load %arg5[%c0_332, %c1_333, %c0_334] : memref<8x10x128xf32, #tpu.memory_space<vmem>>, vector<1x8x128xf32>
    %1033 = vector.shape_cast %1032 : vector<1x8x128xf32> to vector<8x128xf32>
    %1034 = vector.broadcast %1031 : f32 to vector<8x128xf32>
    %1035 = arith.mulf %1033, %1034 : vector<8x128xf32>
    %1036 = arith.addf %1030, %1035 : vector<8x128xf32>
    %c154 = arith.constant 154 : index
    %1037 = memref.load %arg1[%c154] : memref<312xf32, #tpu.memory_space<smem>>
    %c0_335 = arith.constant 0 : index
    %c2_336 = arith.constant 2 : index
    %c0_337 = arith.constant 0 : index
    %1038 = vector.load %arg5[%c0_335, %c2_336, %c0_337] : memref<8x10x128xf32, #tpu.memory_space<vmem>>, vector<1x8x128xf32>
    %1039 = vector.shape_cast %1038 : vector<1x8x128xf32> to vector<8x128xf32>
    %1040 = vector.broadcast %1037 : f32 to vector<8x128xf32>
    %1041 = arith.mulf %1039, %1040 : vector<8x128xf32>
    %1042 = arith.addf %1036, %1041 : vector<8x128xf32>
    %c155 = arith.constant 155 : index
    %1043 = memref.load %arg1[%c155] : memref<312xf32, #tpu.memory_space<smem>>
    %c1_338 = arith.constant 1 : index
    %c0_339 = arith.constant 0 : index
    %c0_340 = arith.constant 0 : index
    %1044 = vector.load %arg5[%c1_338, %c0_339, %c0_340] : memref<8x10x128xf32, #tpu.memory_space<vmem>>, vector<1x8x128xf32>
    %1045 = vector.shape_cast %1044 : vector<1x8x128xf32> to vector<8x128xf32>
    %1046 = vector.broadcast %1043 : f32 to vector<8x128xf32>
    %1047 = arith.mulf %1045, %1046 : vector<8x128xf32>
    %1048 = arith.addf %1042, %1047 : vector<8x128xf32>
    %c156 = arith.constant 156 : index
    %1049 = memref.load %arg1[%c156] : memref<312xf32, #tpu.memory_space<smem>>
    %c1_341 = arith.constant 1 : index
    %c1_342 = arith.constant 1 : index
    %c0_343 = arith.constant 0 : index
    %1050 = vector.load %arg5[%c1_341, %c1_342, %c0_343] : memref<8x10x128xf32, #tpu.memory_space<vmem>>, vector<1x8x128xf32>
    %1051 = vector.shape_cast %1050 : vector<1x8x128xf32> to vector<8x128xf32>
    %1052 = vector.broadcast %1049 : f32 to vector<8x128xf32>
    %1053 = arith.mulf %1051, %1052 : vector<8x128xf32>
    %1054 = arith.addf %1048, %1053 : vector<8x128xf32>
    %c157 = arith.constant 157 : index
    %1055 = memref.load %arg1[%c157] : memref<312xf32, #tpu.memory_space<smem>>
    %c1_344 = arith.constant 1 : index
    %c2_345 = arith.constant 2 : index
    %c0_346 = arith.constant 0 : index
    %1056 = vector.load %arg5[%c1_344, %c2_345, %c0_346] : memref<8x10x128xf32, #tpu.memory_space<vmem>>, vector<1x8x128xf32>
    %1057 = vector.shape_cast %1056 : vector<1x8x128xf32> to vector<8x128xf32>
    %1058 = vector.broadcast %1055 : f32 to vector<8x128xf32>
    %1059 = arith.mulf %1057, %1058 : vector<8x128xf32>
    %1060 = arith.addf %1054, %1059 : vector<8x128xf32>
    %c158 = arith.constant 158 : index
    %1061 = memref.load %arg1[%c158] : memref<312xf32, #tpu.memory_space<smem>>
    %c2_347 = arith.constant 2 : index
    %c0_348 = arith.constant 0 : index
    %c0_349 = arith.constant 0 : index
    %1062 = vector.load %arg5[%c2_347, %c0_348, %c0_349] : memref<8x10x128xf32, #tpu.memory_space<vmem>>, vector<1x8x128xf32>
    %1063 = vector.shape_cast %1062 : vector<1x8x128xf32> to vector<8x128xf32>
    %1064 = vector.broadcast %1061 : f32 to vector<8x128xf32>
    %1065 = arith.mulf %1063, %1064 : vector<8x128xf32>
    %1066 = arith.addf %1060, %1065 : vector<8x128xf32>
    %c159 = arith.constant 159 : index
    %1067 = memref.load %arg1[%c159] : memref<312xf32, #tpu.memory_space<smem>>
    %c2_350 = arith.constant 2 : index
    %c1_351 = arith.constant 1 : index
    %c0_352 = arith.constant 0 : index
    %1068 = vector.load %arg5[%c2_350, %c1_351, %c0_352] : memref<8x10x128xf32, #tpu.memory_space<vmem>>, vector<1x8x128xf32>
    %1069 = vector.shape_cast %1068 : vector<1x8x128xf32> to vector<8x128xf32>
    %1070 = vector.broadcast %1067 : f32 to vector<8x128xf32>
    %1071 = arith.mulf %1069, %1070 : vector<8x128xf32>
    %1072 = arith.addf %1066, %1071 : vector<8x128xf32>
    %c160 = arith.constant 160 : index
    %1073 = memref.load %arg1[%c160] : memref<312xf32, #tpu.memory_space<smem>>
    %c2_353 = arith.constant 2 : index
    %c2_354 = arith.constant 2 : index
    %c0_355 = arith.constant 0 : index
    %1074 = vector.load %arg5[%c2_353, %c2_354, %c0_355] : memref<8x10x128xf32, #tpu.memory_space<vmem>>, vector<1x8x128xf32>
    %1075 = vector.shape_cast %1074 : vector<1x8x128xf32> to vector<8x128xf32>
    %1076 = vector.broadcast %1073 : f32 to vector<8x128xf32>
    %1077 = arith.mulf %1075, %1076 : vector<8x128xf32>
    %1078 = arith.addf %1072, %1077 : vector<8x128xf32>
    %c161 = arith.constant 161 : index
    %1079 = memref.load %arg1[%c161] : memref<312xf32, #tpu.memory_space<smem>>
    %c3_356 = arith.constant 3 : index
    %c0_357 = arith.constant 0 : index
    %c0_358 = arith.constant 0 : index
    %1080 = vector.load %arg5[%c3_356, %c0_357, %c0_358] : memref<8x10x128xf32, #tpu.memory_space<vmem>>, vector<1x8x128xf32>
    %1081 = vector.shape_cast %1080 : vector<1x8x128xf32> to vector<8x128xf32>
    %1082 = vector.broadcast %1079 : f32 to vector<8x128xf32>
    %1083 = arith.mulf %1081, %1082 : vector<8x128xf32>
    %1084 = arith.addf %1078, %1083 : vector<8x128xf32>
    %c162 = arith.constant 162 : index
    %1085 = memref.load %arg1[%c162] : memref<312xf32, #tpu.memory_space<smem>>
    %c3_359 = arith.constant 3 : index
    %c1_360 = arith.constant 1 : index
    %c0_361 = arith.constant 0 : index
    %1086 = vector.load %arg5[%c3_359, %c1_360, %c0_361] : memref<8x10x128xf32, #tpu.memory_space<vmem>>, vector<1x8x128xf32>
    %1087 = vector.shape_cast %1086 : vector<1x8x128xf32> to vector<8x128xf32>
    %1088 = vector.broadcast %1085 : f32 to vector<8x128xf32>
    %1089 = arith.mulf %1087, %1088 : vector<8x128xf32>
    %1090 = arith.addf %1084, %1089 : vector<8x128xf32>
    %c163 = arith.constant 163 : index
    %1091 = memref.load %arg1[%c163] : memref<312xf32, #tpu.memory_space<smem>>
    %c3_362 = arith.constant 3 : index
    %c2_363 = arith.constant 2 : index
    %c0_364 = arith.constant 0 : index
    %1092 = vector.load %arg5[%c3_362, %c2_363, %c0_364] : memref<8x10x128xf32, #tpu.memory_space<vmem>>, vector<1x8x128xf32>
    %1093 = vector.shape_cast %1092 : vector<1x8x128xf32> to vector<8x128xf32>
    %1094 = vector.broadcast %1091 : f32 to vector<8x128xf32>
    %1095 = arith.mulf %1093, %1094 : vector<8x128xf32>
    %1096 = arith.addf %1090, %1095 : vector<8x128xf32>
    %c164 = arith.constant 164 : index
    %1097 = memref.load %arg1[%c164] : memref<312xf32, #tpu.memory_space<smem>>
    %c4_365 = arith.constant 4 : index
    %c0_366 = arith.constant 0 : index
    %c0_367 = arith.constant 0 : index
    %1098 = vector.load %arg5[%c4_365, %c0_366, %c0_367] : memref<8x10x128xf32, #tpu.memory_space<vmem>>, vector<1x8x128xf32>
    %1099 = vector.shape_cast %1098 : vector<1x8x128xf32> to vector<8x128xf32>
    %1100 = vector.broadcast %1097 : f32 to vector<8x128xf32>
    %1101 = arith.mulf %1099, %1100 : vector<8x128xf32>
    %1102 = arith.addf %1096, %1101 : vector<8x128xf32>
    %c165 = arith.constant 165 : index
    %1103 = memref.load %arg1[%c165] : memref<312xf32, #tpu.memory_space<smem>>
    %c4_368 = arith.constant 4 : index
    %c1_369 = arith.constant 1 : index
    %c0_370 = arith.constant 0 : index
    %1104 = vector.load %arg5[%c4_368, %c1_369, %c0_370] : memref<8x10x128xf32, #tpu.memory_space<vmem>>, vector<1x8x128xf32>
    %1105 = vector.shape_cast %1104 : vector<1x8x128xf32> to vector<8x128xf32>
    %1106 = vector.broadcast %1103 : f32 to vector<8x128xf32>
    %1107 = arith.mulf %1105, %1106 : vector<8x128xf32>
    %1108 = arith.addf %1102, %1107 : vector<8x128xf32>
    %c166 = arith.constant 166 : index
    %1109 = memref.load %arg1[%c166] : memref<312xf32, #tpu.memory_space<smem>>
    %c4_371 = arith.constant 4 : index
    %c2_372 = arith.constant 2 : index
    %c0_373 = arith.constant 0 : index
    %1110 = vector.load %arg5[%c4_371, %c2_372, %c0_373] : memref<8x10x128xf32, #tpu.memory_space<vmem>>, vector<1x8x128xf32>
    %1111 = vector.shape_cast %1110 : vector<1x8x128xf32> to vector<8x128xf32>
    %1112 = vector.broadcast %1109 : f32 to vector<8x128xf32>
    %1113 = arith.mulf %1111, %1112 : vector<8x128xf32>
    %1114 = arith.addf %1108, %1113 : vector<8x128xf32>
    %c167 = arith.constant 167 : index
    %1115 = memref.load %arg1[%c167] : memref<312xf32, #tpu.memory_space<smem>>
    %c5_374 = arith.constant 5 : index
    %c0_375 = arith.constant 0 : index
    %c0_376 = arith.constant 0 : index
    %1116 = vector.load %arg5[%c5_374, %c0_375, %c0_376] : memref<8x10x128xf32, #tpu.memory_space<vmem>>, vector<1x8x128xf32>
    %1117 = vector.shape_cast %1116 : vector<1x8x128xf32> to vector<8x128xf32>
    %1118 = vector.broadcast %1115 : f32 to vector<8x128xf32>
    %1119 = arith.mulf %1117, %1118 : vector<8x128xf32>
    %1120 = arith.addf %1114, %1119 : vector<8x128xf32>
    %c168 = arith.constant 168 : index
    %1121 = memref.load %arg1[%c168] : memref<312xf32, #tpu.memory_space<smem>>
    %c5_377 = arith.constant 5 : index
    %c1_378 = arith.constant 1 : index
    %c0_379 = arith.constant 0 : index
    %1122 = vector.load %arg5[%c5_377, %c1_378, %c0_379] : memref<8x10x128xf32, #tpu.memory_space<vmem>>, vector<1x8x128xf32>
    %1123 = vector.shape_cast %1122 : vector<1x8x128xf32> to vector<8x128xf32>
    %1124 = vector.broadcast %1121 : f32 to vector<8x128xf32>
    %1125 = arith.mulf %1123, %1124 : vector<8x128xf32>
    %1126 = arith.addf %1120, %1125 : vector<8x128xf32>
    %c169 = arith.constant 169 : index
    %1127 = memref.load %arg1[%c169] : memref<312xf32, #tpu.memory_space<smem>>
    %c5_380 = arith.constant 5 : index
    %c2_381 = arith.constant 2 : index
    %c0_382 = arith.constant 0 : index
    %1128 = vector.load %arg5[%c5_380, %c2_381, %c0_382] : memref<8x10x128xf32, #tpu.memory_space<vmem>>, vector<1x8x128xf32>
    %1129 = vector.shape_cast %1128 : vector<1x8x128xf32> to vector<8x128xf32>
    %1130 = vector.broadcast %1127 : f32 to vector<8x128xf32>
    %1131 = arith.mulf %1129, %1130 : vector<8x128xf32>
    %1132 = arith.addf %1126, %1131 : vector<8x128xf32>
    %c170 = arith.constant 170 : index
    %1133 = memref.load %arg1[%c170] : memref<312xf32, #tpu.memory_space<smem>>
    %c6_383 = arith.constant 6 : index
    %c0_384 = arith.constant 0 : index
    %c0_385 = arith.constant 0 : index
    %1134 = vector.load %arg5[%c6_383, %c0_384, %c0_385] : memref<8x10x128xf32, #tpu.memory_space<vmem>>, vector<1x8x128xf32>
    %1135 = vector.shape_cast %1134 : vector<1x8x128xf32> to vector<8x128xf32>
    %1136 = vector.broadcast %1133 : f32 to vector<8x128xf32>
    %1137 = arith.mulf %1135, %1136 : vector<8x128xf32>
    %1138 = arith.addf %1132, %1137 : vector<8x128xf32>
    %c171 = arith.constant 171 : index
    %1139 = memref.load %arg1[%c171] : memref<312xf32, #tpu.memory_space<smem>>
    %c6_386 = arith.constant 6 : index
    %c1_387 = arith.constant 1 : index
    %c0_388 = arith.constant 0 : index
    %1140 = vector.load %arg5[%c6_386, %c1_387, %c0_388] : memref<8x10x128xf32, #tpu.memory_space<vmem>>, vector<1x8x128xf32>
    %1141 = vector.shape_cast %1140 : vector<1x8x128xf32> to vector<8x128xf32>
    %1142 = vector.broadcast %1139 : f32 to vector<8x128xf32>
    %1143 = arith.mulf %1141, %1142 : vector<8x128xf32>
    %1144 = arith.addf %1138, %1143 : vector<8x128xf32>
    %c172 = arith.constant 172 : index
    %1145 = memref.load %arg1[%c172] : memref<312xf32, #tpu.memory_space<smem>>
    %c6_389 = arith.constant 6 : index
    %c2_390 = arith.constant 2 : index
    %c0_391 = arith.constant 0 : index
    %1146 = vector.load %arg5[%c6_389, %c2_390, %c0_391] : memref<8x10x128xf32, #tpu.memory_space<vmem>>, vector<1x8x128xf32>
    %1147 = vector.shape_cast %1146 : vector<1x8x128xf32> to vector<8x128xf32>
    %1148 = vector.broadcast %1145 : f32 to vector<8x128xf32>
    %1149 = arith.mulf %1147, %1148 : vector<8x128xf32>
    %1150 = arith.addf %1144, %1149 : vector<8x128xf32>
    %c173 = arith.constant 173 : index
    %1151 = memref.load %arg1[%c173] : memref<312xf32, #tpu.memory_space<smem>>
    %c7_392 = arith.constant 7 : index
    %c0_393 = arith.constant 0 : index
    %c0_394 = arith.constant 0 : index
    %1152 = vector.load %arg5[%c7_392, %c0_393, %c0_394] : memref<8x10x128xf32, #tpu.memory_space<vmem>>, vector<1x8x128xf32>
    %1153 = vector.shape_cast %1152 : vector<1x8x128xf32> to vector<8x128xf32>
    %1154 = vector.broadcast %1151 : f32 to vector<8x128xf32>
    %1155 = arith.mulf %1153, %1154 : vector<8x128xf32>
    %1156 = arith.addf %1150, %1155 : vector<8x128xf32>
    %c174 = arith.constant 174 : index
    %1157 = memref.load %arg1[%c174] : memref<312xf32, #tpu.memory_space<smem>>
    %c7_395 = arith.constant 7 : index
    %c1_396 = arith.constant 1 : index
    %c0_397 = arith.constant 0 : index
    %1158 = vector.load %arg5[%c7_395, %c1_396, %c0_397] : memref<8x10x128xf32, #tpu.memory_space<vmem>>, vector<1x8x128xf32>
    %1159 = vector.shape_cast %1158 : vector<1x8x128xf32> to vector<8x128xf32>
    %1160 = vector.broadcast %1157 : f32 to vector<8x128xf32>
    %1161 = arith.mulf %1159, %1160 : vector<8x128xf32>
    %1162 = arith.addf %1156, %1161 : vector<8x128xf32>
    %c175 = arith.constant 175 : index
    %1163 = memref.load %arg1[%c175] : memref<312xf32, #tpu.memory_space<smem>>
    %c7_398 = arith.constant 7 : index
    %c2_399 = arith.constant 2 : index
    %c0_400 = arith.constant 0 : index
    %1164 = vector.load %arg5[%c7_398, %c2_399, %c0_400] : memref<8x10x128xf32, #tpu.memory_space<vmem>>, vector<1x8x128xf32>
    %1165 = vector.shape_cast %1164 : vector<1x8x128xf32> to vector<8x128xf32>
    %1166 = vector.broadcast %1163 : f32 to vector<8x128xf32>
    %1167 = arith.mulf %1165, %1166 : vector<8x128xf32>
    %1168 = arith.addf %1162, %1167 : vector<8x128xf32>
    %c298 = arith.constant 298 : index
    %1169 = memref.load %arg1[%c298] : memref<312xf32, #tpu.memory_space<smem>>
    %1170 = vector.broadcast %1169 : f32 to vector<8x128xf32>
    %1171 = arith.addf %1168, %1170 : vector<8x128xf32>
    %1172 = arith.addf %1171, %712 : vector<8x128xf32>
    %c2_401 = arith.constant 2 : index
    %c0_402 = arith.constant 0 : index
    %c0_403 = arith.constant 0 : index
    %1173 = vector.load %arg4[%c2_401, %c0_402, %c0_403] : memref<8x8x128xf32, #tpu.memory_space<vmem>>, vector<1x8x128xf32>
    %1174 = vector.shape_cast %1173 : vector<1x8x128xf32> to vector<8x128xf32>
    %1175 = vector.shape_cast %1172 : vector<8x128xf32> to vector<1x8x128xf32>
    tpu.vector_store %arg4[%c2_401, %c0_402, %c0_403], %1175 {strides = array<i32>} : memref<8x8x128xf32, #tpu.memory_space<vmem>>, vector<1x8x128xf32>,
    %c176 = arith.constant 176 : index
    %1176 = memref.load %arg1[%c176] : memref<312xf32, #tpu.memory_space<smem>>
    %c0_404 = arith.constant 0 : index
    %c0_405 = arith.constant 0 : index
    %c0_406 = arith.constant 0 : index
    %1177 = vector.load %arg5[%c0_404, %c0_405, %c0_406] : memref<8x10x128xf32, #tpu.memory_space<vmem>>, vector<1x8x128xf32>
    %1178 = vector.shape_cast %1177 : vector<1x8x128xf32> to vector<8x128xf32>
    %1179 = vector.broadcast %1176 : f32 to vector<8x128xf32>
    %1180 = arith.mulf %1178, %1179 : vector<8x128xf32>
    %c177 = arith.constant 177 : index
    %1181 = memref.load %arg1[%c177] : memref<312xf32, #tpu.memory_space<smem>>
    %c0_407 = arith.constant 0 : index
    %c1_408 = arith.constant 1 : index
    %c0_409 = arith.constant 0 : index
    %1182 = vector.load %arg5[%c0_407, %c1_408, %c0_409] : memref<8x10x128xf32, #tpu.memory_space<vmem>>, vector<1x8x128xf32>
    %1183 = vector.shape_cast %1182 : vector<1x8x128xf32> to vector<8x128xf32>
    %1184 = vector.broadcast %1181 : f32 to vector<8x128xf32>
    %1185 = arith.mulf %1183, %1184 : vector<8x128xf32>
    %1186 = arith.addf %1180, %1185 : vector<8x128xf32>
    %c178 = arith.constant 178 : index
    %1187 = memref.load %arg1[%c178] : memref<312xf32, #tpu.memory_space<smem>>
    %c0_410 = arith.constant 0 : index
    %c2_411 = arith.constant 2 : index
    %c0_412 = arith.constant 0 : index
    %1188 = vector.load %arg5[%c0_410, %c2_411, %c0_412] : memref<8x10x128xf32, #tpu.memory_space<vmem>>, vector<1x8x128xf32>
    %1189 = vector.shape_cast %1188 : vector<1x8x128xf32> to vector<8x128xf32>
    %1190 = vector.broadcast %1187 : f32 to vector<8x128xf32>
    %1191 = arith.mulf %1189, %1190 : vector<8x128xf32>
    %1192 = arith.addf %1186, %1191 : vector<8x128xf32>
    %c179 = arith.constant 179 : index
    %1193 = memref.load %arg1[%c179] : memref<312xf32, #tpu.memory_space<smem>>
    %c1_413 = arith.constant 1 : index
    %c0_414 = arith.constant 0 : index
    %c0_415 = arith.constant 0 : index
    %1194 = vector.load %arg5[%c1_413, %c0_414, %c0_415] : memref<8x10x128xf32, #tpu.memory_space<vmem>>, vector<1x8x128xf32>
    %1195 = vector.shape_cast %1194 : vector<1x8x128xf32> to vector<8x128xf32>
    %1196 = vector.broadcast %1193 : f32 to vector<8x128xf32>
    %1197 = arith.mulf %1195, %1196 : vector<8x128xf32>
    %1198 = arith.addf %1192, %1197 : vector<8x128xf32>
    %c180 = arith.constant 180 : index
    %1199 = memref.load %arg1[%c180] : memref<312xf32, #tpu.memory_space<smem>>
    %c1_416 = arith.constant 1 : index
    %c1_417 = arith.constant 1 : index
    %c0_418 = arith.constant 0 : index
    %1200 = vector.load %arg5[%c1_416, %c1_417, %c0_418] : memref<8x10x128xf32, #tpu.memory_space<vmem>>, vector<1x8x128xf32>
    %1201 = vector.shape_cast %1200 : vector<1x8x128xf32> to vector<8x128xf32>
    %1202 = vector.broadcast %1199 : f32 to vector<8x128xf32>
    %1203 = arith.mulf %1201, %1202 : vector<8x128xf32>
    %1204 = arith.addf %1198, %1203 : vector<8x128xf32>
    %c181 = arith.constant 181 : index
    %1205 = memref.load %arg1[%c181] : memref<312xf32, #tpu.memory_space<smem>>
    %c1_419 = arith.constant 1 : index
    %c2_420 = arith.constant 2 : index
    %c0_421 = arith.constant 0 : index
    %1206 = vector.load %arg5[%c1_419, %c2_420, %c0_421] : memref<8x10x128xf32, #tpu.memory_space<vmem>>, vector<1x8x128xf32>
    %1207 = vector.shape_cast %1206 : vector<1x8x128xf32> to vector<8x128xf32>
    %1208 = vector.broadcast %1205 : f32 to vector<8x128xf32>
    %1209 = arith.mulf %1207, %1208 : vector<8x128xf32>
    %1210 = arith.addf %1204, %1209 : vector<8x128xf32>
    %c182 = arith.constant 182 : index
    %1211 = memref.load %arg1[%c182] : memref<312xf32, #tpu.memory_space<smem>>
    %c2_422 = arith.constant 2 : index
    %c0_423 = arith.constant 0 : index
    %c0_424 = arith.constant 0 : index
    %1212 = vector.load %arg5[%c2_422, %c0_423, %c0_424] : memref<8x10x128xf32, #tpu.memory_space<vmem>>, vector<1x8x128xf32>
    %1213 = vector.shape_cast %1212 : vector<1x8x128xf32> to vector<8x128xf32>
    %1214 = vector.broadcast %1211 : f32 to vector<8x128xf32>
    %1215 = arith.mulf %1213, %1214 : vector<8x128xf32>
    %1216 = arith.addf %1210, %1215 : vector<8x128xf32>
    %c183 = arith.constant 183 : index
    %1217 = memref.load %arg1[%c183] : memref<312xf32, #tpu.memory_space<smem>>
    %c2_425 = arith.constant 2 : index
    %c1_426 = arith.constant 1 : index
    %c0_427 = arith.constant 0 : index
    %1218 = vector.load %arg5[%c2_425, %c1_426, %c0_427] : memref<8x10x128xf32, #tpu.memory_space<vmem>>, vector<1x8x128xf32>
    %1219 = vector.shape_cast %1218 : vector<1x8x128xf32> to vector<8x128xf32>
    %1220 = vector.broadcast %1217 : f32 to vector<8x128xf32>
    %1221 = arith.mulf %1219, %1220 : vector<8x128xf32>
    %1222 = arith.addf %1216, %1221 : vector<8x128xf32>
    %c184 = arith.constant 184 : index
    %1223 = memref.load %arg1[%c184] : memref<312xf32, #tpu.memory_space<smem>>
    %c2_428 = arith.constant 2 : index
    %c2_429 = arith.constant 2 : index
    %c0_430 = arith.constant 0 : index
    %1224 = vector.load %arg5[%c2_428, %c2_429, %c0_430] : memref<8x10x128xf32, #tpu.memory_space<vmem>>, vector<1x8x128xf32>
    %1225 = vector.shape_cast %1224 : vector<1x8x128xf32> to vector<8x128xf32>
    %1226 = vector.broadcast %1223 : f32 to vector<8x128xf32>
    %1227 = arith.mulf %1225, %1226 : vector<8x128xf32>
    %1228 = arith.addf %1222, %1227 : vector<8x128xf32>
    %c185 = arith.constant 185 : index
    %1229 = memref.load %arg1[%c185] : memref<312xf32, #tpu.memory_space<smem>>
    %c3_431 = arith.constant 3 : index
    %c0_432 = arith.constant 0 : index
    %c0_433 = arith.constant 0 : index
    %1230 = vector.load %arg5[%c3_431, %c0_432, %c0_433] : memref<8x10x128xf32, #tpu.memory_space<vmem>>, vector<1x8x128xf32>
    %1231 = vector.shape_cast %1230 : vector<1x8x128xf32> to vector<8x128xf32>
    %1232 = vector.broadcast %1229 : f32 to vector<8x128xf32>
    %1233 = arith.mulf %1231, %1232 : vector<8x128xf32>
    %1234 = arith.addf %1228, %1233 : vector<8x128xf32>
    %c186 = arith.constant 186 : index
    %1235 = memref.load %arg1[%c186] : memref<312xf32, #tpu.memory_space<smem>>
    %c3_434 = arith.constant 3 : index
    %c1_435 = arith.constant 1 : index
    %c0_436 = arith.constant 0 : index
    %1236 = vector.load %arg5[%c3_434, %c1_435, %c0_436] : memref<8x10x128xf32, #tpu.memory_space<vmem>>, vector<1x8x128xf32>
    %1237 = vector.shape_cast %1236 : vector<1x8x128xf32> to vector<8x128xf32>
    %1238 = vector.broadcast %1235 : f32 to vector<8x128xf32>
    %1239 = arith.mulf %1237, %1238 : vector<8x128xf32>
    %1240 = arith.addf %1234, %1239 : vector<8x128xf32>
    %c187 = arith.constant 187 : index
    %1241 = memref.load %arg1[%c187] : memref<312xf32, #tpu.memory_space<smem>>
    %c3_437 = arith.constant 3 : index
    %c2_438 = arith.constant 2 : index
    %c0_439 = arith.constant 0 : index
    %1242 = vector.load %arg5[%c3_437, %c2_438, %c0_439] : memref<8x10x128xf32, #tpu.memory_space<vmem>>, vector<1x8x128xf32>
    %1243 = vector.shape_cast %1242 : vector<1x8x128xf32> to vector<8x128xf32>
    %1244 = vector.broadcast %1241 : f32 to vector<8x128xf32>
    %1245 = arith.mulf %1243, %1244 : vector<8x128xf32>
    %1246 = arith.addf %1240, %1245 : vector<8x128xf32>
    %c188 = arith.constant 188 : index
    %1247 = memref.load %arg1[%c188] : memref<312xf32, #tpu.memory_space<smem>>
    %c4_440 = arith.constant 4 : index
    %c0_441 = arith.constant 0 : index
    %c0_442 = arith.constant 0 : index
    %1248 = vector.load %arg5[%c4_440, %c0_441, %c0_442] : memref<8x10x128xf32, #tpu.memory_space<vmem>>, vector<1x8x128xf32>
    %1249 = vector.shape_cast %1248 : vector<1x8x128xf32> to vector<8x128xf32>
    %1250 = vector.broadcast %1247 : f32 to vector<8x128xf32>
    %1251 = arith.mulf %1249, %1250 : vector<8x128xf32>
    %1252 = arith.addf %1246, %1251 : vector<8x128xf32>
    %c189 = arith.constant 189 : index
    %1253 = memref.load %arg1[%c189] : memref<312xf32, #tpu.memory_space<smem>>
    %c4_443 = arith.constant 4 : index
    %c1_444 = arith.constant 1 : index
    %c0_445 = arith.constant 0 : index
    %1254 = vector.load %arg5[%c4_443, %c1_444, %c0_445] : memref<8x10x128xf32, #tpu.memory_space<vmem>>, vector<1x8x128xf32>
    %1255 = vector.shape_cast %1254 : vector<1x8x128xf32> to vector<8x128xf32>
    %1256 = vector.broadcast %1253 : f32 to vector<8x128xf32>
    %1257 = arith.mulf %1255, %1256 : vector<8x128xf32>
    %1258 = arith.addf %1252, %1257 : vector<8x128xf32>
    %c190 = arith.constant 190 : index
    %1259 = memref.load %arg1[%c190] : memref<312xf32, #tpu.memory_space<smem>>
    %c4_446 = arith.constant 4 : index
    %c2_447 = arith.constant 2 : index
    %c0_448 = arith.constant 0 : index
    %1260 = vector.load %arg5[%c4_446, %c2_447, %c0_448] : memref<8x10x128xf32, #tpu.memory_space<vmem>>, vector<1x8x128xf32>
    %1261 = vector.shape_cast %1260 : vector<1x8x128xf32> to vector<8x128xf32>
    %1262 = vector.broadcast %1259 : f32 to vector<8x128xf32>
    %1263 = arith.mulf %1261, %1262 : vector<8x128xf32>
    %1264 = arith.addf %1258, %1263 : vector<8x128xf32>
    %c191 = arith.constant 191 : index
    %1265 = memref.load %arg1[%c191] : memref<312xf32, #tpu.memory_space<smem>>
    %c5_449 = arith.constant 5 : index
    %c0_450 = arith.constant 0 : index
    %c0_451 = arith.constant 0 : index
    %1266 = vector.load %arg5[%c5_449, %c0_450, %c0_451] : memref<8x10x128xf32, #tpu.memory_space<vmem>>, vector<1x8x128xf32>
    %1267 = vector.shape_cast %1266 : vector<1x8x128xf32> to vector<8x128xf32>
    %1268 = vector.broadcast %1265 : f32 to vector<8x128xf32>
    %1269 = arith.mulf %1267, %1268 : vector<8x128xf32>
    %1270 = arith.addf %1264, %1269 : vector<8x128xf32>
    %c192 = arith.constant 192 : index
    %1271 = memref.load %arg1[%c192] : memref<312xf32, #tpu.memory_space<smem>>
    %c5_452 = arith.constant 5 : index
    %c1_453 = arith.constant 1 : index
    %c0_454 = arith.constant 0 : index
    %1272 = vector.load %arg5[%c5_452, %c1_453, %c0_454] : memref<8x10x128xf32, #tpu.memory_space<vmem>>, vector<1x8x128xf32>
    %1273 = vector.shape_cast %1272 : vector<1x8x128xf32> to vector<8x128xf32>
    %1274 = vector.broadcast %1271 : f32 to vector<8x128xf32>
    %1275 = arith.mulf %1273, %1274 : vector<8x128xf32>
    %1276 = arith.addf %1270, %1275 : vector<8x128xf32>
    %c193 = arith.constant 193 : index
    %1277 = memref.load %arg1[%c193] : memref<312xf32, #tpu.memory_space<smem>>
    %c5_455 = arith.constant 5 : index
    %c2_456 = arith.constant 2 : index
    %c0_457 = arith.constant 0 : index
    %1278 = vector.load %arg5[%c5_455, %c2_456, %c0_457] : memref<8x10x128xf32, #tpu.memory_space<vmem>>, vector<1x8x128xf32>
    %1279 = vector.shape_cast %1278 : vector<1x8x128xf32> to vector<8x128xf32>
    %1280 = vector.broadcast %1277 : f32 to vector<8x128xf32>
    %1281 = arith.mulf %1279, %1280 : vector<8x128xf32>
    %1282 = arith.addf %1276, %1281 : vector<8x128xf32>
    %c194 = arith.constant 194 : index
    %1283 = memref.load %arg1[%c194] : memref<312xf32, #tpu.memory_space<smem>>
    %c6_458 = arith.constant 6 : index
    %c0_459 = arith.constant 0 : index
    %c0_460 = arith.constant 0 : index
    %1284 = vector.load %arg5[%c6_458, %c0_459, %c0_460] : memref<8x10x128xf32, #tpu.memory_space<vmem>>, vector<1x8x128xf32>
    %1285 = vector.shape_cast %1284 : vector<1x8x128xf32> to vector<8x128xf32>
    %1286 = vector.broadcast %1283 : f32 to vector<8x128xf32>
    %1287 = arith.mulf %1285, %1286 : vector<8x128xf32>
    %1288 = arith.addf %1282, %1287 : vector<8x128xf32>
    %c195 = arith.constant 195 : index
    %1289 = memref.load %arg1[%c195] : memref<312xf32, #tpu.memory_space<smem>>
    %c6_461 = arith.constant 6 : index
    %c1_462 = arith.constant 1 : index
    %c0_463 = arith.constant 0 : index
    %1290 = vector.load %arg5[%c6_461, %c1_462, %c0_463] : memref<8x10x128xf32, #tpu.memory_space<vmem>>, vector<1x8x128xf32>
    %1291 = vector.shape_cast %1290 : vector<1x8x128xf32> to vector<8x128xf32>
    %1292 = vector.broadcast %1289 : f32 to vector<8x128xf32>
    %1293 = arith.mulf %1291, %1292 : vector<8x128xf32>
    %1294 = arith.addf %1288, %1293 : vector<8x128xf32>
    %c196 = arith.constant 196 : index
    %1295 = memref.load %arg1[%c196] : memref<312xf32, #tpu.memory_space<smem>>
    %c6_464 = arith.constant 6 : index
    %c2_465 = arith.constant 2 : index
    %c0_466 = arith.constant 0 : index
    %1296 = vector.load %arg5[%c6_464, %c2_465, %c0_466] : memref<8x10x128xf32, #tpu.memory_space<vmem>>, vector<1x8x128xf32>
    %1297 = vector.shape_cast %1296 : vector<1x8x128xf32> to vector<8x128xf32>
    %1298 = vector.broadcast %1295 : f32 to vector<8x128xf32>
    %1299 = arith.mulf %1297, %1298 : vector<8x128xf32>
    %1300 = arith.addf %1294, %1299 : vector<8x128xf32>
    %c197 = arith.constant 197 : index
    %1301 = memref.load %arg1[%c197] : memref<312xf32, #tpu.memory_space<smem>>
    %c7_467 = arith.constant 7 : index
    %c0_468 = arith.constant 0 : index
    %c0_469 = arith.constant 0 : index
    %1302 = vector.load %arg5[%c7_467, %c0_468, %c0_469] : memref<8x10x128xf32, #tpu.memory_space<vmem>>, vector<1x8x128xf32>
    %1303 = vector.shape_cast %1302 : vector<1x8x128xf32> to vector<8x128xf32>
    %1304 = vector.broadcast %1301 : f32 to vector<8x128xf32>
    %1305 = arith.mulf %1303, %1304 : vector<8x128xf32>
    %1306 = arith.addf %1300, %1305 : vector<8x128xf32>
    %c198 = arith.constant 198 : index
    %1307 = memref.load %arg1[%c198] : memref<312xf32, #tpu.memory_space<smem>>
    %c7_470 = arith.constant 7 : index
    %c1_471 = arith.constant 1 : index
    %c0_472 = arith.constant 0 : index
    %1308 = vector.load %arg5[%c7_470, %c1_471, %c0_472] : memref<8x10x128xf32, #tpu.memory_space<vmem>>, vector<1x8x128xf32>
    %1309 = vector.shape_cast %1308 : vector<1x8x128xf32> to vector<8x128xf32>
    %1310 = vector.broadcast %1307 : f32 to vector<8x128xf32>
    %1311 = arith.mulf %1309, %1310 : vector<8x128xf32>
    %1312 = arith.addf %1306, %1311 : vector<8x128xf32>
    %c199 = arith.constant 199 : index
    %1313 = memref.load %arg1[%c199] : memref<312xf32, #tpu.memory_space<smem>>
    %c7_473 = arith.constant 7 : index
    %c2_474 = arith.constant 2 : index
    %c0_475 = arith.constant 0 : index
    %1314 = vector.load %arg5[%c7_473, %c2_474, %c0_475] : memref<8x10x128xf32, #tpu.memory_space<vmem>>, vector<1x8x128xf32>
    %1315 = vector.shape_cast %1314 : vector<1x8x128xf32> to vector<8x128xf32>
    %1316 = vector.broadcast %1313 : f32 to vector<8x128xf32>
    %1317 = arith.mulf %1315, %1316 : vector<8x128xf32>
    %1318 = arith.addf %1312, %1317 : vector<8x128xf32>
    %c299 = arith.constant 299 : index
    %1319 = memref.load %arg1[%c299] : memref<312xf32, #tpu.memory_space<smem>>
    %1320 = vector.broadcast %1319 : f32 to vector<8x128xf32>
    %1321 = arith.addf %1318, %1320 : vector<8x128xf32>
    %1322 = arith.addf %1321, %717 : vector<8x128xf32>
    %c3_476 = arith.constant 3 : index
    %c0_477 = arith.constant 0 : index
    %c0_478 = arith.constant 0 : index
    %1323 = vector.load %arg4[%c3_476, %c0_477, %c0_478] : memref<8x8x128xf32, #tpu.memory_space<vmem>>, vector<1x8x128xf32>
    %1324 = vector.shape_cast %1323 : vector<1x8x128xf32> to vector<8x128xf32>
    %1325 = vector.shape_cast %1322 : vector<8x128xf32> to vector<1x8x128xf32>
    tpu.vector_store %arg4[%c3_476, %c0_477, %c0_478], %1325 {strides = array<i32>} : memref<8x8x128xf32, #tpu.memory_space<vmem>>, vector<1x8x128xf32>,
    %c200 = arith.constant 200 : index
    %1326 = memref.load %arg1[%c200] : memref<312xf32, #tpu.memory_space<smem>>
    %c0_479 = arith.constant 0 : index
    %c0_480 = arith.constant 0 : index
    %c0_481 = arith.constant 0 : index
    %1327 = vector.load %arg5[%c0_479, %c0_480, %c0_481] : memref<8x10x128xf32, #tpu.memory_space<vmem>>, vector<1x8x128xf32>
    %1328 = vector.shape_cast %1327 : vector<1x8x128xf32> to vector<8x128xf32>
    %1329 = vector.broadcast %1326 : f32 to vector<8x128xf32>
    %1330 = arith.mulf %1328, %1329 : vector<8x128xf32>
    %c201 = arith.constant 201 : index
    %1331 = memref.load %arg1[%c201] : memref<312xf32, #tpu.memory_space<smem>>
    %c0_482 = arith.constant 0 : index
    %c1_483 = arith.constant 1 : index
    %c0_484 = arith.constant 0 : index
    %1332 = vector.load %arg5[%c0_482, %c1_483, %c0_484] : memref<8x10x128xf32, #tpu.memory_space<vmem>>, vector<1x8x128xf32>
    %1333 = vector.shape_cast %1332 : vector<1x8x128xf32> to vector<8x128xf32>
    %1334 = vector.broadcast %1331 : f32 to vector<8x128xf32>
    %1335 = arith.mulf %1333, %1334 : vector<8x128xf32>
    %1336 = arith.addf %1330, %1335 : vector<8x128xf32>
    %c202 = arith.constant 202 : index
    %1337 = memref.load %arg1[%c202] : memref<312xf32, #tpu.memory_space<smem>>
    %c0_485 = arith.constant 0 : index
    %c2_486 = arith.constant 2 : index
    %c0_487 = arith.constant 0 : index
    %1338 = vector.load %arg5[%c0_485, %c2_486, %c0_487] : memref<8x10x128xf32, #tpu.memory_space<vmem>>, vector<1x8x128xf32>
    %1339 = vector.shape_cast %1338 : vector<1x8x128xf32> to vector<8x128xf32>
    %1340 = vector.broadcast %1337 : f32 to vector<8x128xf32>
    %1341 = arith.mulf %1339, %1340 : vector<8x128xf32>
    %1342 = arith.addf %1336, %1341 : vector<8x128xf32>
    %c203 = arith.constant 203 : index
    %1343 = memref.load %arg1[%c203] : memref<312xf32, #tpu.memory_space<smem>>
    %c1_488 = arith.constant 1 : index
    %c0_489 = arith.constant 0 : index
    %c0_490 = arith.constant 0 : index
    %1344 = vector.load %arg5[%c1_488, %c0_489, %c0_490] : memref<8x10x128xf32, #tpu.memory_space<vmem>>, vector<1x8x128xf32>
    %1345 = vector.shape_cast %1344 : vector<1x8x128xf32> to vector<8x128xf32>
    %1346 = vector.broadcast %1343 : f32 to vector<8x128xf32>
    %1347 = arith.mulf %1345, %1346 : vector<8x128xf32>
    %1348 = arith.addf %1342, %1347 : vector<8x128xf32>
    %c204 = arith.constant 204 : index
    %1349 = memref.load %arg1[%c204] : memref<312xf32, #tpu.memory_space<smem>>
    %c1_491 = arith.constant 1 : index
    %c1_492 = arith.constant 1 : index
    %c0_493 = arith.constant 0 : index
    %1350 = vector.load %arg5[%c1_491, %c1_492, %c0_493] : memref<8x10x128xf32, #tpu.memory_space<vmem>>, vector<1x8x128xf32>
    %1351 = vector.shape_cast %1350 : vector<1x8x128xf32> to vector<8x128xf32>
    %1352 = vector.broadcast %1349 : f32 to vector<8x128xf32>
    %1353 = arith.mulf %1351, %1352 : vector<8x128xf32>
    %1354 = arith.addf %1348, %1353 : vector<8x128xf32>
    %c205 = arith.constant 205 : index
    %1355 = memref.load %arg1[%c205] : memref<312xf32, #tpu.memory_space<smem>>
    %c1_494 = arith.constant 1 : index
    %c2_495 = arith.constant 2 : index
    %c0_496 = arith.constant 0 : index
    %1356 = vector.load %arg5[%c1_494, %c2_495, %c0_496] : memref<8x10x128xf32, #tpu.memory_space<vmem>>, vector<1x8x128xf32>
    %1357 = vector.shape_cast %1356 : vector<1x8x128xf32> to vector<8x128xf32>
    %1358 = vector.broadcast %1355 : f32 to vector<8x128xf32>
    %1359 = arith.mulf %1357, %1358 : vector<8x128xf32>
    %1360 = arith.addf %1354, %1359 : vector<8x128xf32>
    %c206 = arith.constant 206 : index
    %1361 = memref.load %arg1[%c206] : memref<312xf32, #tpu.memory_space<smem>>
    %c2_497 = arith.constant 2 : index
    %c0_498 = arith.constant 0 : index
    %c0_499 = arith.constant 0 : index
    %1362 = vector.load %arg5[%c2_497, %c0_498, %c0_499] : memref<8x10x128xf32, #tpu.memory_space<vmem>>, vector<1x8x128xf32>
    %1363 = vector.shape_cast %1362 : vector<1x8x128xf32> to vector<8x128xf32>
    %1364 = vector.broadcast %1361 : f32 to vector<8x128xf32>
    %1365 = arith.mulf %1363, %1364 : vector<8x128xf32>
    %1366 = arith.addf %1360, %1365 : vector<8x128xf32>
    %c207 = arith.constant 207 : index
    %1367 = memref.load %arg1[%c207] : memref<312xf32, #tpu.memory_space<smem>>
    %c2_500 = arith.constant 2 : index
    %c1_501 = arith.constant 1 : index
    %c0_502 = arith.constant 0 : index
    %1368 = vector.load %arg5[%c2_500, %c1_501, %c0_502] : memref<8x10x128xf32, #tpu.memory_space<vmem>>, vector<1x8x128xf32>
    %1369 = vector.shape_cast %1368 : vector<1x8x128xf32> to vector<8x128xf32>
    %1370 = vector.broadcast %1367 : f32 to vector<8x128xf32>
    %1371 = arith.mulf %1369, %1370 : vector<8x128xf32>
    %1372 = arith.addf %1366, %1371 : vector<8x128xf32>
    %c208 = arith.constant 208 : index
    %1373 = memref.load %arg1[%c208] : memref<312xf32, #tpu.memory_space<smem>>
    %c2_503 = arith.constant 2 : index
    %c2_504 = arith.constant 2 : index
    %c0_505 = arith.constant 0 : index
    %1374 = vector.load %arg5[%c2_503, %c2_504, %c0_505] : memref<8x10x128xf32, #tpu.memory_space<vmem>>, vector<1x8x128xf32>
    %1375 = vector.shape_cast %1374 : vector<1x8x128xf32> to vector<8x128xf32>
    %1376 = vector.broadcast %1373 : f32 to vector<8x128xf32>
    %1377 = arith.mulf %1375, %1376 : vector<8x128xf32>
    %1378 = arith.addf %1372, %1377 : vector<8x128xf32>
    %c209 = arith.constant 209 : index
    %1379 = memref.load %arg1[%c209] : memref<312xf32, #tpu.memory_space<smem>>
    %c3_506 = arith.constant 3 : index
    %c0_507 = arith.constant 0 : index
    %c0_508 = arith.constant 0 : index
    %1380 = vector.load %arg5[%c3_506, %c0_507, %c0_508] : memref<8x10x128xf32, #tpu.memory_space<vmem>>, vector<1x8x128xf32>
    %1381 = vector.shape_cast %1380 : vector<1x8x128xf32> to vector<8x128xf32>
    %1382 = vector.broadcast %1379 : f32 to vector<8x128xf32>
    %1383 = arith.mulf %1381, %1382 : vector<8x128xf32>
    %1384 = arith.addf %1378, %1383 : vector<8x128xf32>
    %c210 = arith.constant 210 : index
    %1385 = memref.load %arg1[%c210] : memref<312xf32, #tpu.memory_space<smem>>
    %c3_509 = arith.constant 3 : index
    %c1_510 = arith.constant 1 : index
    %c0_511 = arith.constant 0 : index
    %1386 = vector.load %arg5[%c3_509, %c1_510, %c0_511] : memref<8x10x128xf32, #tpu.memory_space<vmem>>, vector<1x8x128xf32>
    %1387 = vector.shape_cast %1386 : vector<1x8x128xf32> to vector<8x128xf32>
    %1388 = vector.broadcast %1385 : f32 to vector<8x128xf32>
    %1389 = arith.mulf %1387, %1388 : vector<8x128xf32>
    %1390 = arith.addf %1384, %1389 : vector<8x128xf32>
    %c211 = arith.constant 211 : index
    %1391 = memref.load %arg1[%c211] : memref<312xf32, #tpu.memory_space<smem>>
    %c3_512 = arith.constant 3 : index
    %c2_513 = arith.constant 2 : index
    %c0_514 = arith.constant 0 : index
    %1392 = vector.load %arg5[%c3_512, %c2_513, %c0_514] : memref<8x10x128xf32, #tpu.memory_space<vmem>>, vector<1x8x128xf32>
    %1393 = vector.shape_cast %1392 : vector<1x8x128xf32> to vector<8x128xf32>
    %1394 = vector.broadcast %1391 : f32 to vector<8x128xf32>
    %1395 = arith.mulf %1393, %1394 : vector<8x128xf32>
    %1396 = arith.addf %1390, %1395 : vector<8x128xf32>
    %c212 = arith.constant 212 : index
    %1397 = memref.load %arg1[%c212] : memref<312xf32, #tpu.memory_space<smem>>
    %c4_515 = arith.constant 4 : index
    %c0_516 = arith.constant 0 : index
    %c0_517 = arith.constant 0 : index
    %1398 = vector.load %arg5[%c4_515, %c0_516, %c0_517] : memref<8x10x128xf32, #tpu.memory_space<vmem>>, vector<1x8x128xf32>
    %1399 = vector.shape_cast %1398 : vector<1x8x128xf32> to vector<8x128xf32>
    %1400 = vector.broadcast %1397 : f32 to vector<8x128xf32>
    %1401 = arith.mulf %1399, %1400 : vector<8x128xf32>
    %1402 = arith.addf %1396, %1401 : vector<8x128xf32>
    %c213 = arith.constant 213 : index
    %1403 = memref.load %arg1[%c213] : memref<312xf32, #tpu.memory_space<smem>>
    %c4_518 = arith.constant 4 : index
    %c1_519 = arith.constant 1 : index
    %c0_520 = arith.constant 0 : index
    %1404 = vector.load %arg5[%c4_518, %c1_519, %c0_520] : memref<8x10x128xf32, #tpu.memory_space<vmem>>, vector<1x8x128xf32>
    %1405 = vector.shape_cast %1404 : vector<1x8x128xf32> to vector<8x128xf32>
    %1406 = vector.broadcast %1403 : f32 to vector<8x128xf32>
    %1407 = arith.mulf %1405, %1406 : vector<8x128xf32>
    %1408 = arith.addf %1402, %1407 : vector<8x128xf32>
    %c214 = arith.constant 214 : index
    %1409 = memref.load %arg1[%c214] : memref<312xf32, #tpu.memory_space<smem>>
    %c4_521 = arith.constant 4 : index
    %c2_522 = arith.constant 2 : index
    %c0_523 = arith.constant 0 : index
    %1410 = vector.load %arg5[%c4_521, %c2_522, %c0_523] : memref<8x10x128xf32, #tpu.memory_space<vmem>>, vector<1x8x128xf32>
    %1411 = vector.shape_cast %1410 : vector<1x8x128xf32> to vector<8x128xf32>
    %1412 = vector.broadcast %1409 : f32 to vector<8x128xf32>
    %1413 = arith.mulf %1411, %1412 : vector<8x128xf32>
    %1414 = arith.addf %1408, %1413 : vector<8x128xf32>
    %c215 = arith.constant 215 : index
    %1415 = memref.load %arg1[%c215] : memref<312xf32, #tpu.memory_space<smem>>
    %c5_524 = arith.constant 5 : index
    %c0_525 = arith.constant 0 : index
    %c0_526 = arith.constant 0 : index
    %1416 = vector.load %arg5[%c5_524, %c0_525, %c0_526] : memref<8x10x128xf32, #tpu.memory_space<vmem>>, vector<1x8x128xf32>
    %1417 = vector.shape_cast %1416 : vector<1x8x128xf32> to vector<8x128xf32>
    %1418 = vector.broadcast %1415 : f32 to vector<8x128xf32>
    %1419 = arith.mulf %1417, %1418 : vector<8x128xf32>
    %1420 = arith.addf %1414, %1419 : vector<8x128xf32>
    %c216 = arith.constant 216 : index
    %1421 = memref.load %arg1[%c216] : memref<312xf32, #tpu.memory_space<smem>>
    %c5_527 = arith.constant 5 : index
    %c1_528 = arith.constant 1 : index
    %c0_529 = arith.constant 0 : index
    %1422 = vector.load %arg5[%c5_527, %c1_528, %c0_529] : memref<8x10x128xf32, #tpu.memory_space<vmem>>, vector<1x8x128xf32>
    %1423 = vector.shape_cast %1422 : vector<1x8x128xf32> to vector<8x128xf32>
    %1424 = vector.broadcast %1421 : f32 to vector<8x128xf32>
    %1425 = arith.mulf %1423, %1424 : vector<8x128xf32>
    %1426 = arith.addf %1420, %1425 : vector<8x128xf32>
    %c217 = arith.constant 217 : index
    %1427 = memref.load %arg1[%c217] : memref<312xf32, #tpu.memory_space<smem>>
    %c5_530 = arith.constant 5 : index
    %c2_531 = arith.constant 2 : index
    %c0_532 = arith.constant 0 : index
    %1428 = vector.load %arg5[%c5_530, %c2_531, %c0_532] : memref<8x10x128xf32, #tpu.memory_space<vmem>>, vector<1x8x128xf32>
    %1429 = vector.shape_cast %1428 : vector<1x8x128xf32> to vector<8x128xf32>
    %1430 = vector.broadcast %1427 : f32 to vector<8x128xf32>
    %1431 = arith.mulf %1429, %1430 : vector<8x128xf32>
    %1432 = arith.addf %1426, %1431 : vector<8x128xf32>
    %c218 = arith.constant 218 : index
    %1433 = memref.load %arg1[%c218] : memref<312xf32, #tpu.memory_space<smem>>
    %c6_533 = arith.constant 6 : index
    %c0_534 = arith.constant 0 : index
    %c0_535 = arith.constant 0 : index
    %1434 = vector.load %arg5[%c6_533, %c0_534, %c0_535] : memref<8x10x128xf32, #tpu.memory_space<vmem>>, vector<1x8x128xf32>
    %1435 = vector.shape_cast %1434 : vector<1x8x128xf32> to vector<8x128xf32>
    %1436 = vector.broadcast %1433 : f32 to vector<8x128xf32>
    %1437 = arith.mulf %1435, %1436 : vector<8x128xf32>
    %1438 = arith.addf %1432, %1437 : vector<8x128xf32>
    %c219 = arith.constant 219 : index
    %1439 = memref.load %arg1[%c219] : memref<312xf32, #tpu.memory_space<smem>>
    %c6_536 = arith.constant 6 : index
    %c1_537 = arith.constant 1 : index
    %c0_538 = arith.constant 0 : index
    %1440 = vector.load %arg5[%c6_536, %c1_537, %c0_538] : memref<8x10x128xf32, #tpu.memory_space<vmem>>, vector<1x8x128xf32>
    %1441 = vector.shape_cast %1440 : vector<1x8x128xf32> to vector<8x128xf32>
    %1442 = vector.broadcast %1439 : f32 to vector<8x128xf32>
    %1443 = arith.mulf %1441, %1442 : vector<8x128xf32>
    %1444 = arith.addf %1438, %1443 : vector<8x128xf32>
    %c220 = arith.constant 220 : index
    %1445 = memref.load %arg1[%c220] : memref<312xf32, #tpu.memory_space<smem>>
    %c6_539 = arith.constant 6 : index
    %c2_540 = arith.constant 2 : index
    %c0_541 = arith.constant 0 : index
    %1446 = vector.load %arg5[%c6_539, %c2_540, %c0_541] : memref<8x10x128xf32, #tpu.memory_space<vmem>>, vector<1x8x128xf32>
    %1447 = vector.shape_cast %1446 : vector<1x8x128xf32> to vector<8x128xf32>
    %1448 = vector.broadcast %1445 : f32 to vector<8x128xf32>
    %1449 = arith.mulf %1447, %1448 : vector<8x128xf32>
    %1450 = arith.addf %1444, %1449 : vector<8x128xf32>
    %c221 = arith.constant 221 : index
    %1451 = memref.load %arg1[%c221] : memref<312xf32, #tpu.memory_space<smem>>
    %c7_542 = arith.constant 7 : index
    %c0_543 = arith.constant 0 : index
    %c0_544 = arith.constant 0 : index
    %1452 = vector.load %arg5[%c7_542, %c0_543, %c0_544] : memref<8x10x128xf32, #tpu.memory_space<vmem>>, vector<1x8x128xf32>
    %1453 = vector.shape_cast %1452 : vector<1x8x128xf32> to vector<8x128xf32>
    %1454 = vector.broadcast %1451 : f32 to vector<8x128xf32>
    %1455 = arith.mulf %1453, %1454 : vector<8x128xf32>
    %1456 = arith.addf %1450, %1455 : vector<8x128xf32>
    %c222 = arith.constant 222 : index
    %1457 = memref.load %arg1[%c222] : memref<312xf32, #tpu.memory_space<smem>>
    %c7_545 = arith.constant 7 : index
    %c1_546 = arith.constant 1 : index
    %c0_547 = arith.constant 0 : index
    %1458 = vector.load %arg5[%c7_545, %c1_546, %c0_547] : memref<8x10x128xf32, #tpu.memory_space<vmem>>, vector<1x8x128xf32>
    %1459 = vector.shape_cast %1458 : vector<1x8x128xf32> to vector<8x128xf32>
    %1460 = vector.broadcast %1457 : f32 to vector<8x128xf32>
    %1461 = arith.mulf %1459, %1460 : vector<8x128xf32>
    %1462 = arith.addf %1456, %1461 : vector<8x128xf32>
    %c223 = arith.constant 223 : index
    %1463 = memref.load %arg1[%c223] : memref<312xf32, #tpu.memory_space<smem>>
    %c7_548 = arith.constant 7 : index
    %c2_549 = arith.constant 2 : index
    %c0_550 = arith.constant 0 : index
    %1464 = vector.load %arg5[%c7_548, %c2_549, %c0_550] : memref<8x10x128xf32, #tpu.memory_space<vmem>>, vector<1x8x128xf32>
    %1465 = vector.shape_cast %1464 : vector<1x8x128xf32> to vector<8x128xf32>
    %1466 = vector.broadcast %1463 : f32 to vector<8x128xf32>
    %1467 = arith.mulf %1465, %1466 : vector<8x128xf32>
    %1468 = arith.addf %1462, %1467 : vector<8x128xf32>
    %c300 = arith.constant 300 : index
    %1469 = memref.load %arg1[%c300] : memref<312xf32, #tpu.memory_space<smem>>
    %1470 = vector.broadcast %1469 : f32 to vector<8x128xf32>
    %1471 = arith.addf %1468, %1470 : vector<8x128xf32>
    %1472 = arith.addf %1471, %722 : vector<8x128xf32>
    %c4_551 = arith.constant 4 : index
    %c0_552 = arith.constant 0 : index
    %c0_553 = arith.constant 0 : index
    %1473 = vector.load %arg4[%c4_551, %c0_552, %c0_553] : memref<8x8x128xf32, #tpu.memory_space<vmem>>, vector<1x8x128xf32>
    %1474 = vector.shape_cast %1473 : vector<1x8x128xf32> to vector<8x128xf32>
    %1475 = vector.shape_cast %1472 : vector<8x128xf32> to vector<1x8x128xf32>
    tpu.vector_store %arg4[%c4_551, %c0_552, %c0_553], %1475 {strides = array<i32>} : memref<8x8x128xf32, #tpu.memory_space<vmem>>, vector<1x8x128xf32>,
    %c224 = arith.constant 224 : index
    %1476 = memref.load %arg1[%c224] : memref<312xf32, #tpu.memory_space<smem>>
    %c0_554 = arith.constant 0 : index
    %c0_555 = arith.constant 0 : index
    %c0_556 = arith.constant 0 : index
    %1477 = vector.load %arg5[%c0_554, %c0_555, %c0_556] : memref<8x10x128xf32, #tpu.memory_space<vmem>>, vector<1x8x128xf32>
    %1478 = vector.shape_cast %1477 : vector<1x8x128xf32> to vector<8x128xf32>
    %1479 = vector.broadcast %1476 : f32 to vector<8x128xf32>
    %1480 = arith.mulf %1478, %1479 : vector<8x128xf32>
    %c225 = arith.constant 225 : index
    %1481 = memref.load %arg1[%c225] : memref<312xf32, #tpu.memory_space<smem>>
    %c0_557 = arith.constant 0 : index
    %c1_558 = arith.constant 1 : index
    %c0_559 = arith.constant 0 : index
    %1482 = vector.load %arg5[%c0_557, %c1_558, %c0_559] : memref<8x10x128xf32, #tpu.memory_space<vmem>>, vector<1x8x128xf32>
    %1483 = vector.shape_cast %1482 : vector<1x8x128xf32> to vector<8x128xf32>
    %1484 = vector.broadcast %1481 : f32 to vector<8x128xf32>
    %1485 = arith.mulf %1483, %1484 : vector<8x128xf32>
    %1486 = arith.addf %1480, %1485 : vector<8x128xf32>
    %c226 = arith.constant 226 : index
    %1487 = memref.load %arg1[%c226] : memref<312xf32, #tpu.memory_space<smem>>
    %c0_560 = arith.constant 0 : index
    %c2_561 = arith.constant 2 : index
    %c0_562 = arith.constant 0 : index
    %1488 = vector.load %arg5[%c0_560, %c2_561, %c0_562] : memref<8x10x128xf32, #tpu.memory_space<vmem>>, vector<1x8x128xf32>
    %1489 = vector.shape_cast %1488 : vector<1x8x128xf32> to vector<8x128xf32>
    %1490 = vector.broadcast %1487 : f32 to vector<8x128xf32>
    %1491 = arith.mulf %1489, %1490 : vector<8x128xf32>
    %1492 = arith.addf %1486, %1491 : vector<8x128xf32>
    %c227 = arith.constant 227 : index
    %1493 = memref.load %arg1[%c227] : memref<312xf32, #tpu.memory_space<smem>>
    %c1_563 = arith.constant 1 : index
    %c0_564 = arith.constant 0 : index
    %c0_565 = arith.constant 0 : index
    %1494 = vector.load %arg5[%c1_563, %c0_564, %c0_565] : memref<8x10x128xf32, #tpu.memory_space<vmem>>, vector<1x8x128xf32>
    %1495 = vector.shape_cast %1494 : vector<1x8x128xf32> to vector<8x128xf32>
    %1496 = vector.broadcast %1493 : f32 to vector<8x128xf32>
    %1497 = arith.mulf %1495, %1496 : vector<8x128xf32>
    %1498 = arith.addf %1492, %1497 : vector<8x128xf32>
    %c228 = arith.constant 228 : index
    %1499 = memref.load %arg1[%c228] : memref<312xf32, #tpu.memory_space<smem>>
    %c1_566 = arith.constant 1 : index
    %c1_567 = arith.constant 1 : index
    %c0_568 = arith.constant 0 : index
    %1500 = vector.load %arg5[%c1_566, %c1_567, %c0_568] : memref<8x10x128xf32, #tpu.memory_space<vmem>>, vector<1x8x128xf32>
    %1501 = vector.shape_cast %1500 : vector<1x8x128xf32> to vector<8x128xf32>
    %1502 = vector.broadcast %1499 : f32 to vector<8x128xf32>
    %1503 = arith.mulf %1501, %1502 : vector<8x128xf32>
    %1504 = arith.addf %1498, %1503 : vector<8x128xf32>
    %c229 = arith.constant 229 : index
    %1505 = memref.load %arg1[%c229] : memref<312xf32, #tpu.memory_space<smem>>
    %c1_569 = arith.constant 1 : index
    %c2_570 = arith.constant 2 : index
    %c0_571 = arith.constant 0 : index
    %1506 = vector.load %arg5[%c1_569, %c2_570, %c0_571] : memref<8x10x128xf32, #tpu.memory_space<vmem>>, vector<1x8x128xf32>
    %1507 = vector.shape_cast %1506 : vector<1x8x128xf32> to vector<8x128xf32>
    %1508 = vector.broadcast %1505 : f32 to vector<8x128xf32>
    %1509 = arith.mulf %1507, %1508 : vector<8x128xf32>
    %1510 = arith.addf %1504, %1509 : vector<8x128xf32>
    %c230 = arith.constant 230 : index
    %1511 = memref.load %arg1[%c230] : memref<312xf32, #tpu.memory_space<smem>>
    %c2_572 = arith.constant 2 : index
    %c0_573 = arith.constant 0 : index
    %c0_574 = arith.constant 0 : index
    %1512 = vector.load %arg5[%c2_572, %c0_573, %c0_574] : memref<8x10x128xf32, #tpu.memory_space<vmem>>, vector<1x8x128xf32>
    %1513 = vector.shape_cast %1512 : vector<1x8x128xf32> to vector<8x128xf32>
    %1514 = vector.broadcast %1511 : f32 to vector<8x128xf32>
    %1515 = arith.mulf %1513, %1514 : vector<8x128xf32>
    %1516 = arith.addf %1510, %1515 : vector<8x128xf32>
    %c231 = arith.constant 231 : index
    %1517 = memref.load %arg1[%c231] : memref<312xf32, #tpu.memory_space<smem>>
    %c2_575 = arith.constant 2 : index
    %c1_576 = arith.constant 1 : index
    %c0_577 = arith.constant 0 : index
    %1518 = vector.load %arg5[%c2_575, %c1_576, %c0_577] : memref<8x10x128xf32, #tpu.memory_space<vmem>>, vector<1x8x128xf32>
    %1519 = vector.shape_cast %1518 : vector<1x8x128xf32> to vector<8x128xf32>
    %1520 = vector.broadcast %1517 : f32 to vector<8x128xf32>
    %1521 = arith.mulf %1519, %1520 : vector<8x128xf32>
    %1522 = arith.addf %1516, %1521 : vector<8x128xf32>
    %c232 = arith.constant 232 : index
    %1523 = memref.load %arg1[%c232] : memref<312xf32, #tpu.memory_space<smem>>
    %c2_578 = arith.constant 2 : index
    %c2_579 = arith.constant 2 : index
    %c0_580 = arith.constant 0 : index
    %1524 = vector.load %arg5[%c2_578, %c2_579, %c0_580] : memref<8x10x128xf32, #tpu.memory_space<vmem>>, vector<1x8x128xf32>
    %1525 = vector.shape_cast %1524 : vector<1x8x128xf32> to vector<8x128xf32>
    %1526 = vector.broadcast %1523 : f32 to vector<8x128xf32>
    %1527 = arith.mulf %1525, %1526 : vector<8x128xf32>
    %1528 = arith.addf %1522, %1527 : vector<8x128xf32>
    %c233 = arith.constant 233 : index
    %1529 = memref.load %arg1[%c233] : memref<312xf32, #tpu.memory_space<smem>>
    %c3_581 = arith.constant 3 : index
    %c0_582 = arith.constant 0 : index
    %c0_583 = arith.constant 0 : index
    %1530 = vector.load %arg5[%c3_581, %c0_582, %c0_583] : memref<8x10x128xf32, #tpu.memory_space<vmem>>, vector<1x8x128xf32>
    %1531 = vector.shape_cast %1530 : vector<1x8x128xf32> to vector<8x128xf32>
    %1532 = vector.broadcast %1529 : f32 to vector<8x128xf32>
    %1533 = arith.mulf %1531, %1532 : vector<8x128xf32>
    %1534 = arith.addf %1528, %1533 : vector<8x128xf32>
    %c234 = arith.constant 234 : index
    %1535 = memref.load %arg1[%c234] : memref<312xf32, #tpu.memory_space<smem>>
    %c3_584 = arith.constant 3 : index
    %c1_585 = arith.constant 1 : index
    %c0_586 = arith.constant 0 : index
    %1536 = vector.load %arg5[%c3_584, %c1_585, %c0_586] : memref<8x10x128xf32, #tpu.memory_space<vmem>>, vector<1x8x128xf32>
    %1537 = vector.shape_cast %1536 : vector<1x8x128xf32> to vector<8x128xf32>
    %1538 = vector.broadcast %1535 : f32 to vector<8x128xf32>
    %1539 = arith.mulf %1537, %1538 : vector<8x128xf32>
    %1540 = arith.addf %1534, %1539 : vector<8x128xf32>
    %c235 = arith.constant 235 : index
    %1541 = memref.load %arg1[%c235] : memref<312xf32, #tpu.memory_space<smem>>
    %c3_587 = arith.constant 3 : index
    %c2_588 = arith.constant 2 : index
    %c0_589 = arith.constant 0 : index
    %1542 = vector.load %arg5[%c3_587, %c2_588, %c0_589] : memref<8x10x128xf32, #tpu.memory_space<vmem>>, vector<1x8x128xf32>
    %1543 = vector.shape_cast %1542 : vector<1x8x128xf32> to vector<8x128xf32>
    %1544 = vector.broadcast %1541 : f32 to vector<8x128xf32>
    %1545 = arith.mulf %1543, %1544 : vector<8x128xf32>
    %1546 = arith.addf %1540, %1545 : vector<8x128xf32>
    %c236 = arith.constant 236 : index
    %1547 = memref.load %arg1[%c236] : memref<312xf32, #tpu.memory_space<smem>>
    %c4_590 = arith.constant 4 : index
    %c0_591 = arith.constant 0 : index
    %c0_592 = arith.constant 0 : index
    %1548 = vector.load %arg5[%c4_590, %c0_591, %c0_592] : memref<8x10x128xf32, #tpu.memory_space<vmem>>, vector<1x8x128xf32>
    %1549 = vector.shape_cast %1548 : vector<1x8x128xf32> to vector<8x128xf32>
    %1550 = vector.broadcast %1547 : f32 to vector<8x128xf32>
    %1551 = arith.mulf %1549, %1550 : vector<8x128xf32>
    %1552 = arith.addf %1546, %1551 : vector<8x128xf32>
    %c237 = arith.constant 237 : index
    %1553 = memref.load %arg1[%c237] : memref<312xf32, #tpu.memory_space<smem>>
    %c4_593 = arith.constant 4 : index
    %c1_594 = arith.constant 1 : index
    %c0_595 = arith.constant 0 : index
    %1554 = vector.load %arg5[%c4_593, %c1_594, %c0_595] : memref<8x10x128xf32, #tpu.memory_space<vmem>>, vector<1x8x128xf32>
    %1555 = vector.shape_cast %1554 : vector<1x8x128xf32> to vector<8x128xf32>
    %1556 = vector.broadcast %1553 : f32 to vector<8x128xf32>
    %1557 = arith.mulf %1555, %1556 : vector<8x128xf32>
    %1558 = arith.addf %1552, %1557 : vector<8x128xf32>
    %c238 = arith.constant 238 : index
    %1559 = memref.load %arg1[%c238] : memref<312xf32, #tpu.memory_space<smem>>
    %c4_596 = arith.constant 4 : index
    %c2_597 = arith.constant 2 : index
    %c0_598 = arith.constant 0 : index
    %1560 = vector.load %arg5[%c4_596, %c2_597, %c0_598] : memref<8x10x128xf32, #tpu.memory_space<vmem>>, vector<1x8x128xf32>
    %1561 = vector.shape_cast %1560 : vector<1x8x128xf32> to vector<8x128xf32>
    %1562 = vector.broadcast %1559 : f32 to vector<8x128xf32>
    %1563 = arith.mulf %1561, %1562 : vector<8x128xf32>
    %1564 = arith.addf %1558, %1563 : vector<8x128xf32>
    %c239 = arith.constant 239 : index
    %1565 = memref.load %arg1[%c239] : memref<312xf32, #tpu.memory_space<smem>>
    %c5_599 = arith.constant 5 : index
    %c0_600 = arith.constant 0 : index
    %c0_601 = arith.constant 0 : index
    %1566 = vector.load %arg5[%c5_599, %c0_600, %c0_601] : memref<8x10x128xf32, #tpu.memory_space<vmem>>, vector<1x8x128xf32>
    %1567 = vector.shape_cast %1566 : vector<1x8x128xf32> to vector<8x128xf32>
    %1568 = vector.broadcast %1565 : f32 to vector<8x128xf32>
    %1569 = arith.mulf %1567, %1568 : vector<8x128xf32>
    %1570 = arith.addf %1564, %1569 : vector<8x128xf32>
    %c240 = arith.constant 240 : index
    %1571 = memref.load %arg1[%c240] : memref<312xf32, #tpu.memory_space<smem>>
    %c5_602 = arith.constant 5 : index
    %c1_603 = arith.constant 1 : index
    %c0_604 = arith.constant 0 : index
    %1572 = vector.load %arg5[%c5_602, %c1_603, %c0_604] : memref<8x10x128xf32, #tpu.memory_space<vmem>>, vector<1x8x128xf32>
    %1573 = vector.shape_cast %1572 : vector<1x8x128xf32> to vector<8x128xf32>
    %1574 = vector.broadcast %1571 : f32 to vector<8x128xf32>
    %1575 = arith.mulf %1573, %1574 : vector<8x128xf32>
    %1576 = arith.addf %1570, %1575 : vector<8x128xf32>
    %c241 = arith.constant 241 : index
    %1577 = memref.load %arg1[%c241] : memref<312xf32, #tpu.memory_space<smem>>
    %c5_605 = arith.constant 5 : index
    %c2_606 = arith.constant 2 : index
    %c0_607 = arith.constant 0 : index
    %1578 = vector.load %arg5[%c5_605, %c2_606, %c0_607] : memref<8x10x128xf32, #tpu.memory_space<vmem>>, vector<1x8x128xf32>
    %1579 = vector.shape_cast %1578 : vector<1x8x128xf32> to vector<8x128xf32>
    %1580 = vector.broadcast %1577 : f32 to vector<8x128xf32>
    %1581 = arith.mulf %1579, %1580 : vector<8x128xf32>
    %1582 = arith.addf %1576, %1581 : vector<8x128xf32>
    %c242 = arith.constant 242 : index
    %1583 = memref.load %arg1[%c242] : memref<312xf32, #tpu.memory_space<smem>>
    %c6_608 = arith.constant 6 : index
    %c0_609 = arith.constant 0 : index
    %c0_610 = arith.constant 0 : index
    %1584 = vector.load %arg5[%c6_608, %c0_609, %c0_610] : memref<8x10x128xf32, #tpu.memory_space<vmem>>, vector<1x8x128xf32>
    %1585 = vector.shape_cast %1584 : vector<1x8x128xf32> to vector<8x128xf32>
    %1586 = vector.broadcast %1583 : f32 to vector<8x128xf32>
    %1587 = arith.mulf %1585, %1586 : vector<8x128xf32>
    %1588 = arith.addf %1582, %1587 : vector<8x128xf32>
    %c243 = arith.constant 243 : index
    %1589 = memref.load %arg1[%c243] : memref<312xf32, #tpu.memory_space<smem>>
    %c6_611 = arith.constant 6 : index
    %c1_612 = arith.constant 1 : index
    %c0_613 = arith.constant 0 : index
    %1590 = vector.load %arg5[%c6_611, %c1_612, %c0_613] : memref<8x10x128xf32, #tpu.memory_space<vmem>>, vector<1x8x128xf32>
    %1591 = vector.shape_cast %1590 : vector<1x8x128xf32> to vector<8x128xf32>
    %1592 = vector.broadcast %1589 : f32 to vector<8x128xf32>
    %1593 = arith.mulf %1591, %1592 : vector<8x128xf32>
    %1594 = arith.addf %1588, %1593 : vector<8x128xf32>
    %c244 = arith.constant 244 : index
    %1595 = memref.load %arg1[%c244] : memref<312xf32, #tpu.memory_space<smem>>
    %c6_614 = arith.constant 6 : index
    %c2_615 = arith.constant 2 : index
    %c0_616 = arith.constant 0 : index
    %1596 = vector.load %arg5[%c6_614, %c2_615, %c0_616] : memref<8x10x128xf32, #tpu.memory_space<vmem>>, vector<1x8x128xf32>
    %1597 = vector.shape_cast %1596 : vector<1x8x128xf32> to vector<8x128xf32>
    %1598 = vector.broadcast %1595 : f32 to vector<8x128xf32>
    %1599 = arith.mulf %1597, %1598 : vector<8x128xf32>
    %1600 = arith.addf %1594, %1599 : vector<8x128xf32>
    %c245 = arith.constant 245 : index
    %1601 = memref.load %arg1[%c245] : memref<312xf32, #tpu.memory_space<smem>>
    %c7_617 = arith.constant 7 : index
    %c0_618 = arith.constant 0 : index
    %c0_619 = arith.constant 0 : index
    %1602 = vector.load %arg5[%c7_617, %c0_618, %c0_619] : memref<8x10x128xf32, #tpu.memory_space<vmem>>, vector<1x8x128xf32>
    %1603 = vector.shape_cast %1602 : vector<1x8x128xf32> to vector<8x128xf32>
    %1604 = vector.broadcast %1601 : f32 to vector<8x128xf32>
    %1605 = arith.mulf %1603, %1604 : vector<8x128xf32>
    %1606 = arith.addf %1600, %1605 : vector<8x128xf32>
    %c246 = arith.constant 246 : index
    %1607 = memref.load %arg1[%c246] : memref<312xf32, #tpu.memory_space<smem>>
    %c7_620 = arith.constant 7 : index
    %c1_621 = arith.constant 1 : index
    %c0_622 = arith.constant 0 : index
    %1608 = vector.load %arg5[%c7_620, %c1_621, %c0_622] : memref<8x10x128xf32, #tpu.memory_space<vmem>>, vector<1x8x128xf32>
    %1609 = vector.shape_cast %1608 : vector<1x8x128xf32> to vector<8x128xf32>
    %1610 = vector.broadcast %1607 : f32 to vector<8x128xf32>
    %1611 = arith.mulf %1609, %1610 : vector<8x128xf32>
    %1612 = arith.addf %1606, %1611 : vector<8x128xf32>
    %c247 = arith.constant 247 : index
    %1613 = memref.load %arg1[%c247] : memref<312xf32, #tpu.memory_space<smem>>
    %c7_623 = arith.constant 7 : index
    %c2_624 = arith.constant 2 : index
    %c0_625 = arith.constant 0 : index
    %1614 = vector.load %arg5[%c7_623, %c2_624, %c0_625] : memref<8x10x128xf32, #tpu.memory_space<vmem>>, vector<1x8x128xf32>
    %1615 = vector.shape_cast %1614 : vector<1x8x128xf32> to vector<8x128xf32>
    %1616 = vector.broadcast %1613 : f32 to vector<8x128xf32>
    %1617 = arith.mulf %1615, %1616 : vector<8x128xf32>
    %1618 = arith.addf %1612, %1617 : vector<8x128xf32>
    %c301 = arith.constant 301 : index
    %1619 = memref.load %arg1[%c301] : memref<312xf32, #tpu.memory_space<smem>>
    %1620 = vector.broadcast %1619 : f32 to vector<8x128xf32>
    %1621 = arith.addf %1618, %1620 : vector<8x128xf32>
    %1622 = arith.addf %1621, %727 : vector<8x128xf32>
    %c5_626 = arith.constant 5 : index
    %c0_627 = arith.constant 0 : index
    %c0_628 = arith.constant 0 : index
    %1623 = vector.load %arg4[%c5_626, %c0_627, %c0_628] : memref<8x8x128xf32, #tpu.memory_space<vmem>>, vector<1x8x128xf32>
    %1624 = vector.shape_cast %1623 : vector<1x8x128xf32> to vector<8x128xf32>
    %1625 = vector.shape_cast %1622 : vector<8x128xf32> to vector<1x8x128xf32>
    tpu.vector_store %arg4[%c5_626, %c0_627, %c0_628], %1625 {strides = array<i32>} : memref<8x8x128xf32, #tpu.memory_space<vmem>>, vector<1x8x128xf32>,
    %c248 = arith.constant 248 : index
    %1626 = memref.load %arg1[%c248] : memref<312xf32, #tpu.memory_space<smem>>
    %c0_629 = arith.constant 0 : index
    %c0_630 = arith.constant 0 : index
    %c0_631 = arith.constant 0 : index
    %1627 = vector.load %arg5[%c0_629, %c0_630, %c0_631] : memref<8x10x128xf32, #tpu.memory_space<vmem>>, vector<1x8x128xf32>
    %1628 = vector.shape_cast %1627 : vector<1x8x128xf32> to vector<8x128xf32>
    %1629 = vector.broadcast %1626 : f32 to vector<8x128xf32>
    %1630 = arith.mulf %1628, %1629 : vector<8x128xf32>
    %c249 = arith.constant 249 : index
    %1631 = memref.load %arg1[%c249] : memref<312xf32, #tpu.memory_space<smem>>
    %c0_632 = arith.constant 0 : index
    %c1_633 = arith.constant 1 : index
    %c0_634 = arith.constant 0 : index
    %1632 = vector.load %arg5[%c0_632, %c1_633, %c0_634] : memref<8x10x128xf32, #tpu.memory_space<vmem>>, vector<1x8x128xf32>
    %1633 = vector.shape_cast %1632 : vector<1x8x128xf32> to vector<8x128xf32>
    %1634 = vector.broadcast %1631 : f32 to vector<8x128xf32>
    %1635 = arith.mulf %1633, %1634 : vector<8x128xf32>
    %1636 = arith.addf %1630, %1635 : vector<8x128xf32>
    %c250 = arith.constant 250 : index
    %1637 = memref.load %arg1[%c250] : memref<312xf32, #tpu.memory_space<smem>>
    %c0_635 = arith.constant 0 : index
    %c2_636 = arith.constant 2 : index
    %c0_637 = arith.constant 0 : index
    %1638 = vector.load %arg5[%c0_635, %c2_636, %c0_637] : memref<8x10x128xf32, #tpu.memory_space<vmem>>, vector<1x8x128xf32>
    %1639 = vector.shape_cast %1638 : vector<1x8x128xf32> to vector<8x128xf32>
    %1640 = vector.broadcast %1637 : f32 to vector<8x128xf32>
    %1641 = arith.mulf %1639, %1640 : vector<8x128xf32>
    %1642 = arith.addf %1636, %1641 : vector<8x128xf32>
    %c251 = arith.constant 251 : index
    %1643 = memref.load %arg1[%c251] : memref<312xf32, #tpu.memory_space<smem>>
    %c1_638 = arith.constant 1 : index
    %c0_639 = arith.constant 0 : index
    %c0_640 = arith.constant 0 : index
    %1644 = vector.load %arg5[%c1_638, %c0_639, %c0_640] : memref<8x10x128xf32, #tpu.memory_space<vmem>>, vector<1x8x128xf32>
    %1645 = vector.shape_cast %1644 : vector<1x8x128xf32> to vector<8x128xf32>
    %1646 = vector.broadcast %1643 : f32 to vector<8x128xf32>
    %1647 = arith.mulf %1645, %1646 : vector<8x128xf32>
    %1648 = arith.addf %1642, %1647 : vector<8x128xf32>
    %c252 = arith.constant 252 : index
    %1649 = memref.load %arg1[%c252] : memref<312xf32, #tpu.memory_space<smem>>
    %c1_641 = arith.constant 1 : index
    %c1_642 = arith.constant 1 : index
    %c0_643 = arith.constant 0 : index
    %1650 = vector.load %arg5[%c1_641, %c1_642, %c0_643] : memref<8x10x128xf32, #tpu.memory_space<vmem>>, vector<1x8x128xf32>
    %1651 = vector.shape_cast %1650 : vector<1x8x128xf32> to vector<8x128xf32>
    %1652 = vector.broadcast %1649 : f32 to vector<8x128xf32>
    %1653 = arith.mulf %1651, %1652 : vector<8x128xf32>
    %1654 = arith.addf %1648, %1653 : vector<8x128xf32>
    %c253 = arith.constant 253 : index
    %1655 = memref.load %arg1[%c253] : memref<312xf32, #tpu.memory_space<smem>>
    %c1_644 = arith.constant 1 : index
    %c2_645 = arith.constant 2 : index
    %c0_646 = arith.constant 0 : index
    %1656 = vector.load %arg5[%c1_644, %c2_645, %c0_646] : memref<8x10x128xf32, #tpu.memory_space<vmem>>, vector<1x8x128xf32>
    %1657 = vector.shape_cast %1656 : vector<1x8x128xf32> to vector<8x128xf32>
    %1658 = vector.broadcast %1655 : f32 to vector<8x128xf32>
    %1659 = arith.mulf %1657, %1658 : vector<8x128xf32>
    %1660 = arith.addf %1654, %1659 : vector<8x128xf32>
    %c254 = arith.constant 254 : index
    %1661 = memref.load %arg1[%c254] : memref<312xf32, #tpu.memory_space<smem>>
    %c2_647 = arith.constant 2 : index
    %c0_648 = arith.constant 0 : index
    %c0_649 = arith.constant 0 : index
    %1662 = vector.load %arg5[%c2_647, %c0_648, %c0_649] : memref<8x10x128xf32, #tpu.memory_space<vmem>>, vector<1x8x128xf32>
    %1663 = vector.shape_cast %1662 : vector<1x8x128xf32> to vector<8x128xf32>
    %1664 = vector.broadcast %1661 : f32 to vector<8x128xf32>
    %1665 = arith.mulf %1663, %1664 : vector<8x128xf32>
    %1666 = arith.addf %1660, %1665 : vector<8x128xf32>
    %c255 = arith.constant 255 : index
    %1667 = memref.load %arg1[%c255] : memref<312xf32, #tpu.memory_space<smem>>
    %c2_650 = arith.constant 2 : index
    %c1_651 = arith.constant 1 : index
    %c0_652 = arith.constant 0 : index
    %1668 = vector.load %arg5[%c2_650, %c1_651, %c0_652] : memref<8x10x128xf32, #tpu.memory_space<vmem>>, vector<1x8x128xf32>
    %1669 = vector.shape_cast %1668 : vector<1x8x128xf32> to vector<8x128xf32>
    %1670 = vector.broadcast %1667 : f32 to vector<8x128xf32>
    %1671 = arith.mulf %1669, %1670 : vector<8x128xf32>
    %1672 = arith.addf %1666, %1671 : vector<8x128xf32>
    %c256 = arith.constant 256 : index
    %1673 = memref.load %arg1[%c256] : memref<312xf32, #tpu.memory_space<smem>>
    %c2_653 = arith.constant 2 : index
    %c2_654 = arith.constant 2 : index
    %c0_655 = arith.constant 0 : index
    %1674 = vector.load %arg5[%c2_653, %c2_654, %c0_655] : memref<8x10x128xf32, #tpu.memory_space<vmem>>, vector<1x8x128xf32>
    %1675 = vector.shape_cast %1674 : vector<1x8x128xf32> to vector<8x128xf32>
    %1676 = vector.broadcast %1673 : f32 to vector<8x128xf32>
    %1677 = arith.mulf %1675, %1676 : vector<8x128xf32>
    %1678 = arith.addf %1672, %1677 : vector<8x128xf32>
    %c257 = arith.constant 257 : index
    %1679 = memref.load %arg1[%c257] : memref<312xf32, #tpu.memory_space<smem>>
    %c3_656 = arith.constant 3 : index
    %c0_657 = arith.constant 0 : index
    %c0_658 = arith.constant 0 : index
    %1680 = vector.load %arg5[%c3_656, %c0_657, %c0_658] : memref<8x10x128xf32, #tpu.memory_space<vmem>>, vector<1x8x128xf32>
    %1681 = vector.shape_cast %1680 : vector<1x8x128xf32> to vector<8x128xf32>
    %1682 = vector.broadcast %1679 : f32 to vector<8x128xf32>
    %1683 = arith.mulf %1681, %1682 : vector<8x128xf32>
    %1684 = arith.addf %1678, %1683 : vector<8x128xf32>
    %c258 = arith.constant 258 : index
    %1685 = memref.load %arg1[%c258] : memref<312xf32, #tpu.memory_space<smem>>
    %c3_659 = arith.constant 3 : index
    %c1_660 = arith.constant 1 : index
    %c0_661 = arith.constant 0 : index
    %1686 = vector.load %arg5[%c3_659, %c1_660, %c0_661] : memref<8x10x128xf32, #tpu.memory_space<vmem>>, vector<1x8x128xf32>
    %1687 = vector.shape_cast %1686 : vector<1x8x128xf32> to vector<8x128xf32>
    %1688 = vector.broadcast %1685 : f32 to vector<8x128xf32>
    %1689 = arith.mulf %1687, %1688 : vector<8x128xf32>
    %1690 = arith.addf %1684, %1689 : vector<8x128xf32>
    %c259 = arith.constant 259 : index
    %1691 = memref.load %arg1[%c259] : memref<312xf32, #tpu.memory_space<smem>>
    %c3_662 = arith.constant 3 : index
    %c2_663 = arith.constant 2 : index
    %c0_664 = arith.constant 0 : index
    %1692 = vector.load %arg5[%c3_662, %c2_663, %c0_664] : memref<8x10x128xf32, #tpu.memory_space<vmem>>, vector<1x8x128xf32>
    %1693 = vector.shape_cast %1692 : vector<1x8x128xf32> to vector<8x128xf32>
    %1694 = vector.broadcast %1691 : f32 to vector<8x128xf32>
    %1695 = arith.mulf %1693, %1694 : vector<8x128xf32>
    %1696 = arith.addf %1690, %1695 : vector<8x128xf32>
    %c260 = arith.constant 260 : index
    %1697 = memref.load %arg1[%c260] : memref<312xf32, #tpu.memory_space<smem>>
    %c4_665 = arith.constant 4 : index
    %c0_666 = arith.constant 0 : index
    %c0_667 = arith.constant 0 : index
    %1698 = vector.load %arg5[%c4_665, %c0_666, %c0_667] : memref<8x10x128xf32, #tpu.memory_space<vmem>>, vector<1x8x128xf32>
    %1699 = vector.shape_cast %1698 : vector<1x8x128xf32> to vector<8x128xf32>
    %1700 = vector.broadcast %1697 : f32 to vector<8x128xf32>
    %1701 = arith.mulf %1699, %1700 : vector<8x128xf32>
    %1702 = arith.addf %1696, %1701 : vector<8x128xf32>
    %c261 = arith.constant 261 : index
    %1703 = memref.load %arg1[%c261] : memref<312xf32, #tpu.memory_space<smem>>
    %c4_668 = arith.constant 4 : index
    %c1_669 = arith.constant 1 : index
    %c0_670 = arith.constant 0 : index
    %1704 = vector.load %arg5[%c4_668, %c1_669, %c0_670] : memref<8x10x128xf32, #tpu.memory_space<vmem>>, vector<1x8x128xf32>
    %1705 = vector.shape_cast %1704 : vector<1x8x128xf32> to vector<8x128xf32>
    %1706 = vector.broadcast %1703 : f32 to vector<8x128xf32>
    %1707 = arith.mulf %1705, %1706 : vector<8x128xf32>
    %1708 = arith.addf %1702, %1707 : vector<8x128xf32>
    %c262 = arith.constant 262 : index
    %1709 = memref.load %arg1[%c262] : memref<312xf32, #tpu.memory_space<smem>>
    %c4_671 = arith.constant 4 : index
    %c2_672 = arith.constant 2 : index
    %c0_673 = arith.constant 0 : index
    %1710 = vector.load %arg5[%c4_671, %c2_672, %c0_673] : memref<8x10x128xf32, #tpu.memory_space<vmem>>, vector<1x8x128xf32>
    %1711 = vector.shape_cast %1710 : vector<1x8x128xf32> to vector<8x128xf32>
    %1712 = vector.broadcast %1709 : f32 to vector<8x128xf32>
    %1713 = arith.mulf %1711, %1712 : vector<8x128xf32>
    %1714 = arith.addf %1708, %1713 : vector<8x128xf32>
    %c263 = arith.constant 263 : index
    %1715 = memref.load %arg1[%c263] : memref<312xf32, #tpu.memory_space<smem>>
    %c5_674 = arith.constant 5 : index
    %c0_675 = arith.constant 0 : index
    %c0_676 = arith.constant 0 : index
    %1716 = vector.load %arg5[%c5_674, %c0_675, %c0_676] : memref<8x10x128xf32, #tpu.memory_space<vmem>>, vector<1x8x128xf32>
    %1717 = vector.shape_cast %1716 : vector<1x8x128xf32> to vector<8x128xf32>
    %1718 = vector.broadcast %1715 : f32 to vector<8x128xf32>
    %1719 = arith.mulf %1717, %1718 : vector<8x128xf32>
    %1720 = arith.addf %1714, %1719 : vector<8x128xf32>
    %c264 = arith.constant 264 : index
    %1721 = memref.load %arg1[%c264] : memref<312xf32, #tpu.memory_space<smem>>
    %c5_677 = arith.constant 5 : index
    %c1_678 = arith.constant 1 : index
    %c0_679 = arith.constant 0 : index
    %1722 = vector.load %arg5[%c5_677, %c1_678, %c0_679] : memref<8x10x128xf32, #tpu.memory_space<vmem>>, vector<1x8x128xf32>
    %1723 = vector.shape_cast %1722 : vector<1x8x128xf32> to vector<8x128xf32>
    %1724 = vector.broadcast %1721 : f32 to vector<8x128xf32>
    %1725 = arith.mulf %1723, %1724 : vector<8x128xf32>
    %1726 = arith.addf %1720, %1725 : vector<8x128xf32>
    %c265 = arith.constant 265 : index
    %1727 = memref.load %arg1[%c265] : memref<312xf32, #tpu.memory_space<smem>>
    %c5_680 = arith.constant 5 : index
    %c2_681 = arith.constant 2 : index
    %c0_682 = arith.constant 0 : index
    %1728 = vector.load %arg5[%c5_680, %c2_681, %c0_682] : memref<8x10x128xf32, #tpu.memory_space<vmem>>, vector<1x8x128xf32>
    %1729 = vector.shape_cast %1728 : vector<1x8x128xf32> to vector<8x128xf32>
    %1730 = vector.broadcast %1727 : f32 to vector<8x128xf32>
    %1731 = arith.mulf %1729, %1730 : vector<8x128xf32>
    %1732 = arith.addf %1726, %1731 : vector<8x128xf32>
    %c266 = arith.constant 266 : index
    %1733 = memref.load %arg1[%c266] : memref<312xf32, #tpu.memory_space<smem>>
    %c6_683 = arith.constant 6 : index
    %c0_684 = arith.constant 0 : index
    %c0_685 = arith.constant 0 : index
    %1734 = vector.load %arg5[%c6_683, %c0_684, %c0_685] : memref<8x10x128xf32, #tpu.memory_space<vmem>>, vector<1x8x128xf32>
    %1735 = vector.shape_cast %1734 : vector<1x8x128xf32> to vector<8x128xf32>
    %1736 = vector.broadcast %1733 : f32 to vector<8x128xf32>
    %1737 = arith.mulf %1735, %1736 : vector<8x128xf32>
    %1738 = arith.addf %1732, %1737 : vector<8x128xf32>
    %c267 = arith.constant 267 : index
    %1739 = memref.load %arg1[%c267] : memref<312xf32, #tpu.memory_space<smem>>
    %c6_686 = arith.constant 6 : index
    %c1_687 = arith.constant 1 : index
    %c0_688 = arith.constant 0 : index
    %1740 = vector.load %arg5[%c6_686, %c1_687, %c0_688] : memref<8x10x128xf32, #tpu.memory_space<vmem>>, vector<1x8x128xf32>
    %1741 = vector.shape_cast %1740 : vector<1x8x128xf32> to vector<8x128xf32>
    %1742 = vector.broadcast %1739 : f32 to vector<8x128xf32>
    %1743 = arith.mulf %1741, %1742 : vector<8x128xf32>
    %1744 = arith.addf %1738, %1743 : vector<8x128xf32>
    %c268 = arith.constant 268 : index
    %1745 = memref.load %arg1[%c268] : memref<312xf32, #tpu.memory_space<smem>>
    %c6_689 = arith.constant 6 : index
    %c2_690 = arith.constant 2 : index
    %c0_691 = arith.constant 0 : index
    %1746 = vector.load %arg5[%c6_689, %c2_690, %c0_691] : memref<8x10x128xf32, #tpu.memory_space<vmem>>, vector<1x8x128xf32>
    %1747 = vector.shape_cast %1746 : vector<1x8x128xf32> to vector<8x128xf32>
    %1748 = vector.broadcast %1745 : f32 to vector<8x128xf32>
    %1749 = arith.mulf %1747, %1748 : vector<8x128xf32>
    %1750 = arith.addf %1744, %1749 : vector<8x128xf32>
    %c269 = arith.constant 269 : index
    %1751 = memref.load %arg1[%c269] : memref<312xf32, #tpu.memory_space<smem>>
    %c7_692 = arith.constant 7 : index
    %c0_693 = arith.constant 0 : index
    %c0_694 = arith.constant 0 : index
    %1752 = vector.load %arg5[%c7_692, %c0_693, %c0_694] : memref<8x10x128xf32, #tpu.memory_space<vmem>>, vector<1x8x128xf32>
    %1753 = vector.shape_cast %1752 : vector<1x8x128xf32> to vector<8x128xf32>
    %1754 = vector.broadcast %1751 : f32 to vector<8x128xf32>
    %1755 = arith.mulf %1753, %1754 : vector<8x128xf32>
    %1756 = arith.addf %1750, %1755 : vector<8x128xf32>
    %c270 = arith.constant 270 : index
    %1757 = memref.load %arg1[%c270] : memref<312xf32, #tpu.memory_space<smem>>
    %c7_695 = arith.constant 7 : index
    %c1_696 = arith.constant 1 : index
    %c0_697 = arith.constant 0 : index
    %1758 = vector.load %arg5[%c7_695, %c1_696, %c0_697] : memref<8x10x128xf32, #tpu.memory_space<vmem>>, vector<1x8x128xf32>
    %1759 = vector.shape_cast %1758 : vector<1x8x128xf32> to vector<8x128xf32>
    %1760 = vector.broadcast %1757 : f32 to vector<8x128xf32>
    %1761 = arith.mulf %1759, %1760 : vector<8x128xf32>
    %1762 = arith.addf %1756, %1761 : vector<8x128xf32>
    %c271 = arith.constant 271 : index
    %1763 = memref.load %arg1[%c271] : memref<312xf32, #tpu.memory_space<smem>>
    %c7_698 = arith.constant 7 : index
    %c2_699 = arith.constant 2 : index
    %c0_700 = arith.constant 0 : index
    %1764 = vector.load %arg5[%c7_698, %c2_699, %c0_700] : memref<8x10x128xf32, #tpu.memory_space<vmem>>, vector<1x8x128xf32>
    %1765 = vector.shape_cast %1764 : vector<1x8x128xf32> to vector<8x128xf32>
    %1766 = vector.broadcast %1763 : f32 to vector<8x128xf32>
    %1767 = arith.mulf %1765, %1766 : vector<8x128xf32>
    %1768 = arith.addf %1762, %1767 : vector<8x128xf32>
    %c302 = arith.constant 302 : index
    %1769 = memref.load %arg1[%c302] : memref<312xf32, #tpu.memory_space<smem>>
    %1770 = vector.broadcast %1769 : f32 to vector<8x128xf32>
    %1771 = arith.addf %1768, %1770 : vector<8x128xf32>
    %c6_701 = arith.constant 6 : index
    %c0_702 = arith.constant 0 : index
    %c0_703 = arith.constant 0 : index
    %1772 = vector.load %arg4[%c6_701, %c0_702, %c0_703] : memref<8x8x128xf32, #tpu.memory_space<vmem>>, vector<1x8x128xf32>
    %1773 = vector.shape_cast %1772 : vector<1x8x128xf32> to vector<8x128xf32>
    %1774 = vector.shape_cast %1771 : vector<8x128xf32> to vector<1x8x128xf32>
    tpu.vector_store %arg4[%c6_701, %c0_702, %c0_703], %1774 {strides = array<i32>} : memref<8x8x128xf32, #tpu.memory_space<vmem>>, vector<1x8x128xf32>,
    %c272 = arith.constant 272 : index
    %1775 = memref.load %arg1[%c272] : memref<312xf32, #tpu.memory_space<smem>>
    %c0_704 = arith.constant 0 : index
    %c0_705 = arith.constant 0 : index
    %c0_706 = arith.constant 0 : index
    %1776 = vector.load %arg5[%c0_704, %c0_705, %c0_706] : memref<8x10x128xf32, #tpu.memory_space<vmem>>, vector<1x8x128xf32>
    %1777 = vector.shape_cast %1776 : vector<1x8x128xf32> to vector<8x128xf32>
    %1778 = vector.broadcast %1775 : f32 to vector<8x128xf32>
    %1779 = arith.mulf %1777, %1778 : vector<8x128xf32>
    %c273 = arith.constant 273 : index
    %1780 = memref.load %arg1[%c273] : memref<312xf32, #tpu.memory_space<smem>>
    %c0_707 = arith.constant 0 : index
    %c1_708 = arith.constant 1 : index
    %c0_709 = arith.constant 0 : index
    %1781 = vector.load %arg5[%c0_707, %c1_708, %c0_709] : memref<8x10x128xf32, #tpu.memory_space<vmem>>, vector<1x8x128xf32>
    %1782 = vector.shape_cast %1781 : vector<1x8x128xf32> to vector<8x128xf32>
    %1783 = vector.broadcast %1780 : f32 to vector<8x128xf32>
    %1784 = arith.mulf %1782, %1783 : vector<8x128xf32>
    %1785 = arith.addf %1779, %1784 : vector<8x128xf32>
    %c274 = arith.constant 274 : index
    %1786 = memref.load %arg1[%c274] : memref<312xf32, #tpu.memory_space<smem>>
    %c0_710 = arith.constant 0 : index
    %c2_711 = arith.constant 2 : index
    %c0_712 = arith.constant 0 : index
    %1787 = vector.load %arg5[%c0_710, %c2_711, %c0_712] : memref<8x10x128xf32, #tpu.memory_space<vmem>>, vector<1x8x128xf32>
    %1788 = vector.shape_cast %1787 : vector<1x8x128xf32> to vector<8x128xf32>
    %1789 = vector.broadcast %1786 : f32 to vector<8x128xf32>
    %1790 = arith.mulf %1788, %1789 : vector<8x128xf32>
    %1791 = arith.addf %1785, %1790 : vector<8x128xf32>
    %c275 = arith.constant 275 : index
    %1792 = memref.load %arg1[%c275] : memref<312xf32, #tpu.memory_space<smem>>
    %c1_713 = arith.constant 1 : index
    %c0_714 = arith.constant 0 : index
    %c0_715 = arith.constant 0 : index
    %1793 = vector.load %arg5[%c1_713, %c0_714, %c0_715] : memref<8x10x128xf32, #tpu.memory_space<vmem>>, vector<1x8x128xf32>
    %1794 = vector.shape_cast %1793 : vector<1x8x128xf32> to vector<8x128xf32>
    %1795 = vector.broadcast %1792 : f32 to vector<8x128xf32>
    %1796 = arith.mulf %1794, %1795 : vector<8x128xf32>
    %1797 = arith.addf %1791, %1796 : vector<8x128xf32>
    %c276 = arith.constant 276 : index
    %1798 = memref.load %arg1[%c276] : memref<312xf32, #tpu.memory_space<smem>>
    %c1_716 = arith.constant 1 : index
    %c1_717 = arith.constant 1 : index
    %c0_718 = arith.constant 0 : index
    %1799 = vector.load %arg5[%c1_716, %c1_717, %c0_718] : memref<8x10x128xf32, #tpu.memory_space<vmem>>, vector<1x8x128xf32>
    %1800 = vector.shape_cast %1799 : vector<1x8x128xf32> to vector<8x128xf32>
    %1801 = vector.broadcast %1798 : f32 to vector<8x128xf32>
    %1802 = arith.mulf %1800, %1801 : vector<8x128xf32>
    %1803 = arith.addf %1797, %1802 : vector<8x128xf32>
    %c277 = arith.constant 277 : index
    %1804 = memref.load %arg1[%c277] : memref<312xf32, #tpu.memory_space<smem>>
    %c1_719 = arith.constant 1 : index
    %c2_720 = arith.constant 2 : index
    %c0_721 = arith.constant 0 : index
    %1805 = vector.load %arg5[%c1_719, %c2_720, %c0_721] : memref<8x10x128xf32, #tpu.memory_space<vmem>>, vector<1x8x128xf32>
    %1806 = vector.shape_cast %1805 : vector<1x8x128xf32> to vector<8x128xf32>
    %1807 = vector.broadcast %1804 : f32 to vector<8x128xf32>
    %1808 = arith.mulf %1806, %1807 : vector<8x128xf32>
    %1809 = arith.addf %1803, %1808 : vector<8x128xf32>
    %c278 = arith.constant 278 : index
    %1810 = memref.load %arg1[%c278] : memref<312xf32, #tpu.memory_space<smem>>
    %c2_722 = arith.constant 2 : index
    %c0_723 = arith.constant 0 : index
    %c0_724 = arith.constant 0 : index
    %1811 = vector.load %arg5[%c2_722, %c0_723, %c0_724] : memref<8x10x128xf32, #tpu.memory_space<vmem>>, vector<1x8x128xf32>
    %1812 = vector.shape_cast %1811 : vector<1x8x128xf32> to vector<8x128xf32>
    %1813 = vector.broadcast %1810 : f32 to vector<8x128xf32>
    %1814 = arith.mulf %1812, %1813 : vector<8x128xf32>
    %1815 = arith.addf %1809, %1814 : vector<8x128xf32>
    %c279 = arith.constant 279 : index
    %1816 = memref.load %arg1[%c279] : memref<312xf32, #tpu.memory_space<smem>>
    %c2_725 = arith.constant 2 : index
    %c1_726 = arith.constant 1 : index
    %c0_727 = arith.constant 0 : index
    %1817 = vector.load %arg5[%c2_725, %c1_726, %c0_727] : memref<8x10x128xf32, #tpu.memory_space<vmem>>, vector<1x8x128xf32>
    %1818 = vector.shape_cast %1817 : vector<1x8x128xf32> to vector<8x128xf32>
    %1819 = vector.broadcast %1816 : f32 to vector<8x128xf32>
    %1820 = arith.mulf %1818, %1819 : vector<8x128xf32>
    %1821 = arith.addf %1815, %1820 : vector<8x128xf32>
    %c280 = arith.constant 280 : index
    %1822 = memref.load %arg1[%c280] : memref<312xf32, #tpu.memory_space<smem>>
    %c2_728 = arith.constant 2 : index
    %c2_729 = arith.constant 2 : index
    %c0_730 = arith.constant 0 : index
    %1823 = vector.load %arg5[%c2_728, %c2_729, %c0_730] : memref<8x10x128xf32, #tpu.memory_space<vmem>>, vector<1x8x128xf32>
    %1824 = vector.shape_cast %1823 : vector<1x8x128xf32> to vector<8x128xf32>
    %1825 = vector.broadcast %1822 : f32 to vector<8x128xf32>
    %1826 = arith.mulf %1824, %1825 : vector<8x128xf32>
    %1827 = arith.addf %1821, %1826 : vector<8x128xf32>
    %c281 = arith.constant 281 : index
    %1828 = memref.load %arg1[%c281] : memref<312xf32, #tpu.memory_space<smem>>
    %c3_731 = arith.constant 3 : index
    %c0_732 = arith.constant 0 : index
    %c0_733 = arith.constant 0 : index
    %1829 = vector.load %arg5[%c3_731, %c0_732, %c0_733] : memref<8x10x128xf32, #tpu.memory_space<vmem>>, vector<1x8x128xf32>
    %1830 = vector.shape_cast %1829 : vector<1x8x128xf32> to vector<8x128xf32>
    %1831 = vector.broadcast %1828 : f32 to vector<8x128xf32>
    %1832 = arith.mulf %1830, %1831 : vector<8x128xf32>
    %1833 = arith.addf %1827, %1832 : vector<8x128xf32>
    %c282 = arith.constant 282 : index
    %1834 = memref.load %arg1[%c282] : memref<312xf32, #tpu.memory_space<smem>>
    %c3_734 = arith.constant 3 : index
    %c1_735 = arith.constant 1 : index
    %c0_736 = arith.constant 0 : index
    %1835 = vector.load %arg5[%c3_734, %c1_735, %c0_736] : memref<8x10x128xf32, #tpu.memory_space<vmem>>, vector<1x8x128xf32>
    %1836 = vector.shape_cast %1835 : vector<1x8x128xf32> to vector<8x128xf32>
    %1837 = vector.broadcast %1834 : f32 to vector<8x128xf32>
    %1838 = arith.mulf %1836, %1837 : vector<8x128xf32>
    %1839 = arith.addf %1833, %1838 : vector<8x128xf32>
    %c283 = arith.constant 283 : index
    %1840 = memref.load %arg1[%c283] : memref<312xf32, #tpu.memory_space<smem>>
    %c3_737 = arith.constant 3 : index
    %c2_738 = arith.constant 2 : index
    %c0_739 = arith.constant 0 : index
    %1841 = vector.load %arg5[%c3_737, %c2_738, %c0_739] : memref<8x10x128xf32, #tpu.memory_space<vmem>>, vector<1x8x128xf32>
    %1842 = vector.shape_cast %1841 : vector<1x8x128xf32> to vector<8x128xf32>
    %1843 = vector.broadcast %1840 : f32 to vector<8x128xf32>
    %1844 = arith.mulf %1842, %1843 : vector<8x128xf32>
    %1845 = arith.addf %1839, %1844 : vector<8x128xf32>
    %c284 = arith.constant 284 : index
    %1846 = memref.load %arg1[%c284] : memref<312xf32, #tpu.memory_space<smem>>
    %c4_740 = arith.constant 4 : index
    %c0_741 = arith.constant 0 : index
    %c0_742 = arith.constant 0 : index
    %1847 = vector.load %arg5[%c4_740, %c0_741, %c0_742] : memref<8x10x128xf32, #tpu.memory_space<vmem>>, vector<1x8x128xf32>
    %1848 = vector.shape_cast %1847 : vector<1x8x128xf32> to vector<8x128xf32>
    %1849 = vector.broadcast %1846 : f32 to vector<8x128xf32>
    %1850 = arith.mulf %1848, %1849 : vector<8x128xf32>
    %1851 = arith.addf %1845, %1850 : vector<8x128xf32>
    %c285 = arith.constant 285 : index
    %1852 = memref.load %arg1[%c285] : memref<312xf32, #tpu.memory_space<smem>>
    %c4_743 = arith.constant 4 : index
    %c1_744 = arith.constant 1 : index
    %c0_745 = arith.constant 0 : index
    %1853 = vector.load %arg5[%c4_743, %c1_744, %c0_745] : memref<8x10x128xf32, #tpu.memory_space<vmem>>, vector<1x8x128xf32>
    %1854 = vector.shape_cast %1853 : vector<1x8x128xf32> to vector<8x128xf32>
    %1855 = vector.broadcast %1852 : f32 to vector<8x128xf32>
    %1856 = arith.mulf %1854, %1855 : vector<8x128xf32>
    %1857 = arith.addf %1851, %1856 : vector<8x128xf32>
    %c286 = arith.constant 286 : index
    %1858 = memref.load %arg1[%c286] : memref<312xf32, #tpu.memory_space<smem>>
    %c4_746 = arith.constant 4 : index
    %c2_747 = arith.constant 2 : index
    %c0_748 = arith.constant 0 : index
    %1859 = vector.load %arg5[%c4_746, %c2_747, %c0_748] : memref<8x10x128xf32, #tpu.memory_space<vmem>>, vector<1x8x128xf32>
    %1860 = vector.shape_cast %1859 : vector<1x8x128xf32> to vector<8x128xf32>
    %1861 = vector.broadcast %1858 : f32 to vector<8x128xf32>
    %1862 = arith.mulf %1860, %1861 : vector<8x128xf32>
    %1863 = arith.addf %1857, %1862 : vector<8x128xf32>
    %c287 = arith.constant 287 : index
    %1864 = memref.load %arg1[%c287] : memref<312xf32, #tpu.memory_space<smem>>
    %c5_749 = arith.constant 5 : index
    %c0_750 = arith.constant 0 : index
    %c0_751 = arith.constant 0 : index
    %1865 = vector.load %arg5[%c5_749, %c0_750, %c0_751] : memref<8x10x128xf32, #tpu.memory_space<vmem>>, vector<1x8x128xf32>
    %1866 = vector.shape_cast %1865 : vector<1x8x128xf32> to vector<8x128xf32>
    %1867 = vector.broadcast %1864 : f32 to vector<8x128xf32>
    %1868 = arith.mulf %1866, %1867 : vector<8x128xf32>
    %1869 = arith.addf %1863, %1868 : vector<8x128xf32>
    %c288 = arith.constant 288 : index
    %1870 = memref.load %arg1[%c288] : memref<312xf32, #tpu.memory_space<smem>>
    %c5_752 = arith.constant 5 : index
    %c1_753 = arith.constant 1 : index
    %c0_754 = arith.constant 0 : index
    %1871 = vector.load %arg5[%c5_752, %c1_753, %c0_754] : memref<8x10x128xf32, #tpu.memory_space<vmem>>, vector<1x8x128xf32>
    %1872 = vector.shape_cast %1871 : vector<1x8x128xf32> to vector<8x128xf32>
    %1873 = vector.broadcast %1870 : f32 to vector<8x128xf32>
    %1874 = arith.mulf %1872, %1873 : vector<8x128xf32>
    %1875 = arith.addf %1869, %1874 : vector<8x128xf32>
    %c289 = arith.constant 289 : index
    %1876 = memref.load %arg1[%c289] : memref<312xf32, #tpu.memory_space<smem>>
    %c5_755 = arith.constant 5 : index
    %c2_756 = arith.constant 2 : index
    %c0_757 = arith.constant 0 : index
    %1877 = vector.load %arg5[%c5_755, %c2_756, %c0_757] : memref<8x10x128xf32, #tpu.memory_space<vmem>>, vector<1x8x128xf32>
    %1878 = vector.shape_cast %1877 : vector<1x8x128xf32> to vector<8x128xf32>
    %1879 = vector.broadcast %1876 : f32 to vector<8x128xf32>
    %1880 = arith.mulf %1878, %1879 : vector<8x128xf32>
    %1881 = arith.addf %1875, %1880 : vector<8x128xf32>
    %c290 = arith.constant 290 : index
    %1882 = memref.load %arg1[%c290] : memref<312xf32, #tpu.memory_space<smem>>
    %c6_758 = arith.constant 6 : index
    %c0_759 = arith.constant 0 : index
    %c0_760 = arith.constant 0 : index
    %1883 = vector.load %arg5[%c6_758, %c0_759, %c0_760] : memref<8x10x128xf32, #tpu.memory_space<vmem>>, vector<1x8x128xf32>
    %1884 = vector.shape_cast %1883 : vector<1x8x128xf32> to vector<8x128xf32>
    %1885 = vector.broadcast %1882 : f32 to vector<8x128xf32>
    %1886 = arith.mulf %1884, %1885 : vector<8x128xf32>
    %1887 = arith.addf %1881, %1886 : vector<8x128xf32>
    %c291 = arith.constant 291 : index
    %1888 = memref.load %arg1[%c291] : memref<312xf32, #tpu.memory_space<smem>>
    %c6_761 = arith.constant 6 : index
    %c1_762 = arith.constant 1 : index
    %c0_763 = arith.constant 0 : index
    %1889 = vector.load %arg5[%c6_761, %c1_762, %c0_763] : memref<8x10x128xf32, #tpu.memory_space<vmem>>, vector<1x8x128xf32>
    %1890 = vector.shape_cast %1889 : vector<1x8x128xf32> to vector<8x128xf32>
    %1891 = vector.broadcast %1888 : f32 to vector<8x128xf32>
    %1892 = arith.mulf %1890, %1891 : vector<8x128xf32>
    %1893 = arith.addf %1887, %1892 : vector<8x128xf32>
    %c292 = arith.constant 292 : index
    %1894 = memref.load %arg1[%c292] : memref<312xf32, #tpu.memory_space<smem>>
    %c6_764 = arith.constant 6 : index
    %c2_765 = arith.constant 2 : index
    %c0_766 = arith.constant 0 : index
    %1895 = vector.load %arg5[%c6_764, %c2_765, %c0_766] : memref<8x10x128xf32, #tpu.memory_space<vmem>>, vector<1x8x128xf32>
    %1896 = vector.shape_cast %1895 : vector<1x8x128xf32> to vector<8x128xf32>
    %1897 = vector.broadcast %1894 : f32 to vector<8x128xf32>
    %1898 = arith.mulf %1896, %1897 : vector<8x128xf32>
    %1899 = arith.addf %1893, %1898 : vector<8x128xf32>
    %c293 = arith.constant 293 : index
    %1900 = memref.load %arg1[%c293] : memref<312xf32, #tpu.memory_space<smem>>
    %c7_767 = arith.constant 7 : index
    %c0_768 = arith.constant 0 : index
    %c0_769 = arith.constant 0 : index
    %1901 = vector.load %arg5[%c7_767, %c0_768, %c0_769] : memref<8x10x128xf32, #tpu.memory_space<vmem>>, vector<1x8x128xf32>
    %1902 = vector.shape_cast %1901 : vector<1x8x128xf32> to vector<8x128xf32>
    %1903 = vector.broadcast %1900 : f32 to vector<8x128xf32>
    %1904 = arith.mulf %1902, %1903 : vector<8x128xf32>
    %1905 = arith.addf %1899, %1904 : vector<8x128xf32>
    %c294 = arith.constant 294 : index
    %1906 = memref.load %arg1[%c294] : memref<312xf32, #tpu.memory_space<smem>>
    %c7_770 = arith.constant 7 : index
    %c1_771 = arith.constant 1 : index
    %c0_772 = arith.constant 0 : index
    %1907 = vector.load %arg5[%c7_770, %c1_771, %c0_772] : memref<8x10x128xf32, #tpu.memory_space<vmem>>, vector<1x8x128xf32>
    %1908 = vector.shape_cast %1907 : vector<1x8x128xf32> to vector<8x128xf32>
    %1909 = vector.broadcast %1906 : f32 to vector<8x128xf32>
    %1910 = arith.mulf %1908, %1909 : vector<8x128xf32>
    %1911 = arith.addf %1905, %1910 : vector<8x128xf32>
    %c295 = arith.constant 295 : index
    %1912 = memref.load %arg1[%c295] : memref<312xf32, #tpu.memory_space<smem>>
    %c7_773 = arith.constant 7 : index
    %c2_774 = arith.constant 2 : index
    %c0_775 = arith.constant 0 : index
    %1913 = vector.load %arg5[%c7_773, %c2_774, %c0_775] : memref<8x10x128xf32, #tpu.memory_space<vmem>>, vector<1x8x128xf32>
    %1914 = vector.shape_cast %1913 : vector<1x8x128xf32> to vector<8x128xf32>
    %1915 = vector.broadcast %1912 : f32 to vector<8x128xf32>
    %1916 = arith.mulf %1914, %1915 : vector<8x128xf32>
    %1917 = arith.addf %1911, %1916 : vector<8x128xf32>
    %c303 = arith.constant 303 : index
    %1918 = memref.load %arg1[%c303] : memref<312xf32, #tpu.memory_space<smem>>
    %1919 = vector.broadcast %1918 : f32 to vector<8x128xf32>
    %1920 = arith.addf %1917, %1919 : vector<8x128xf32>
    %c7_776 = arith.constant 7 : index
    %c0_777 = arith.constant 0 : index
    %c0_778 = arith.constant 0 : index
    %1921 = vector.load %arg4[%c7_776, %c0_777, %c0_778] : memref<8x8x128xf32, #tpu.memory_space<vmem>>, vector<1x8x128xf32>
    %1922 = vector.shape_cast %1921 : vector<1x8x128xf32> to vector<8x128xf32>
    %1923 = vector.shape_cast %1920 : vector<8x128xf32> to vector<1x8x128xf32>
    tpu.vector_store %arg4[%c7_776, %c0_777, %c0_778], %1923 {strides = array<i32>} : memref<8x8x128xf32, #tpu.memory_space<vmem>>, vector<1x8x128xf32>,
    return
  }
  func.func @transform_0(%arg0: i32) -> i32 {
    %c0_i32 = arith.constant 0 : i32
    %c0_i32_0 = arith.constant 0 : i32
    return %c0_i32 : i32
  }
  func.func @transform_1(%arg0: i32) -> (i32, i32, i32, i32) {
    %c0_i32 = arith.constant 0 : i32
    %c0_i32_0 = arith.constant 0 : i32
    %c0_i32_1 = arith.constant 0 : i32
    %c0_i32_2 = arith.constant 0 : i32
    return %c0_i32, %c0_i32_0, %c0_i32_1, %arg0 : i32, i32, i32, i32
  }
  func.func @transform_2(%arg0: i32) -> (i32, i32, i32, i32) {
    %c0_i32 = arith.constant 0 : i32
    %c0_i32_0 = arith.constant 0 : i32
    %c0_i32_1 = arith.constant 0 : i32
    %c0_i32_2 = arith.constant 0 : i32
    return %c0_i32, %c0_i32_0, %c0_i32_1, %arg0 : i32, i32, i32, i32
  }
  func.func @transform_3(%arg0: i32) -> (i32, i32, i32) {
    %c0_i32 = arith.constant 0 : i32
    %c0_i32_0 = arith.constant 0 : i32
    %c0_i32_1 = arith.constant 0 : i32
    return %c0_i32, %c0_i32_0, %arg0 : i32, i32, i32
  }
}

</mosaic_0001>

<bundles_post_ra>
// kernel: tpu_custom_call.1
= control target key start
LH: loop header
LB: loop body
LE: loop exit
PB: predicated region body
PF: predicated region fallthrough
CT: control target
= control target key end

     0   :  { %s3954_s0 = inlined_call_operand.vmem [shape: f32[312], index: 0, kind: input, shape index: {}]   ;;  %s3955_s1 = inlined_call_operand.vmem [shape: f32[2,4,9,128], index: 1, kind: input, shape index: {}]   ;;  %s3956_s2 = inlined_call_operand.vmem [shape: f32[2,4,8,128], index: 2, kind: input, shape index: {}]   ;;  %s3957_s3 = inlined_call_operand.hbm [shape: f32[8,8,128], index: 3, kind: output, shape index: {}]  }
   0x1   :  { %3969 = sst [smem:[#allocation17_spill]] %s3956_s2 }
   0x2   :  { %3970 = sst [smem:[#allocation18_spill]] %s3957_s3 }
   0x3   :  { %8 = vsyncpa [#allocation5], 0 }
   0x4   :  { %9 = vsyncpa [#allocation4], 0  ;;  %s16_s14 = sshll.u32 %s3954_s0, 4  ;;  %s17_s14 = int_to_ptr.vmem [resolvable:$true] %s16_s14 }
   0x5   :  { %s2155_s15 = scalar_lea.vmem %s17_s14, 48  ;;  %s2159_s16 = scalar_lea.vmem %s17_s14, 64 }
   0x6   :  { %p2156_p0 = scmp.ne.s32.totalorder %s17_s14, %s2155_s15  ;;  %p2160_p1 = scmp.lt.s32.totalorder %s17_s14, %s17_s14 }
   0x7   :  { %p2161_p2 = scmp.lt.s32.totalorder %s2159_s16, %s2155_s15 }
   0x9   :  { %p2162_p3 = por %p2161_p2, %p2160_p1 }
   0xb   :  { %p2163_p4 = pnand %p2162_p3, %p2156_p0 }
   0xd   :  { %2166 = shalt.err (!%p2163_p4)
}
   0xe   :  { %s2193_s17 = smov [#allocation3]  }
   0xf   :  { %19 = dma.vmem_to_smem %s17_s14, 48, %s2193_s17, [#allocation5]  }
  0x10   :  { %2189 = dma.done.wait [#allocation5], 48  }
  0x11   :  { %2190 = vsyncadd [#allocation5], 4294967248 }
  0x12   :  { %27 = sfence }
  0x13   :  { %s2221_s18 = sld [smem:[#allocation3 + $0x130]]  ;;  %s2223_s19 = sld [smem:[#allocation3 + $0x131]]  ;;  %v36_v0 = vlaneseq  ;;  %v2194_v1 = vmov 0.0   ;;  %v47_v6 = vld [vmem:[%s3955_s1] sm:$0xff]  ;;  %v48_v7 = vld [vmem:[%s3955_s1 + $0x8] sm:$0x1] }
  0x14   :  { %206 = vst [vmem:[#allocation2] sm:$0x1] %v2194_v1  ;;  %207 = vst [vmem:[#allocation2 + $0x9] sm:$0x1] %v2194_v1  ;;  %s1823_s0 = sld [smem:[#allocation3 + $0x132]]  ;;  %s1825_s20 = sld [smem:[#allocation3 + $0x134]] }
  0x15   :  { %289 = vst [vmem:[#allocation2 + $0x10] sm:$0x1] %v2194_v1  ;;  %290 = vst [vmem:[#allocation2 + $0x19] sm:$0x1] %v2194_v1  ;;  %s1826_s21 = sld [smem:[#allocation3 + $0x135]]  ;;  %v37_v2 = vshrl.u32 %v36_v0, 7 }
  0x16   :  { %372 = vst [vmem:[#allocation2 + $0x20] sm:$0x1] %v2194_v1  ;;  %373 = vst [vmem:[#allocation2 + $0x29] sm:$0x1] %v2194_v1  ;;  %s2225_s22 = sld [smem:[#allocation3 + $0x133]]  ;;  %s2227_s23 = sld [smem:[#allocation3 + $0x136]] }
  0x17   :  { %455 = vst [vmem:[#allocation2 + $0x30] sm:$0x1] %v2194_v1  ;;  %456 = vst [vmem:[#allocation2 + $0x39] sm:$0x1] %v2194_v1  ;;  %v38_v3 = vadd.s32 8, %v37_v2  ;;  %v39_v4 = vmul.u32 2, %v37_v2 }
  0x18   :  { %538 = vst [vmem:[#allocation2 + $0x40] sm:$0x1] %v2194_v1  ;;  %539 = vst [vmem:[#allocation2 + $0x49] sm:$0x1] %v2194_v1  ;;  %s2229_s24 = sld [smem:[#allocation3 + $0x137]]  ;;  %v1829_v10 = vld [vmem:[%s3955_s1 + $0x10] sm:$0xff] }
  0x19   :  { %621 = vst [vmem:[#allocation2 + $0x50] sm:$0x1] %v2194_v1  ;;  %622 = vst [vmem:[#allocation2 + $0x59] sm:$0x1] %v2194_v1  ;;  %v40_v5 = vmul.u32 2, %v38_v3  ;;  %vm41_vm0 = vcmp.ge.s32.totalorder %v39_v4, 0  ;;  %v49_v8 = vstv %s2221_s18  ;;  %v62_v12 = vstv %s2223_s19 }
  0x1a   :  { %704 = vst [vmem:[#allocation2 + $0x60] sm:$0x1] %v2194_v1  ;;  %705 = vst [vmem:[#allocation2 + $0x69] sm:$0x1] %v2194_v1  ;;  %vm43_vm1 = vcmp.lt.s32.totalorder %v39_v4, 16  ;;  %v52_v13 = vstv %s1825_s20  ;;  %v1831_v14 = vld [vmem:[%s3955_s1 + $0x20] sm:$0xff]  ;;  %v75_v15 = vstv %s1823_s0  ;;  %v50_v17 = vmul.f32 %v49_v8, %v47_v6 }
  0x1b   :  { %787 = vst [vmem:[#allocation2 + $0x70] sm:$0x1] %v2194_v1  ;;  %788 = vst [vmem:[#allocation2 + $0x79] sm:$0x1] %v2194_v1  ;;  %v1830_v11 = vld [vmem:[%s3955_s1 + $0x18] sm:$0x1]  ;;  %v65_v18 = vstv %s1826_s21  ;;  %v51_v20 = vmul.f32 %v49_v8, %v48_v7  ;;  %v63_v22 = vmul.f32 %v1829_v10, %v62_v12  ;;  %v76_v27 = vmul.f32 %v1831_v14, %v75_v15 }
  0x1c   :  { %vm2238_vm2 = vmand %vm41_vm0, %vm43_vm1  ;;  %vm42_vm3 = vcmp.ge.s32.totalorder %v40_v5, 0  ;;  %vm44_vm4 = vcmp.lt.s32.totalorder %v40_v5, 16  ;;  %v1832_v19 = vld [vmem:[%s3955_s1 + $0x28] sm:$0x1]  ;;  %v64_v23 = vmul.f32 %v1830_v11, %v62_v12  ;;  %v2268_v29 = vstv %s2227_s23  ;;  %v1833_v30 = vld [vmem:[%s3955_s1 + $0x30] sm:$0xff]  ;;  %s2277_s14 = sld [smem:[#allocation3]] }
  0x1d   :  { %vm2252_vm5 = vmand %vm42_vm3, %vm44_vm4  ;;  %v53_v21 = vsel %vm2238_vm2, %v52_v13, 0.0  ;;  %v66_v25 = vsel %vm2238_vm2, %v65_v18, 0.0  ;;  %v77_v28 = vmul.f32 %v1832_v19, %v75_v15  ;;  %v1834_v31 = vld [vmem:[%s3955_s1 + $0x38] sm:$0x1]  ;;  %v88_v32 = vstv %s2225_s22  ;;  %v1835_v36 = vld [vmem:[%s3955_s1 + $0x40] sm:$0xff]  ;;  %s2288_s17 = sld [smem:[#allocation3 + $0x1]] }
  0x1e   :  { %v54_v24 = vsel %vm2252_vm5, %v52_v13, 0.0  ;;  %v67_v26 = vsel %vm2252_vm5, %v65_v18, 0.0  ;;  %v55_v33 = vadd.f32 %v53_v21, %v50_v17  ;;  %v79_v34 = vsel %vm2238_vm2, %v2268_v29, 0.0  ;;  %s2290_s18 = sld [smem:[#allocation3 + $0x2]]  ;;  %v1836_v41 = vld [vmem:[%s3955_s1 + $0x50] sm:$0xff]  ;;  %s2298_s20 = sld [smem:[#allocation3 + $0x3]] }
  0x1f   :  { %v2283_v35 = vstv %s2229_s24  ;;  %v56_v37 = vadd.f32 %v54_v24, %v51_v20  ;;  %v68_v38 = vadd.f32 %v66_v25, %v63_v22  ;;  %v69_v39 = vadd.f32 %v67_v26, %v64_v23  ;;  %s2303_s21 = sld [smem:[#allocation3 + $0x5]]  ;;  %s2308_s22 = sld [smem:[#allocation3 + $0x4]]  ;;  %v1837_v56 = vld [vmem:[%s3955_s1 + $0x60] sm:$0xff]  ;;  %v1838_v61 = vld [vmem:[%s3955_s1 + $0x70] sm:$0xff] }
  0x20   :  { %v80_v40 = vsel %vm2252_vm5, %v2268_v29, 0.0  ;;  %v81_v42 = vadd.f32 %v79_v34, %v76_v27  ;;  %v89_v43 = vmul.f32 %v1833_v30, %v88_v32  ;;  %v98_v44 = vadd.s32 1, %v39_v4  ;;  %s2336_s27 = sld [smem:[#allocation3 + $0x8]]  ;;  %s2341_s28 = sld [smem:[#allocation3 + $0x6]] }
  0x21   :  { %v82_v45 = vadd.f32 %v80_v40, %v77_v28  ;;  %v90_v46 = vmul.f32 %v1834_v31, %v88_v32  ;;  %v92_v47 = vsel %vm2238_vm2, %v2283_v35, 0.0  ;;  %v104_v48 = vmul.f32 %v1835_v36, %v49_v8  ;;  %s2351_s1 = sld [smem:[#allocation3 + $0xb]]  ;;  %s2357_s29 = sld [smem:[#allocation3 + $0x7]] }
  0x22   :  { %v93_v49 = vsel %vm2252_vm5, %v2283_v35, 0.0  ;;  %vm99_vm6 = vcmp.ge.s32.totalorder %v98_v44, 0  ;;  %vm100_vm7 = vcmp.lt.s32.totalorder %v98_v44, 16  ;;  %v110_v50 = vmul.f32 %v1836_v41, %v62_v12  ;;  %s2367_s30 = sld [smem:[#allocation3 + $0x9]]  ;;  %s2369_s4 = sld [smem:[#allocation3 + $0xa]] }
  0x23   :  { %v2310_v51 = vmax.f32 %v55_v33, 0.0  ;;  %v2312_v52 = vmax.f32 %v56_v37, 0.0  ;;  %v2314_v53 = vmax.f32 %v68_v38, 0.0  ;;  %v2316_v54 = vmax.f32 %v69_v39, 0.0  ;;  %vm2318_vm8 = vmand %vm99_vm6, %vm100_vm7  ;;  %s2378_s5 = sld [smem:[#allocation3 + $0x60]]  ;;  %s2385_s7 = sld [smem:[#allocation3 + $0x69]] }
  0x24   :  { %v2325_v57 = vmax.f32 %v81_v42, 0.0  ;;  %v94_v58 = vadd.f32 %v92_v47, %v89_v43  ;;  %v105_v59 = vsel %vm2318_vm8, %v52_v13, 0.0  ;;  %v111_v60 = vsel %vm2318_vm8, %v65_v18, 0.0  ;;  %s2380_s6 = sld [smem:[#allocation3 + $0x68]]  ;;  %s2387_s8 = sld [smem:[#allocation3 + $0x6a]] }
  0x25   :  { %v2334_v62 = vmax.f32 %v82_v45, 0.0  ;;  %v95_v63 = vadd.f32 %v93_v49, %v90_v46  ;;  %v106_v0 = vadd.f32 %v105_v59, %v104_v48  ;;  %v112_v1 = vadd.f32 %v111_v60, %v110_v50  ;;  %s2392_s9 = sld [smem:[#allocation3 + $0x80]]  ;;  %s2394_s10 = sld [smem:[#allocation3 + $0x81]] }
  0x26   :  { %v116_v2 = vmul.f32 %v1837_v56, %v75_v15  ;;  %v127_v3 = vstv %s2277_s14  ;;  %v130_v4 = vstv %s2288_s17  ;;  %v134_v5 = vstv %s2290_s18  ;;  %s2398_s11 = sld [smem:[#allocation3 + $0x82]]  ;;  %s2400_s12 = sld [smem:[#allocation3 + $0x98]] }
  0x27   :  { %v2343_v6 = vmax.f32 %v106_v0, 0.0  ;;  %v117_v7 = vsel %vm2318_vm8, %v2268_v29, 0.0  ;;  %v122_v8 = vmul.f32 %v1838_v61, %v88_v32  ;;  %v123_v9 = vsel %vm2318_vm8, %v2283_v35, 0.0  ;;  %s2405_s13 = sld [smem:[#allocation3 + $0xc]]  ;;  %s2407_s14 = sld [smem:[#allocation3 + $0xd]] }
  0x28   :  { %v128_v10 = vmul.f32 %v127_v3, %v2310_v51  ;;  %v135_v11 = vmul.f32 %v134_v5, %v2310_v51  ;;  %v136_v12 = vmul.f32 %v134_v5, %v2312_v52  ;;  %v146_v13 = vstv %s2298_s20  ;;  %s2411_s15 = sld [smem:[#allocation3 + $0xe]]  ;;  %s2416_s16 = sld [smem:[#allocation3 + $0x99]] }
  0x29   :  { %v2359_v14 = vmax.f32 %v112_v1, 0.0  ;;  %v131_v15 = vmul.f32 %v130_v4, %v2343_v6  ;;  %vm139_vm9 = vcmask 1046528   ;;  %v154_v16 = vstv %s2303_s21  ;;  %s2418_s17 = sld [smem:[#allocation3 + $0xf]]  ;;  %s2420_s18 = sld [smem:[#allocation3 + $0x9a]] }
  0x2a   :  { %v140_v17 = vrot.slane %v135_v11, 1  ;;  %v141_v18 = vrot.slane %v136_v12, 1  ;;  %v150_v19 = vstv %s2308_s22  ;;  %v155_v20 = vmul.f32 %v154_v16, %v2314_v53  ;;  %3977 = sst [smem:[#allocation9_spill]] %s2387_s8  ;;  %s2422_s19 = sld [smem:[#allocation3 + $0x11]] }
  0x2b   :  { %v118_v21 = vadd.f32 %v117_v7, %v116_v2  ;;  %v132_v22 = vadd.f32 %v131_v15, %v128_v10  ;;  %v147_v23 = vmul.f32 %v146_v13, %v2314_v53  ;;  %v156_v24 = vmul.f32 %v154_v16, %v2316_v54  ;;  %s2424_s0 = sld [smem:[#allocation3 + $0x10]]  ;;  %s2431_s21 = sld [smem:[#allocation3 + $0xb1]] }
  0x2c   :  { %v2371_v25 = vmax.f32 %v94_v58, 0.0  ;;  %v2373_v26 = vmax.f32 %v95_v63, 0.0  ;;  %v142_v27 = vsel %vm139_vm9, %v140_v17, %v141_v18  ;;  %v159_v28 = vrot.slane %v155_v20, 1  ;;  %3978 = sst [smem:[#allocation10_spill]] %s2398_s11  ;;  %s2429_s20 = sld [smem:[#allocation3 + $0xb0]] }
  0x2d   :  { %v144_v29 = vadd.f32 %v142_v27, %v132_v22  ;;  %v151_v30 = vmul.f32 %v150_v19, %v2359_v14  ;;  %v160_v31 = vrot.slane %v156_v24, 1  ;;  %v173_v32 = vstv %s2336_s27  ;;  %s2436_s22 = sld [smem:[#allocation3 + $0xb2]]  ;;  %s2438_s23 = sld [smem:[#allocation3 + $0xc8]] }
  0x2e   :  { %v124_v33 = vadd.f32 %v123_v9, %v122_v8  ;;  %v165_v34 = vstv %s2341_s28  ;;  %v174_v35 = vmul.f32 %v173_v32, %v2325_v57  ;;  %v175_v36 = vmul.f32 %v173_v32, %v2334_v62  ;;  %s2444_s24 = sld [smem:[#allocation3 + $0xc9]]  ;;  %s2446_s25 = sld [smem:[#allocation3 + $0xca]] }
  0x2f   :  { %v2389_v37 = vmax.f32 %v118_v21, 0.0  ;;  %v148_v38 = vadd.f32 %v147_v23, %v144_v29  ;;  %v192_v39 = vstv %s2351_s1  ;;  %v161_v40 = vsel %vm139_vm9, %v159_v28, %v160_v31  ;;  %3979 = sst [smem:[#allocation11_spill]] %s2420_s18  ;;  %s2449_s26 = sld [smem:[#allocation3 + $0xe0]] }
  0x30   :  { %v169_v41 = vstv %s2357_s29  ;;  %v166_v43 = vmul.f32 %v165_v34, %v2325_v57  ;;  %v193_v44 = vmul.f32 %v192_v39, %v2371_v25  ;;  %v194_v45 = vmul.f32 %v192_v39, %v2373_v26  ;;  %s2453_s27 = sld [smem:[#allocation3 + $0x14]]  ;;  %s2456_s28 = sld [smem:[#allocation3 + $0xe1]] }
  0x31   :  { %v152_v42 = vadd.f32 %v151_v30, %v148_v38  ;;  %v2409_v46 = vmax.f32 %v124_v33, 0.0  ;;  %v178_v47 = vrot.slane %v174_v35, 1  ;;  %v179_v48 = vrot.slane %v175_v36, 1  ;;  %s2458_s1 = sld [smem:[#allocation3 + $0xe2]]  ;;  %s2506_s2 = sld [smem:[#allocation3 + $0x61]] }
  0x32   :  { %v170_v50 = vmul.f32 %v169_v41, %v2389_v37  ;;  %v184_v55 = vstv %s2367_s30  ;;  %v188_v56 = vstv %s2369_s4  ;;  %v197_v59 = vrot.slane %v193_v44, 1  ;;  %s2466_s29 = sld [smem:[#allocation3 + $0x12]]  ;;  %s2468_s30 = sld [smem:[#allocation3 + $0x17]] }
  0x33   :  { %v163_v49 = vadd.f32 %v161_v40, %v152_v42  ;;  %v198_v60 = vrot.slane %v194_v45, 1  ;;  %v180_v61 = vsel %vm139_vm9, %v178_v47, %v179_v48  ;;  %v185_v63 = vmul.f32 %v184_v55, %v2371_v25  ;;  %3980 = sst [smem:[#allocation12_spill]] %s2436_s22  ;;  %s2472_s4 = sld [smem:[#allocation3 + $0xf8]] }
  0x34   :  { %v189_v0 = vmul.f32 %v188_v56, %v2409_v46  ;;  %v203_v2 = vstv %s2378_s5  ;;  %v811_v3 = vstv %s2380_s6  ;;  %v815_v4 = vstv %s2385_s7  ;;  %s2474_s5 = sld [smem:[#allocation3 + $0xf9]]  ;;  %s2497_s3 = sld [smem:[#allocation3 + $0x112]] }
  0x35   :  { %v167_v58 = vadd.f32 %v166_v43, %v163_v49  ;;  %v820_v5 = vstv %s2387_s8  ;;  %v934_v7 = vstv %s2392_s9  ;;  %v938_v8 = vstv %s2394_s10  ;;  %s2538_s8 = sld [smem:[#allocation3 + $0x9d]]  ;;  %s2572_s10 = sld [smem:[#allocation3 + $0xe3]] }
  0x36   :  { %v943_v9 = vstv %s2398_s11  ;;  %v199_v11 = vsel %vm139_vm9, %v197_v59, %v198_v60  ;;  %v210_v12 = vstv %s2405_s13  ;;  %v213_v13 = vstv %s2407_s14  ;;  %s2477_s13 = sld [smem:[#allocation3 + $0xfa]]  ;;  %s2480_s14 = sld [smem:[#allocation3 + $0x13]] }
  0x37   :  { %v171_v1 = vadd.f32 %v170_v50, %v167_v58  ;;  %v1058_v15 = vstv %s2400_s12  ;;  %v211_v16 = vmul.f32 %v210_v12, %v2310_v51  ;;  %v214_v17 = vmul.f32 %v213_v13, %v2343_v6  ;;  %s2536_s11 = sld [smem:[#allocation3 + $0x9c]]  ;;  %s2570_s7 = sld [smem:[#allocation3 + $0xcd]] }
  0x38   :  { %v217_v18 = vstv %s2411_s15  ;;  %v228_v22 = vstv %s2418_s17  ;;  %v1062_v23 = vstv %s2416_s16  ;;  %v1067_v24 = vstv %s2420_s18  ;;  %s2486_s15 = sld [smem:[#allocation3 + $0x15]]  ;;  %s2488_s17 = sld [smem:[#allocation3 + $0x16]] }
  0x39   :  { %v182_v10 = vadd.f32 %v180_v61, %v171_v1  ;;  %v218_v20 = vmul.f32 %v217_v18, %v2310_v51  ;;  %v219_v21 = vmul.f32 %v217_v18, %v2312_v52  ;;  %3981 = sst [smem:[#allocation13_spill]] %s2472_s4  ;;  %v215_v27 = vadd.f32 %v214_v17, %v211_v16  ;;  %s2644_s12 = sld [smem:[#allocation3 + $0x1b]] }
  0x3a   :  { %v236_v28 = vstv %s2422_s19  ;;  %v232_v32 = vstv %s2424_s0  ;;  %v1183_v33 = vstv %s2429_s20  ;;  %v229_v34 = vmul.f32 %v228_v22, %v2314_v53  ;;  %s2492_s19 = sld [smem:[#allocation3 + $0x110]]  ;;  %s2494_s0 = sld [smem:[#allocation3 + $0x111]] }
  0x3b   :  { %v186_v19 = vadd.f32 %v185_v63, %v182_v10  ;;  %v222_v30 = vrot.slane %v218_v20, 1  ;;  %v223_v31 = vrot.slane %v219_v21, 1  ;;  %v237_v35 = vmul.f32 %v236_v28, %v2314_v53  ;;  %s2513_s18 = sld [smem:[#allocation3 + $0x6c]]  ;;  %s2652_s20 = sld [smem:[#allocation3 + $0xe5]] }
  0x3c   :  { %v238_v36 = vmul.f32 %v236_v28, %v2316_v54  ;;  %v1187_v39 = vstv %s2431_s21  ;;  %v1192_v40 = vstv %s2436_s22  ;;  %v233_v43 = vmul.f32 %v232_v32, %v2359_v14  ;;  %s2508_s22 = sld [smem:[#allocation3 + $0x6b]]  ;;  %s2582_s16 = sld [smem:[#allocation3 + $0xe4]] }
  0x3d   :  { %v190_v29 = vadd.f32 %v189_v0, %v186_v19  ;;  %v224_v41 = vsel %vm139_vm9, %v222_v30, %v223_v31  ;;  %v241_v44 = vrot.slane %v237_v35, 1  ;;  %v1308_v48 = vstv %s2438_s23  ;;  %s2596_s21 = sld [smem:[#allocation3 + $0x18]]  ;;  %s2622_s23 = sld [smem:[#allocation3 + $0x1d]] }
  0x3e   :  { %v226_v42 = vadd.f32 %v224_v41, %v215_v27  ;;  %v242_v45 = vrot.slane %v238_v36, 1  ;;  %v1312_v49 = vstv %s2444_s24  ;;  %v255_v50 = vstv %s2453_s27  ;;  %s2515_s24 = sld [smem:[#allocation3 + $0x6d]]  ;;  %s2520_s27 = sld [smem:[#allocation3 + $0x83]] }
  0x3f   :  { %v201_v38 = vadd.f32 %v199_v11, %v190_v29  ;;  %v1317_v55 = vstv %s2446_s25  ;;  %v1433_v56 = vstv %s2449_s26  ;;  %v1437_v58 = vstv %s2456_s28  ;;  %s2522_s28 = sld [smem:[#allocation3 + $0x84]]  ;;  %s2658_s25 = sld [smem:[#allocation3 + $0xfb]] }
  0x40   :  { %v230_v59 = vadd.f32 %v229_v34, %v226_v42  ;;  %v1442_v61 = vstv %s2458_s1  ;;  %v247_v63 = vstv %s2466_s29  ;;  %v274_v0 = vstv %s2468_s30  ;;  %s2528_s29 = sld [smem:[#allocation3 + $0x85]]  ;;  %s2530_s30 = sld [smem:[#allocation3 + $0x9b]] }
  0x41   :  { %v204_v47 = vadd.f32 %v203_v2, %v201_v38  ;;  %v243_v2 = vsel %vm139_vm9, %v241_v44, %v242_v45  ;;  %v256_v10 = vmul.f32 %v255_v50, %v2325_v57  ;;  %v257_v11 = vmul.f32 %v255_v50, %v2334_v62  ;;  %s2660_s1 = sld [smem:[#allocation3 + $0x20]]  ;;  %s2676_s26 = sld [smem:[#allocation3 + $0x1e]] }
  0x42   :  { %v234_v1 = vadd.f32 %v233_v43, %v230_v59  ;;  %v1558_v12 = vstv %s2472_s4  ;;  %v251_v13 = vstv %s2480_s14  ;;  %v275_v16 = vmul.f32 %v274_v0, %v2371_v25  ;;  %s2543_s14 = sld [smem:[#allocation3 + $0xb3]]  ;;  %s2545_s4 = sld [smem:[#allocation3 + $0xb4]] }
  0x43   :  { %v205_v60 = vmax.f32 %v204_v47, 0.0  ;;  %v276_v17 = vmul.f32 %v274_v0, %v2373_v26  ;;  %v1562_v18 = vstv %s2474_s5  ;;  %v1567_v19 = vstv %s2477_s13  ;;  %s2549_s5 = sld [smem:[#allocation3 + $0xb5]]  ;;  %s2678_s6 = sld [smem:[#allocation3 + $0x1f]] }
  0x44   :  { %3982 = sst [smem:[#allocation14_spill]] %s2515_s24  ;;  %v266_v20 = vstv %s2486_s15  ;;  %v270_v21 = vstv %s2488_s17  ;;  %v1682_v22 = vstv %s2492_s19  ;;  %v1686_v27 = vstv %s2494_s0  ;;  %s2551_s15 = sld [smem:[#allocation3 + $0xcb]] }
  0x45   :  { %208 = vst [vmem:[#allocation2 + $0x1] sm:$0xff] %v205_v60  ;;  %v245_v28 = vadd.f32 %v243_v2, %v234_v1  ;;  %v248_v29 = vmul.f32 %v247_v63, %v2325_v57  ;;  %v1691_v30 = vstv %s2497_s3  ;;  %v252_v31 = vmul.f32 %v251_v13, %v2389_v37  ;;  %s2566_s17 = sld [smem:[#allocation3 + $0xcc]]  ;;  %s2603_s0 = sld [smem:[#allocation3 + $0x19]] }
  0x46   :  { %3983 = sst [smem:[#allocation15_spill]] %s2528_s29  ;;  %v260_v32 = vrot.slane %v256_v10, 1  ;;  %v261_v34 = vrot.slane %v257_v11, 1  ;;  %v2554_v35 = vmul.f32 %v266_v20, %v2371_v25  ;;  %v2557_v36 = vmul.f32 %v270_v21, %v2409_v46  ;;  %s2665_s29 = sld [smem:[#allocation3 + $0xfc]] }
  0x47   :  { %v279_v38 = vrot.slane %v275_v16, 1  ;;  %v280_v41 = vrot.slane %v276_v17, 1  ;;  %v816_v42 = vmul.f32 %v815_v4, %v205_v60  ;;  %v939_v43 = vmul.f32 %v938_v8, %v205_v60  ;;  %s2698_s9 = sld [smem:[#allocation3 + $0x115]]  ;;  %s2708_s19 = sld [smem:[#allocation3 + $0x21]] }
  0x48   :  { %v1063_v44 = vmul.f32 %v1062_v23, %v205_v60  ;;  %v285_v45 = vstv %s2506_s2  ;;  %v1188_v47 = vmul.f32 %v1187_v39, %v205_v60  ;;  %v1313_v50 = vmul.f32 %v1312_v49, %v205_v60  ;;  %s2727_s2 = sld [smem:[#allocation3 + $0x23]]  ;;  %s2731_s3 = sld [smem:[#allocation3 + $0x62]] }
  0x49   :  { %3984 = sst [smem:[#allocation16_spill]] %s2549_s5  ;;  %v1438_v59 = vmul.f32 %v1437_v58, %v205_v60  ;;  %v249_v63 = vadd.f32 %v248_v29, %v245_v28  ;;  %v2576_v8 = vmul.f32 %v1562_v18, %v205_v60  ;;  %v2578_v23 = vmul.f32 %v1686_v27, %v205_v60  ;;  %s2670_s5 = sld [smem:[#allocation3 + $0x1c]] }
  0x4a   :  { %v262_v39 = vsel %vm139_vm9, %v260_v32, %v261_v34  ;;  %v825_v49 = vstv %s2508_s22  ;;  %v2585_v58 = vsel %vm139_vm9, %v279_v38, %v280_v41  ;;  %v830_v0 = vstv %s2513_s18  ;;  %s2737_s13 = sld [smem:[#allocation3 + $0x6e]]  ;;  %s2766_s18 = sld [smem:[#allocation3 + $0x6f]] }
  0x4b   :  { %v835_v1 = vstv %s2515_s24  ;;  %v948_v2 = vstv %s2520_s27  ;;  %v953_v60 = vstv %s2522_s28  ;;  %v1072_v13 = vstv %s2530_s30  ;;  %s2605_s24 = sld [smem:[#allocation3 + $0x1a]]  ;;  %s2792_s28 = sld [smem:[#allocation3 + $0x87]] }
  0x4c   :  { %v2574_v4 = vld [vmem:[#allocation2] sm:$0xff]  ;;  %v1077_v16 = vstv %s2536_s11  ;;  %v253_v18 = vadd.f32 %v252_v31, %v249_v63  ;;  %v1197_v21 = vstv %s2543_s14  ;;  %v1202_v28 = vstv %s2545_s4  ;;  %s2774_s11 = sld [smem:[#allocation3 + $0x70]]  ;;  %s2784_s4 = sld [smem:[#allocation3 + $0x86]] }
  0x4d   :  { %v2590_v10 = vld [vmem:[#allocation2 + $0x2] sm:$0xff]  ;;  %v1309_v17 = vmul.f32 %v1308_v48, %v2574_v4  ;;  %v1434_v27 = vmul.f32 %v1433_v56, %v2574_v4  ;;  %v1322_v32 = vstv %s2551_s15  ;;  %v812_v48 = vmul.f32 %v811_v3, %v2574_v4  ;;  %s2801_s22 = sld [smem:[#allocation3 + $0x88]]  ;;  %s2803_s27 = sld [smem:[#allocation3 + $0x9e]] }
  0x4e   :  { %v935_v31 = vmul.f32 %v934_v7, %v2574_v4  ;;  %v1318_v38 = vmul.f32 %v1317_v55, %v2590_v10  ;;  %v1059_v56 = vmul.f32 %v1058_v15, %v2574_v4  ;;  %v1184_v41 = vmul.f32 %v1183_v33, %v2574_v4  ;;  %s2811_s30 = sld [smem:[#allocation3 + $0x9f]]  ;;  %s2816_s14 = sld [smem:[#allocation3 + $0xa0]] }
  0x4f   :  { %v1314_v34 = vadd.f32 %v1313_v50, %v1309_v17  ;;  %v1439_v63 = vadd.f32 %v1438_v59, %v1434_v27  ;;  %v1443_v3 = vmul.f32 %v1442_v61, %v2590_v10  ;;  %v1327_v7 = vstv %s2566_s17  ;;  %s2818_s15 = sld [smem:[#allocation3 + $0xb6]]  ;;  %s2829_s17 = sld [smem:[#allocation3 + $0x24]] }
  0x50   :  { %v1332_v50 = vstv %s2570_s7  ;;  %v1447_v55 = vstv %s2572_s10  ;;  %v821_v17 = vmul.f32 %v820_v5, %v2590_v10  ;;  %v264_v15 = vadd.f32 %v262_v39, %v253_v18  ;;  %s2831_s10 = sld [smem:[#allocation3 + $0x25]]  ;;  %s2841_s7 = sld [smem:[#allocation3 + $0x27]] }
  0x51   :  { %v2633_v29 = vadd.f32 %v1318_v38, %v1314_v34  ;;  %v2641_v20 = vadd.f32 %v1443_v3, %v1439_v63  ;;  %v1452_v11 = vstv %s2582_s16  ;;  %v817_v33 = vadd.f32 %v816_v42, %v812_v48  ;;  %s2839_s16 = sld [smem:[#allocation3 + $0x26]] }
  0x52   :  { %v940_v61 = vadd.f32 %v939_v43, %v935_v31  ;;  %v944_v59 = vmul.f32 %v943_v9, %v2590_v10  ;;  %v1068_v27 = vmul.f32 %v1067_v24, %v2590_v10  ;;  %v1064_v5 = vadd.f32 %v1063_v44, %v1059_v56 }
  0x53   :  { %v1189_v34 = vadd.f32 %v1188_v47, %v1184_v41  ;;  %v1193_v39 = vmul.f32 %v1192_v40, %v2590_v10  ;;  %v268_v18 = vadd.f32 %v2554_v35, %v264_v15  ;;  %v1559_v42 = vmul.f32 %v1558_v12, %v2574_v4 }
  0x54   :  { %v293_v9 = vstv %s2596_s21  ;;  %v296_v24 = vstv %s2603_s0  ;;  %v300_v43 = vstv %s2605_s24  ;;  %v2680_v12 = vadd.f32 %v821_v17, %v817_v33  ;;  %s2684_s24 = sld [smem:[#allocation3 + $0xfd]]  ;;  %s2686_s21 = sld [smem:[#allocation3 + $0x113]] }
  0x55   :  { %v272_v40 = vadd.f32 %v2557_v36, %v268_v18  ;;  %v294_v35 = vmul.f32 %v293_v9, %v2310_v51  ;;  %v297_v44 = vmul.f32 %v296_v24, %v2343_v6  ;;  %v301_v47 = vmul.f32 %v300_v43, %v2310_v51  ;;  %s2696_s0 = sld [smem:[#allocation3 + $0x114]]  ;;  %3990 = sst [smem:[#allocation9_spill]] %s2816_s14 }
  0x56   :  { %v2682_v48 = vadd.f32 %v944_v59, %v940_v61  ;;  %v302_v36 = vmul.f32 %v300_v43, %v2312_v52  ;;  %v319_v31 = vstv %s2622_s23  ;;  %v2690_v38 = vadd.f32 %v1068_v27, %v1064_v5  ;;  %s2710_s23 = sld [smem:[#allocation3 + $0x22]] }
  0x57   :  { %v1683_v56 = vmul.f32 %v1682_v22, %v2574_v4  ;;  %v283_v41 = vadd.f32 %v2585_v58, %v272_v40  ;;  %v305_v63 = vrot.slane %v301_v47, 1  ;;  %v2700_v3 = vadd.f32 %v1193_v39, %v1189_v34 }
  0x58   :  { %v1564_v17 = vadd.f32 %v2576_v8, %v1559_v42  ;;  %v298_v15 = vadd.f32 %v297_v44, %v294_v35  ;;  %v306_v33 = vrot.slane %v302_v36, 1  ;;  %v311_v22 = vstv %s2644_s12  ;;  %s2915_s12 = sld [smem:[#allocation3 + $0x2c]] }
  0x59   :  { %v286_v61 = vadd.f32 %v285_v45, %v283_v41  ;;  %v320_v4 = vmul.f32 %v319_v31, %v2314_v53  ;;  %v321_v58 = vmul.f32 %v319_v31, %v2316_v54  ;;  %v1568_v59 = vmul.f32 %v1567_v19, %v2590_v10 }
  0x5a   :  { %v1692_v8 = vmul.f32 %v1691_v30, %v2590_v10  ;;  %v1457_v27 = vstv %s2652_s20  ;;  %v307_v45 = vsel %vm139_vm9, %v305_v63, %v306_v33  ;;  %v1688_v5 = vadd.f32 %v2578_v23, %v1683_v56  ;;  %s2854_s20 = sld [smem:[#allocation3 + $0xb7]] }
  0x5b   :  { %v287_v34 = vmax.f32 %v286_v61, 0.0  ;;  %v1572_v39 = vstv %s2658_s25  ;;  %v338_v18 = vstv %s2660_s1  ;;  %v2723_v42 = vadd.f32 %v1568_v59, %v1564_v17  ;;  %s3992_s25 = sld [smem:[#allocation15_spill]]  ;;  %s2856_s1 = sld [smem:[#allocation3 + $0x29]] }
  0x5c   :  { %v309_v9 = vadd.f32 %v307_v45, %v298_v15  ;;  %v312_v19 = vmul.f32 %v311_v22, %v2314_v53  ;;  %v315_v24 = vstv %s2670_s5  ;;  %v324_v30 = vrot.slane %v320_v4, 1  ;;  %s2861_s5 = sld [smem:[#allocation3 + $0xb8]] }
  0x5d   :  { %291 = vst [vmem:[#allocation2 + $0x11] sm:$0xff] %v287_v34  ;;  %v325_v10 = vrot.slane %v321_v58, 1  ;;  %v330_v43 = vstv %s2676_s26  ;;  %v334_v23 = vstv %s2678_s6  ;;  %v1577_v40 = vstv %s2665_s29  ;;  %s3993_s29 = sld [smem:[#allocation16_spill]]  ;;  %s2873_s26 = sld [smem:[#allocation3 + $0xce]] }
  0x5e   :  { %v1582_v35 = vstv %s2684_s24  ;;  %v339_v44 = vmul.f32 %v338_v18, %v2325_v57  ;;  %v340_v47 = vmul.f32 %v338_v18, %v2334_v62  ;;  %v2739_v36 = vadd.f32 %v1692_v8, %v1688_v5  ;;  %s2875_s6 = sld [smem:[#allocation3 + $0x28]]  ;;  %s2909_s24 = sld [smem:[#allocation3 + $0xff]] }
  0x5f   :  { %v1696_v31 = vstv %s2686_s21  ;;  %v1701_v56 = vstv %s2696_s0  ;;  %v1706_v41 = vstv %s2698_s9  ;;  %v313_v63 = vadd.f32 %v312_v19, %v309_v9  ;;  %s2882_s21 = sld [smem:[#allocation3 + $0xcf]]  ;;  %s2884_s0 = sld [smem:[#allocation3 + $0xd0]] }
  0x60   :  { %v316_v17 = vmul.f32 %v315_v24, %v2359_v14  ;;  %v2746_v15 = vmul.f32 %v330_v43, %v2325_v57  ;;  %v2749_v33 = vmul.f32 %v334_v23, %v2389_v37  ;;  %v831_v61 = vmul.f32 %v830_v0, %v287_v34  ;;  %s2941_s9 = sld [smem:[#allocation3 + $0x118]] }
  0x61   :  { %v326_v22 = vsel %vm139_vm9, %v324_v30, %v325_v10  ;;  %v349_v4 = vstv %s2708_s19  ;;  %v353_v58 = vstv %s2710_s23  ;;  %v954_v59 = vmul.f32 %v953_v60, %v287_v34  ;;  %s2898_s19 = sld [smem:[#allocation3 + $0xe7]]  ;;  %s2904_s23 = sld [smem:[#allocation3 + $0xe8]] }
  0x62   :  { %v1078_v8 = vmul.f32 %v1077_v16, %v287_v34  ;;  %v343_v45 = vrot.slane %v339_v44, 1  ;;  %v344_v5 = vrot.slane %v340_v47, 1  ;;  %v1203_v18 = vmul.f32 %v1202_v28, %v287_v34 }
  0x63   :  { %v1328_v9 = vmul.f32 %v1327_v7, %v287_v34  ;;  %v1453_v0 = vmul.f32 %v1452_v11, %v287_v34  ;;  %v1578_v19 = vmul.f32 %v1577_v40, %v287_v34  ;;  %v2768_v60 = vmul.f32 %v1701_v56, %v287_v34 }
  0x64   :  { %v824_v24 = vld [vmem:[#allocation2 + $0x10] sm:$0xff]  ;;  %v317_v30 = vadd.f32 %v316_v17, %v313_v63  ;;  %v2771_v16 = vmul.f32 %v349_v4, %v2371_v25  ;;  %v357_v10 = vstv %s2727_s2  ;;  %v2781_v11 = vmul.f32 %v353_v58, %v2409_v46  ;;  %s2906_s2 = sld [smem:[#allocation3 + $0xfe]] }
  0x65   :  { %v826_v28 = vmul.f32 %v825_v49, %v824_v24  ;;  %v949_v7 = vmul.f32 %v948_v2, %v824_v24  ;;  %v368_v43 = vstv %s2731_s3  ;;  %v1073_v34 = vmul.f32 %v1072_v13, %v824_v24  ;;  %v2805_v13 = vld [vmem:[#allocation2 + $0x12] sm:$0xff]  ;;  %s2971_s3 = sld [smem:[#allocation3 + $0x63]] }
  0x66   :  { %v1198_v23 = vmul.f32 %v1197_v21, %v824_v24  ;;  %v345_v40 = vsel %vm139_vm9, %v343_v45, %v344_v5  ;;  %v840_v44 = vstv %s2737_s13  ;;  %v1323_v47 = vmul.f32 %v1322_v32, %v824_v24  ;;  %s3098_s13 = sld [smem:[#allocation3 + $0x3d]] }
  0x67   :  { %v827_v49 = vadd.f32 %v826_v28, %v2680_v12  ;;  %v950_v2 = vadd.f32 %v949_v7, %v2682_v48  ;;  %v2799_v56 = vmul.f32 %v357_v10, %v2371_v25  ;;  %v1074_v21 = vadd.f32 %v1073_v34, %v2690_v38 }
  0x68   :  { %v1199_v63 = vadd.f32 %v1198_v23, %v2700_v3  ;;  %v1448_v12 = vmul.f32 %v1447_v55, %v824_v24  ;;  %v328_v48 = vadd.f32 %v326_v22, %v317_v30  ;;  %v1324_v4 = vadd.f32 %v1323_v47, %v2633_v29 }
  0x69   :  { %v832_v32 = vadd.f32 %v831_v61, %v827_v49  ;;  %v955_v17 = vadd.f32 %v954_v59, %v950_v2  ;;  %v1573_v58 = vmul.f32 %v1572_v39, %v824_v24  ;;  %v1079_v38 = vadd.f32 %v1078_v8, %v1074_v21 }
  0x6a   :  { %v2820_v3 = vadd.f32 %v1203_v18, %v1199_v63  ;;  %v1449_v55 = vadd.f32 %v1448_v12, %v2641_v20  ;;  %v359_v22 = vmul.f32 %v357_v10, %v2373_v26  ;;  %v1329_v61 = vadd.f32 %v1328_v9, %v1324_v4 }
  0x6b   :  { %v1333_v29 = vmul.f32 %v1332_v50, %v2805_v13  ;;  %v1574_v59 = vadd.f32 %v1573_v58, %v2723_v42  ;;  %v845_v39 = vstv %s2766_s18  ;;  %v1458_v45 = vmul.f32 %v1457_v27, %v2805_v13  ;;  %s3014_s18 = sld [smem:[#allocation3 + $0xe9]] }
  0x6c   :  { %v1454_v8 = vadd.f32 %v1453_v0, %v1449_v55  ;;  %v1697_v20 = vmul.f32 %v1696_v31, %v824_v24  ;;  %v850_v5 = vstv %s2774_s11  ;;  %v332_v18 = vadd.f32 %v2746_v15, %v328_v48  ;;  %s3107_s11 = sld [smem:[#allocation3 + $0x3e]] }
  0x6d   :  { %v2843_v50 = vadd.f32 %v1333_v29, %v1329_v61  ;;  %v2845_v42 = vadd.f32 %v1578_v19, %v1574_v59  ;;  %v963_v9 = vstv %s2784_s4  ;;  %v362_v0 = vrot.slane %v2799_v56, 1  ;;  %s3132_s4 = sld [smem:[#allocation3 + $0x42]] }
  0x6e   :  { %v2849_v27 = vadd.f32 %v1458_v45, %v1454_v8  ;;  %v1698_v31 = vadd.f32 %v1697_v20, %v2739_v36  ;;  %v968_v24 = vstv %s2792_s28  ;;  %v336_v19 = vadd.f32 %v2749_v33, %v332_v18  ;;  %s3023_s28 = sld [smem:[#allocation3 + $0x33]] }
  0x6f   :  { %v363_v30 = vrot.slane %v359_v22, 1  ;;  %v973_v15 = vstv %s2801_s22  ;;  %v1087_v10 = vstv %s2803_s27  ;;  %v836_v36 = vmul.f32 %v835_v1, %v2805_v13  ;;  %s3053_s27 = sld [smem:[#allocation3 + $0x37]]  ;;  %s3197_s22 = sld [smem:[#allocation3 + $0x4c]] }
  0x70   :  { %v3994_v28 = vstv %s3992_s25  ;;  %v2870_v34 = vadd.f32 %v2768_v60, %v1698_v31  ;;  %v1092_v23 = vstv %s2811_s30  ;;  %v3995_v33 = vstv %s2538_s8  ;;  %s2896_s8 = sld [smem:[#allocation3 + $0xe6]]  ;;  %s2918_s25 = sld [smem:[#allocation3 + $0x100]] }
  0x71   :  { %v959_v7 = vmul.f32 %v3994_v28, %v2805_v13  ;;  %v1083_v49 = vmul.f32 %v3995_v33, %v2805_v13  ;;  %v347_v2 = vadd.f32 %v345_v40, %v336_v19  ;;  %v1097_v47 = vstv %s2816_s14  ;;  %s2956_s14 = sld [smem:[#allocation3 + $0x2f]]  ;;  %s3025_s30 = sld [smem:[#allocation3 + $0x34]] }
  0x72   :  { %v1212_v56 = vstv %s2818_s15  ;;  %v2886_v1 = vadd.f32 %v836_v36, %v832_v32  ;;  %v3996_v21 = vstv %s3993_s29  ;;  %v1583_v40 = vmul.f32 %v1582_v35, %v2805_v13  ;;  %s2939_s29 = sld [smem:[#allocation3 + $0x117]]  ;;  %s3055_s15 = sld [smem:[#allocation3 + $0x38]] }
  0x73   :  { %v2888_v60 = vadd.f32 %v959_v7, %v955_v17  ;;  %v1208_v63 = vmul.f32 %v3996_v21, %v2805_v13  ;;  %v2900_v12 = vadd.f32 %v1083_v49, %v1079_v38  ;;  %v351_v48 = vadd.f32 %v2771_v16, %v347_v2 }
  0x74   :  { %v364_v32 = vsel %vm139_vm9, %v362_v0, %v363_v30  ;;  %v376_v17 = vstv %s2829_s17  ;;  %v379_v4 = vstv %s2831_s10  ;;  %v383_v58 = vstv %s2839_s16  ;;  %s2923_s17 = sld [smem:[#allocation3 + $0x2a]]  ;;  %s2933_s10 = sld [smem:[#allocation3 + $0x2b]] }
  0x75   :  { %v377_v35 = vmul.f32 %v376_v17, %v2310_v51  ;;  %v394_v38 = vstv %s2841_s7  ;;  %v355_v16 = vadd.f32 %v2781_v11, %v351_v48  ;;  %v380_v55 = vmul.f32 %v379_v4, %v2343_v6  ;;  %s2935_s16 = sld [smem:[#allocation3 + $0x2d]]  ;;  %s2937_s7 = sld [smem:[#allocation3 + $0x116]] }
  0x76   :  { %v384_v22 = vmul.f32 %v383_v58, %v2310_v51  ;;  %v385_v61 = vmul.f32 %v383_v58, %v2312_v52  ;;  %v2926_v29 = vadd.f32 %v1208_v63, %v2820_v3  ;;  %v1707_v59 = vmul.f32 %v1706_v41, %v2805_v13 }
  0x77   :  { %v1217_v8 = vstv %s2854_s20  ;;  %v402_v11 = vstv %s2856_s1  ;;  %v366_v45 = vadd.f32 %v364_v32, %v355_v16  ;;  %v381_v20 = vadd.f32 %v380_v55, %v377_v35  ;;  %s2954_s1 = sld [smem:[#allocation3 + $0x2e]]  ;;  %s3039_s20 = sld [smem:[#allocation3 + $0x35]] }
  0x78   :  { %v388_v18 = vrot.slane %v384_v22, 1  ;;  %v389_v3 = vrot.slane %v385_v61, 1  ;;  %v395_v41 = vmul.f32 %v394_v38, %v2314_v53  ;;  %v398_v13 = vstv %s2875_s6  ;;  %s2973_s6 = sld [smem:[#allocation3 + $0xa1]] }
  0x79   :  { %v403_v31 = vmul.f32 %v402_v11, %v2314_v53  ;;  %v404_v0 = vmul.f32 %v402_v11, %v2316_v54  ;;  %v2948_v19 = vadd.f32 %v1583_v40, %v2845_v42  ;;  %v369_v30 = vadd.f32 %v368_v43, %v366_v45 }
  0x7a   :  { %v1222_v36 = vstv %s2861_s5  ;;  %v390_v28 = vsel %vm139_vm9, %v388_v18, %v389_v3  ;;  %v1337_v7 = vstv %s2873_s26  ;;  %v1342_v33 = vstv %s2882_s21  ;;  %s2979_s21 = sld [smem:[#allocation3 + $0xb9]]  ;;  %s3344_s5 = sld [smem:[#allocation3 + $0x76]] }
  0x7b   :  { %v1347_v49 = vstv %s2884_s0  ;;  %v392_v2 = vadd.f32 %v390_v28, %v381_v20  ;;  %v370_v42 = vmax.f32 %v369_v30, 0.0  ;;  %v1462_v21 = vstv %s2896_s8  ;;  %s3072_s26 = sld [smem:[#allocation3 + $0x39]]  ;;  %s3079_s8 = sld [smem:[#allocation3 + $0x3a]] }
  0x7c   :  { %v1467_v43 = vstv %s2898_s19  ;;  %v399_v63 = vmul.f32 %v398_v13, %v2359_v14  ;;  %v407_v48 = vrot.slane %v403_v31, 1  ;;  %v408_v32 = vrot.slane %v404_v0, 1  ;;  %s2981_s19 = sld [smem:[#allocation3 + $0x30]]  ;;  %s3348_s0 = sld [smem:[#allocation3 + $0x77]] }
  0x7d   :  { %v396_v40 = vadd.f32 %v395_v41, %v392_v2  ;;  %v421_v17 = vstv %s2915_s12  ;;  %v2966_v35 = vadd.f32 %v1707_v59, %v2870_v34  ;;  %374 = vst [vmem:[#allocation2 + $0x21] sm:$0xff] %v370_v42  ;;  %v1472_v4 = vstv %s2904_s23  ;;  %s2998_s12 = sld [smem:[#allocation3 + $0x32]]  ;;  %s3404_s23 = sld [smem:[#allocation3 + $0x7b]] }
  0x7e   :  { %v1587_v58 = vstv %s2906_s2  ;;  %v413_v38 = vstv %s2923_s17  ;;  %v1592_v16 = vstv %s2909_s24  ;;  %v1597_v55 = vstv %s2918_s25  ;;  %s2986_s24 = sld [smem:[#allocation3 + $0x31]]  ;;  %s3046_s17 = sld [smem:[#allocation3 + $0x36]] }
  0x7f   :  { %v417_v22 = vstv %s2933_s10  ;;  %v432_v61 = vstv %s2935_s16  ;;  %v1711_v34 = vstv %s2937_s7  ;;  %v400_v59 = vadd.f32 %v399_v63, %v396_v40  ;;  %s3081_s10 = sld [smem:[#allocation3 + $0x3b]]  ;;  %s3096_s16 = sld [smem:[#allocation3 + $0x3c]] }
  0x80   :  { %v422_v11 = vmul.f32 %v421_v17, %v2325_v57  ;;  %v423_v45 = vmul.f32 %v421_v17, %v2334_v62  ;;  %v1716_v20 = vstv %s2939_s29  ;;  %v1721_v18 = vstv %s2941_s9  ;;  %s3110_s29 = sld [smem:[#allocation3 + $0x3f]]  ;;  %s3406_s2 = sld [smem:[#allocation3 + $0x8d]] }
  0x81   :  { %v409_v3 = vsel %vm139_vm9, %v407_v48, %v408_v32  ;;  %v414_v41 = vmul.f32 %v413_v38, %v2325_v57  ;;  %v418_v13 = vmul.f32 %v417_v22, %v2389_v37  ;;  %v2994_v31 = vmul.f32 %v432_v61, %v2371_v25  ;;  %s3422_s25 = sld [smem:[#allocation3 + $0x7c]]  ;;  %s3428_s7 = sld [smem:[#allocation3 + $0x8e]] }
  0x82   :  { %v436_v0 = vstv %s2954_s1  ;;  %v440_v30 = vstv %s2956_s14  ;;  %v3002_v28 = vmul.f32 %v845_v39, %v370_v42  ;;  %v3006_v2 = vmul.f32 %v968_v24, %v370_v42  ;;  %s3012_s14 = sld [smem:[#allocation3 + $0xd1]]  ;;  %s3115_s1 = sld [smem:[#allocation3 + $0x40]] }
  0x83   :  { %v1093_v63 = vmul.f32 %v1092_v23, %v370_v42  ;;  %v1218_v40 = vmul.f32 %v1217_v8, %v370_v42  ;;  %v1343_v48 = vmul.f32 %v1342_v33, %v370_v42  ;;  %v411_v32 = vadd.f32 %v409_v3, %v400_v59  ;;  %s3430_s9 = sld [smem:[#allocation3 + $0x8f]] }
  0x84   :  { %v426_v17 = vrot.slane %v422_v11, 1  ;;  %v427_v38 = vrot.slane %v423_v45, 1  ;;  %v3016_v39 = vld [vmem:[#allocation2 + $0x20] sm:$0xff]  ;;  %v1468_v24 = vmul.f32 %v1467_v43, %v370_v42  ;;  %v3018_v23 = vmul.f32 %v1592_v16, %v370_v42 }
  0x85   :  { %v3020_v8 = vmul.f32 %v1716_v20, %v370_v42  ;;  %v441_v33 = vmul.f32 %v440_v30, %v2371_v25  ;;  %v437_v22 = vmul.f32 %v436_v0, %v2409_v46  ;;  %v442_v61 = vmul.f32 %v440_v30, %v2373_v26 }
  0x86   :  { %v451_v59 = vstv %s2971_s3  ;;  %v1088_v43 = vmul.f32 %v1087_v10, %v3016_v39  ;;  %v1213_v42 = vmul.f32 %v1212_v56, %v3016_v39  ;;  %v459_v45 = vstv %s2981_s19  ;;  %s3117_s19 = sld [smem:[#allocation3 + $0x41]]  ;;  %s3144_s3 = sld [smem:[#allocation3 + $0x43]] }
  0x87   :  { %v1338_v20 = vmul.f32 %v1337_v7, %v3016_v39  ;;  %v415_v3 = vadd.f32 %v414_v41, %v411_v32  ;;  %v428_v0 = vsel %vm139_vm9, %v426_v17, %v427_v38  ;;  %v462_v30 = vstv %s2986_s24  ;;  %v3060_v17 = vld [vmem:[#allocation2 + $0x22] sm:$0xff]  ;;  %s3137_s24 = sld [smem:[#allocation3 + $0x44]] }
  0x88   :  { %v1089_v11 = vadd.f32 %v1088_v43, %v2900_v12  ;;  %v1214_v10 = vadd.f32 %v1213_v42, %v2926_v29  ;;  %v1463_v56 = vmul.f32 %v1462_v21, %v3016_v39  ;;  %v445_v16 = vrot.slane %v441_v33, 1 }
  0x89   :  { %v1339_v7 = vadd.f32 %v1338_v20, %v2843_v50  ;;  %v446_v41 = vrot.slane %v442_v61, 1  ;;  %v460_v32 = vmul.f32 %v459_v45, %v2310_v51  ;;  %v466_v12 = vstv %s2998_s12  ;;  %s3147_s12 = sld [smem:[#allocation3 + $0x64]] }
  0x8a   :  { %v3062_v29 = vadd.f32 %v1093_v63, %v1089_v11  ;;  %v3064_v21 = vadd.f32 %v1218_v40, %v1214_v10  ;;  %v1464_v38 = vadd.f32 %v1463_v56, %v2849_v27  ;;  %v463_v33 = vmul.f32 %v462_v30, %v2343_v6 }
  0x8b   :  { %v3068_v43 = vadd.f32 %v1343_v48, %v1339_v7  ;;  %v419_v50 = vadd.f32 %v418_v13, %v415_v3  ;;  %v467_v63 = vmul.f32 %v466_v12, %v2310_v51  ;;  %v477_v11 = vstv %s3023_s28  ;;  %s3156_s28 = sld [smem:[#allocation3 + $0x45]] }
  0x8c   :  { %v3074_v45 = vadd.f32 %v1468_v24, %v1464_v38  ;;  %v481_v20 = vstv %s3025_s30  ;;  %v3086_v27 = vmul.f32 %v840_v44, %v3016_v39  ;;  %v3091_v13 = vmul.f32 %v850_v5, %v3060_v17  ;;  %s3160_s30 = sld [smem:[#allocation3 + $0x46]] }
  0x8d   :  { %v430_v40 = vadd.f32 %v428_v0, %v419_v50  ;;  %v468_v48 = vmul.f32 %v466_v12, %v2312_v52  ;;  %v447_v24 = vsel %vm139_vm9, %v445_v16, %v446_v41  ;;  %v464_v3 = vadd.f32 %v463_v33, %v460_v32 }
  0x8e   :  { %v471_v30 = vrot.slane %v467_v63, 1  ;;  %v485_v10 = vstv %s3039_s20  ;;  %v478_v0 = vmul.f32 %v477_v11, %v2314_v53  ;;  %v496_v12 = vstv %s3046_s17  ;;  %s3162_s20 = sld [smem:[#allocation3 + $0x47]]  ;;  %s3165_s17 = sld [smem:[#allocation3 + $0x48]] }
  0x8f   :  { %v434_v44 = vadd.f32 %v2994_v31, %v430_v40  ;;  %v472_v56 = vrot.slane %v468_v48, 1  ;;  %v486_v7 = vmul.f32 %v485_v10, %v2314_v53  ;;  %v487_v5 = vmul.f32 %v485_v10, %v2316_v54 }
  0x90   :  { %v500_v38 = vstv %s3053_s27  ;;  %v504_v16 = vstv %s3055_s15  ;;  %v482_v63 = vmul.f32 %v481_v20, %v2359_v14  ;;  %s3172_s15 = sld [smem:[#allocation3 + $0x49]]  ;;  %s3276_s27 = sld [smem:[#allocation3 + $0x5a]] }
  0x91   :  { %v438_v41 = vadd.f32 %v437_v22, %v434_v44  ;;  %v473_v32 = vsel %vm139_vm9, %v471_v30, %v472_v56  ;;  %v490_v33 = vrot.slane %v486_v7, 1  ;;  %v491_v31 = vrot.slane %v487_v5, 1 }
  0x92   :  { %v475_v50 = vadd.f32 %v473_v32, %v464_v3  ;;  %v505_v11 = vmul.f32 %v504_v16, %v2325_v57  ;;  %v506_v40 = vmul.f32 %v504_v16, %v2334_v62  ;;  %v3122_v22 = vmul.f32 %v963_v9, %v3016_v39 }
  0x93   :  { %v449_v48 = vadd.f32 %v447_v24, %v438_v41  ;;  %v497_v30 = vmul.f32 %v496_v12, %v2325_v57  ;;  %v515_v3 = vstv %s3072_s26  ;;  %v501_v20 = vmul.f32 %v500_v38, %v2389_v37  ;;  %s3174_s26 = sld [smem:[#allocation3 + $0x4a]] }
  0x94   :  { %v479_v10 = vadd.f32 %v478_v0, %v475_v50  ;;  %v519_v44 = vstv %s3079_s8  ;;  %v523_v56 = vstv %s3081_s10  ;;  %v492_v5 = vsel %vm139_vm9, %v490_v33, %v491_v31  ;;  %s3185_s8 = sld [smem:[#allocation3 + $0x4b]]  ;;  %s3201_s10 = sld [smem:[#allocation3 + $0x4d]] }
  0x95   :  { %v452_v7 = vadd.f32 %v451_v59, %v449_v48  ;;  %v509_v16 = vrot.slane %v505_v11, 1  ;;  %v510_v32 = vrot.slane %v506_v40, 1  ;;  %v516_v24 = vmul.f32 %v515_v3, %v2371_v25 }
  0x96   :  { %v483_v9 = vadd.f32 %v482_v63, %v479_v10  ;;  %v542_v41 = vstv %s3096_s16  ;;  %v545_v12 = vstv %s3098_s13  ;;  %v520_v38 = vmul.f32 %v519_v44, %v2409_v46  ;;  %s3205_s16 = sld [smem:[#allocation3 + $0x4e]]  ;;  %s3209_s13 = sld [smem:[#allocation3 + $0x4f]] }
  0x97   :  { %v3139_v0 = vmax.f32 %v452_v7, 0.0  ;;  %v524_v59 = vmul.f32 %v523_v56, %v2371_v25  ;;  %v543_v33 = vmul.f32 %v542_v41, %v2310_v51  ;;  %v525_v50 = vmul.f32 %v523_v56, %v2373_v26 }
  0x98   :  { %v494_v31 = vadd.f32 %v492_v5, %v483_v9  ;;  %v546_v63 = vmul.f32 %v545_v12, %v2343_v6  ;;  %v549_v11 = vstv %s3107_s11  ;;  %v511_v40 = vsel %vm139_vm9, %v509_v16, %v510_v32  ;;  %s3211_s11 = sld [smem:[#allocation3 + $0x50]] }
  0x99   :  { %457 = vst [vmem:[#allocation2 + $0x31] sm:$0xff] %v3139_v0  ;;  %v550_v48 = vmul.f32 %v549_v11, %v2310_v51  ;;  %v551_v3 = vmul.f32 %v549_v11, %v2312_v52  ;;  %v560_v10 = vstv %s3110_s29  ;;  %v564_v5 = vstv %s3115_s1  ;;  %s3219_s29 = sld [smem:[#allocation3 + $0x51]]  ;;  %s3222_s1 = sld [smem:[#allocation3 + $0x65]] }
  0x9a   :  { %v498_v44 = vadd.f32 %v497_v30, %v494_v31  ;;  %v547_v7 = vadd.f32 %v546_v63, %v543_v33  ;;  %v568_v56 = vstv %s3117_s19  ;;  %v528_v9 = vrot.slane %v524_v59, 1  ;;  %s3229_s19 = sld [smem:[#allocation3 + $0x53]] }
  0x9b   :  { %v554_v41 = vrot.slane %v550_v48, 1  ;;  %v555_v12 = vrot.slane %v551_v3, 1  ;;  %v569_v16 = vmul.f32 %v568_v56, %v2314_v53  ;;  %v529_v30 = vrot.slane %v525_v50, 1 }
  0x9c   :  { %v502_v32 = vadd.f32 %v501_v20, %v498_v44  ;;  %v561_v33 = vmul.f32 %v560_v10, %v2314_v53  ;;  %v570_v31 = vmul.f32 %v568_v56, %v2316_v54  ;;  %v565_v59 = vmul.f32 %v564_v5, %v2359_v14 }
  0x9d   :  { %v556_v63 = vsel %vm139_vm9, %v554_v41, %v555_v12  ;;  %v573_v11 = vrot.slane %v569_v16, 1  ;;  %v579_v48 = vstv %s3132_s4  ;;  %v587_v44 = vstv %s3137_s24  ;;  %s3231_s4 = sld [smem:[#allocation3 + $0x54]]  ;;  %s3234_s24 = sld [smem:[#allocation3 + $0x55]] }
  0x9e   :  { %v513_v3 = vadd.f32 %v511_v40, %v502_v32  ;;  %v558_v20 = vadd.f32 %v556_v63, %v547_v7  ;;  %v574_v50 = vrot.slane %v570_v31, 1  ;;  %v3180_v10 = vmul.f32 %v973_v15, %v3060_v17 }
  0x9f   :  { %v583_v56 = vstv %s3144_s3  ;;  %v588_v5 = vmul.f32 %v587_v44, %v2325_v57  ;;  %v589_v41 = vmul.f32 %v587_v44, %v2334_v62  ;;  %v3190_v12 = vmul.f32 %v1097_v47, %v3060_v17  ;;  %s3240_s3 = sld [smem:[#allocation3 + $0x52]] }
  0xa0   :  { %v517_v40 = vadd.f32 %v516_v24, %v513_v3  ;;  %v534_v7 = vstv %s3147_s12  ;;  %v562_v16 = vadd.f32 %v561_v33, %v558_v20  ;;  %v530_v15 = vsel %vm139_vm9, %v528_v9, %v529_v30  ;;  %s3246_s12 = sld [smem:[#allocation3 + $0x56]] }
  0xa1   :  { %v575_v32 = vsel %vm139_vm9, %v573_v11, %v574_v50  ;;  %v580_v31 = vmul.f32 %v579_v48, %v2325_v57  ;;  %v598_v63 = vstv %s3156_s28  ;;  %v584_v61 = vmul.f32 %v583_v56, %v2389_v37  ;;  %s3252_s28 = sld [smem:[#allocation3 + $0x57]] }
  0xa2   :  { %v521_v44 = vadd.f32 %v520_v38, %v517_v40  ;;  %v566_v42 = vadd.f32 %v565_v59, %v562_v16  ;;  %v602_v47 = vstv %s3160_s30  ;;  %v592_v24 = vrot.slane %v588_v5, 1  ;;  %s3256_s30 = sld [smem:[#allocation3 + $0x58]] }
  0xa3   :  { %v593_v33 = vrot.slane %v589_v41, 1  ;;  %v606_v3 = vstv %s3162_s20  ;;  %v625_v9 = vstv %s3165_s17  ;;  %v599_v48 = vmul.f32 %v598_v63, %v2371_v25  ;;  %s3262_s20 = sld [smem:[#allocation3 + $0x59]]  ;;  %s3268_s17 = sld [smem:[#allocation3 + $0x5c]] }
  0xa4   :  { %v532_v30 = vadd.f32 %v530_v15, %v521_v44  ;;  %v577_v11 = vadd.f32 %v575_v32, %v566_v42  ;;  %v607_v38 = vmul.f32 %v606_v3, %v2371_v25  ;;  %v608_v59 = vmul.f32 %v606_v3, %v2373_v26 }
  0xa5   :  { %v626_v20 = vmul.f32 %v625_v9, %v2310_v51  ;;  %v628_v50 = vstv %s3172_s15  ;;  %v632_v56 = vstv %s3174_s26  ;;  %v603_v40 = vmul.f32 %v602_v47, %v2409_v46  ;;  %s3278_s15 = sld [smem:[#allocation3 + $0x5b]]  ;;  %s3284_s26 = sld [smem:[#allocation3 + $0x66]] }
  0xa6   :  { %v535_v5 = vadd.f32 %v534_v7, %v532_v30  ;;  %v581_v41 = vadd.f32 %v580_v31, %v577_v11  ;;  %v629_v42 = vmul.f32 %v628_v50, %v2343_v6  ;;  %v594_v16 = vsel %vm139_vm9, %v592_v24, %v593_v33 }
  0xa7   :  { %v633_v15 = vmul.f32 %v632_v56, %v2310_v51  ;;  %v634_v32 = vmul.f32 %v632_v56, %v2312_v52  ;;  %v643_v63 = vstv %s3185_s8  ;;  %v611_v31 = vrot.slane %v607_v38, 1  ;;  %s3288_s8 = sld [smem:[#allocation3 + $0x5f]] }
  0xa8   :  { %v3227_v44 = vmax.f32 %v535_v5, 0.0  ;;  %v585_v7 = vadd.f32 %v584_v61, %v581_v41  ;;  %v630_v47 = vadd.f32 %v629_v42, %v626_v20  ;;  %v612_v3 = vrot.slane %v608_v59, 1 }
  0xa9   :  { %v637_v24 = vrot.slane %v633_v15, 1  ;;  %v638_v33 = vrot.slane %v634_v32, 1  ;;  %v647_v9 = vstv %s3197_s22  ;;  %v644_v61 = vmul.f32 %v643_v63, %v2314_v53  ;;  %s3296_s22 = sld [smem:[#allocation3 + $0x5d]] }
  0xaa   :  { %540 = vst [vmem:[#allocation2 + $0x41] sm:$0xff] %v3227_v44  ;;  %v596_v30 = vadd.f32 %v594_v16, %v585_v7  ;;  %v648_v11 = vmul.f32 %v647_v9, %v2359_v14  ;;  %v651_v38 = vstv %s3201_s10  ;;  %v662_v56 = vstv %s3205_s16  ;;  %s3301_s10 = sld [smem:[#allocation3 + $0x71]]  ;;  %s3307_s16 = sld [smem:[#allocation3 + $0x72]] }
  0xab   :  { %v639_v20 = vsel %vm139_vm9, %v637_v24, %v638_v33  ;;  %v652_v59 = vmul.f32 %v651_v38, %v2314_v53  ;;  %v653_v50 = vmul.f32 %v651_v38, %v2316_v54  ;;  %v666_v42 = vstv %s3209_s13  ;;  %s3309_s13 = sld [smem:[#allocation3 + $0x73]] }
  0xac   :  { %v600_v5 = vadd.f32 %v599_v48, %v596_v30  ;;  %v641_v41 = vadd.f32 %v639_v20, %v630_v47  ;;  %v670_v16 = vstv %s3211_s11  ;;  %v613_v15 = vsel %vm139_vm9, %v611_v31, %v612_v3  ;;  %s3315_s11 = sld [smem:[#allocation3 + $0x5e]] }
  0xad   :  { %v656_v32 = vrot.slane %v652_v59, 1  ;;  %v657_v63 = vrot.slane %v653_v50, 1  ;;  %v671_v7 = vmul.f32 %v670_v16, %v2325_v57  ;;  %v672_v9 = vmul.f32 %v670_v16, %v2334_v62 }
  0xae   :  { %v604_v24 = vadd.f32 %v603_v40, %v600_v5  ;;  %v645_v33 = vadd.f32 %v644_v61, %v641_v41  ;;  %v681_v38 = vstv %s3219_s29  ;;  %v617_v48 = vstv %s3222_s1  ;;  %s3317_s29 = sld [smem:[#allocation3 + $0x74]]  ;;  %s3328_s1 = sld [smem:[#allocation3 + $0x75]] }
  0xaf   :  { %v658_v31 = vsel %vm139_vm9, %v656_v32, %v657_v63  ;;  %v663_v47 = vmul.f32 %v662_v56, %v2325_v57  ;;  %v667_v3 = vmul.f32 %v666_v42, %v2389_v37  ;;  %v675_v61 = vrot.slane %v671_v7, 1 }
  0xb0   :  { %v615_v30 = vadd.f32 %v613_v15, %v604_v24  ;;  %v649_v40 = vadd.f32 %v648_v11, %v645_v33  ;;  %v676_v20 = vrot.slane %v672_v9, 1  ;;  %v682_v59 = vmul.f32 %v681_v38, %v2371_v25 }
  0xb1   :  { %v689_v50 = vstv %s3229_s19  ;;  %v708_v5 = vstv %s3231_s4  ;;  %v711_v41 = vstv %s3234_s24  ;;  %v685_v63 = vstv %s3240_s3  ;;  %s3351_s19 = sld [smem:[#allocation3 + $0x67]]  ;;  %s3356_s4 = sld [smem:[#allocation3 + $0x78]] }
  0xb2   :  { %v618_v16 = vadd.f32 %v617_v48, %v615_v30  ;;  %v660_v32 = vadd.f32 %v658_v31, %v649_v40  ;;  %v690_v56 = vmul.f32 %v689_v50, %v2371_v25  ;;  %v691_v42 = vmul.f32 %v689_v50, %v2373_v26  ;;  %s3366_s24 = sld [smem:[#allocation3 + $0x89]]  ;;  %s3371_s3 = sld [smem:[#allocation3 + $0x8a]] }
  0xb3   :  { %v709_v15 = vmul.f32 %v708_v5, %v2310_v51  ;;  %v712_v11 = vmul.f32 %v711_v41, %v2343_v6  ;;  %v715_v7 = vstv %s3246_s12  ;;  %v677_v9 = vsel %vm139_vm9, %v675_v61, %v676_v20  ;;  %s3378_s12 = sld [smem:[#allocation3 + $0x8b]] }
  0xb4   :  { %v3280_v24 = vmax.f32 %v618_v16, 0.0  ;;  %v664_v33 = vadd.f32 %v663_v47, %v660_v32  ;;  %v716_v38 = vmul.f32 %v715_v7, %v2310_v51  ;;  %v694_v48 = vrot.slane %v690_v56, 1 }
  0xb5   :  { %v695_v31 = vrot.slane %v691_v42, 1  ;;  %v717_v6 = vmul.f32 %v715_v7, %v2312_v52  ;;  %v726_v30 = vstv %s3252_s28  ;;  %v713_v50 = vadd.f32 %v712_v11, %v709_v15  ;;  %s3380_s28 = sld [smem:[#allocation3 + $0x8c]] }
  0xb6   :  { %623 = vst [vmem:[#allocation2 + $0x51] sm:$0xff] %v3280_v24  ;;  %v668_v40 = vadd.f32 %v667_v3, %v664_v33  ;;  %v720_v47 = vrot.slane %v716_v38, 1  ;;  %v730_v5 = vstv %s3256_s30  ;;  %v842_v61 = vadd.f32 %v3086_v27, %v2886_v1  ;;  %s3391_s30 = sld [smem:[#allocation3 + $0x79]] }
  0xb7   :  { %v686_v51 = vmul.f32 %v685_v63, %v2409_v46  ;;  %v721_v20 = vrot.slane %v717_v6, 1  ;;  %v734_v41 = vstv %s3262_s20  ;;  %v727_v16 = vmul.f32 %v726_v30, %v2314_v53  ;;  %s3393_s20 = sld [smem:[#allocation3 + $0x7a]] }
  0xb8   :  { %v679_v52 = vadd.f32 %v677_v9, %v668_v40  ;;  %v735_v3 = vmul.f32 %v734_v41, %v2314_v53  ;;  %v736_v32 = vmul.f32 %v734_v41, %v2316_v54  ;;  %v696_v56 = vsel %vm139_vm9, %v694_v48, %v695_v31 }
  0xb9   :  { %v722_v1 = vsel %vm139_vm9, %v720_v47, %v721_v20  ;;  %v731_v27 = vmul.f32 %v730_v5, %v2359_v14  ;;  %v753_v63 = vstv %s3268_s17  ;;  %v745_v54 = vstv %s3276_s27  ;;  %s3433_s17 = sld [smem:[#allocation3 + $0x7d]]  ;;  %s3439_s27 = sld [smem:[#allocation3 + $0x7e]] }
  0xba   :  { %v683_v42 = vadd.f32 %v682_v59, %v679_v52  ;;  %v724_v15 = vadd.f32 %v722_v1, %v713_v50  ;;  %v739_v11 = vrot.slane %v735_v3, 1  ;;  %v740_v53 = vrot.slane %v736_v32, 1  ;;  %v3361_v1 = vld [vmem:[#allocation2 + $0x32] sm:$0xff] }
  0xbb   :  { %v749_v7 = vstv %s3278_s15  ;;  %v754_v33 = vmul.f32 %v753_v63, %v2325_v57  ;;  %v755_v9 = vmul.f32 %v753_v63, %v2334_v62  ;;  %v3321_v14 = vadd.f32 %v3122_v22, %v2888_v60  ;;  %v3338_v60 = vld [vmem:[#allocation2 + $0x30] sm:$0xff]  ;;  %s3441_s15 = sld [smem:[#allocation3 + $0x7f]] }
  0xbc   :  { %v3326_v59 = vmul.f32 %v1222_v36, %v3060_v17  ;;  %v687_v38 = vadd.f32 %v686_v51, %v683_v42  ;;  %v728_v48 = vadd.f32 %v727_v16, %v724_v15  ;;  %v3333_v62 = vmul.f32 %v1347_v49, %v3060_v17 }
  0xbd   :  { %v700_v31 = vstv %s3284_s26  ;;  %v741_v6 = vsel %vm139_vm9, %v739_v11, %v740_v53  ;;  %v772_v30 = vstv %s3288_s8  ;;  %v746_v36 = vmul.f32 %v745_v54, %v2325_v57  ;;  %s3447_s26 = sld [smem:[#allocation3 + $0x90]]  ;;  %s3455_s8 = sld [smem:[#allocation3 + $0x91]] }
  0xbe   :  { %v698_v22 = vadd.f32 %v696_v56, %v687_v38  ;;  %v732_v40 = vadd.f32 %v731_v27, %v728_v48  ;;  %v750_v50 = vmul.f32 %v749_v7, %v2389_v37  ;;  %v758_v47 = vrot.slane %v754_v33, 1 }
  0xbf   :  { %v759_v5 = vrot.slane %v755_v9, 1  ;;  %v764_v51 = vstv %s3296_s22  ;;  %v847_v49 = vadd.f32 %v3002_v28, %v842_v61  ;;  %v773_v52 = vmul.f32 %v772_v30, %v2371_v25  ;;  %s3457_s22 = sld [smem:[#allocation3 + $0x101]] }
  0xc0   :  { %v701_v20 = vadd.f32 %v700_v31, %v698_v22  ;;  %v743_v41 = vadd.f32 %v741_v6, %v732_v40  ;;  %v855_v16 = vstv %s3301_s10  ;;  %v774_v57 = vmul.f32 %v772_v30, %v2373_v26  ;;  %v3364_v26 = vld [vmem:[#allocation2 + $0x40] sm:$0xff]  ;;  %s3464_s10 = sld [smem:[#allocation3 + $0x92]] }
  0xc1   :  { %v852_v37 = vadd.f32 %v3091_v13, %v847_v49  ;;  %v856_v28 = vmul.f32 %v855_v16, %v3338_v60  ;;  %v860_v61 = vstv %s3307_s16  ;;  %v865_v27 = vstv %s3309_s13  ;;  %s3466_s16 = sld [smem:[#allocation3 + $0x102]]  ;;  %s3477_s13 = sld [smem:[#allocation3 + $0x93]] }
  0xc2   :  { %v3358_v3 = vmax.f32 %v701_v20, 0.0  ;;  %v747_v32 = vadd.f32 %v746_v36, %v743_v41  ;;  %v861_v56 = vmul.f32 %v860_v61, %v3139_v0  ;;  %v760_v13 = vsel %vm139_vm9, %v758_v47, %v759_v5  ;;  %v3401_v36 = vld [vmem:[#allocation2 + $0x42] sm:$0xff]  ;;  %v3416_v47 = vld [vmem:[#allocation2 + $0x50] sm:$0xff] }
  0xc3   :  { %v768_v63 = vstv %s3315_s11  ;;  %v857_v42 = vadd.f32 %v856_v28, %v852_v37  ;;  %v870_v15 = vstv %s3317_s29  ;;  %v765_v53 = vmul.f32 %v764_v51, %v2371_v25  ;;  %s3479_s11 = sld [smem:[#allocation3 + $0x94]]  ;;  %s3485_s29 = sld [smem:[#allocation3 + $0x103]] }
  0xc4   :  { %706 = vst [vmem:[#allocation2 + $0x61] sm:$0xff] %v3358_v3  ;;  %v751_v11 = vadd.f32 %v750_v50, %v747_v32  ;;  %v777_v54 = vrot.slane %v773_v52, 1  ;;  %v875_v7 = vstv %s3328_s1  ;;  %v778_v33 = vrot.slane %v774_v57, 1  ;;  %s3487_s1 = sld [smem:[#allocation3 + $0x104]] }
  0xc5   :  { %v862_v9 = vadd.f32 %v861_v56, %v857_v42  ;;  %v866_v38 = vmul.f32 %v865_v27, %v3361_v1  ;;  %v871_v48 = vmul.f32 %v870_v15, %v3364_v26  ;;  %v3385_v31 = vmul.f32 %v1472_v4, %v3060_v17 }
  0xc6   :  { %v1588_v25 = vmul.f32 %v1587_v58, %v3016_v39  ;;  %v762_v6 = vadd.f32 %v760_v13, %v751_v11  ;;  %v769_v30 = vmul.f32 %v768_v63, %v2409_v46  ;;  %v3398_v22 = vmul.f32 %v1597_v55, %v3060_v17 }
  0xc7   :  { %v867_v40 = vadd.f32 %v866_v38, %v862_v9  ;;  %v876_v4 = vmul.f32 %v875_v7, %v3227_v44  ;;  %v880_v58 = vstv %s3344_s5  ;;  %v1712_v46 = vmul.f32 %v1711_v34, %v3016_v39  ;;  %s3496_s5 = sld [smem:[#allocation3 + $0x128]] }
  0xc8   :  { %v3414_v50 = vmul.f32 %v1721_v18, %v3060_v17  ;;  %v766_v55 = vadd.f32 %v765_v53, %v762_v6  ;;  %v885_v5 = vstv %s3348_s0  ;;  %v779_v51 = vsel %vm139_vm9, %v777_v54, %v778_v33  ;;  %s3501_s0 = sld [smem:[#allocation3 + $0x105]] }
  0xc9   :  { %v783_v49 = vstv %s3351_s19  ;;  %v872_v20 = vadd.f32 %v871_v48, %v867_v40  ;;  %v890_v41 = vstv %s3356_s4  ;;  %v881_v16 = vmul.f32 %v880_v58, %v3401_v36  ;;  %s3512_s19 = sld [smem:[#allocation3 + $0x95]]  ;;  %s3516_s4 = sld [smem:[#allocation3 + $0x106]] }
  0xca   :  { %v770_v52 = vadd.f32 %v769_v30, %v766_v55  ;;  %v970_v34 = vadd.f32 %v3006_v2, %v3321_v14  ;;  %v978_v18 = vstv %s3366_s24  ;;  %v886_v17 = vmul.f32 %v885_v5, %v3416_v47  ;;  %s3520_s24 = sld [smem:[#allocation3 + $0x97]] }
  0xcb   :  { %v877_v39 = vadd.f32 %v876_v4, %v872_v20  ;;  %v979_v57 = vmul.f32 %v978_v18, %v3338_v60  ;;  %v983_v37 = vstv %s3371_s3  ;;  %v1589_v28 = vadd.f32 %v1588_v25, %v2948_v19  ;;  %v3449_v19 = vld [vmem:[#allocation2 + $0x52] sm:$0xff]  ;;  %v3452_v15 = vld [vmem:[#allocation2 + $0x60] sm:$0xff]  ;;  %s3523_s3 = sld [smem:[#allocation3 + $0x107]] }
  0xcc   :  { %v781_v2 = vadd.f32 %v779_v51, %v770_v52  ;;  %v891_v14 = vmul.f32 %v890_v41, %v3280_v24  ;;  %v975_v61 = vadd.f32 %v3180_v10, %v970_v34  ;;  %v984_v56 = vmul.f32 %v983_v37, %v3139_v0  ;;  %v3474_v40 = vld [vmem:[#allocation2 + $0x62] sm:$0xff] }
  0xcd   :  { %v882_v32 = vadd.f32 %v881_v16, %v877_v39  ;;  %v988_v27 = vstv %s3378_s12  ;;  %v993_v13 = vstv %s3380_s28  ;;  %v895_v42 = vstv %s3391_s30  ;;  %s3529_s12 = sld [smem:[#allocation3 + $0x129]]  ;;  %s3532_s28 = sld [smem:[#allocation3 + $0x108]] }
  0xce   :  { %v784_v63 = vadd.f32 %v783_v49, %v781_v2  ;;  %v900_v11 = vstv %s3393_s20  ;;  %v980_v53 = vadd.f32 %v979_v57, %v975_v61  ;;  %v3460_v10 = vadd.f32 %v1712_v46, %v2966_v35  ;;  %s3542_s30 = sld [smem:[#allocation3 + $0x109]] }
  0xcf   :  { %v887_v54 = vadd.f32 %v886_v17, %v882_v32  ;;  %v905_v7 = vstv %s3404_s23  ;;  %v998_v33 = vstv %s3406_s2  ;;  %v989_v48 = vmul.f32 %v988_v27, %v3361_v1  ;;  %s3546_s20 = sld [smem:[#allocation3 + $0x119]]  ;;  %s3548_s23 = sld [smem:[#allocation3 + $0x11a]] }
  0xd0   :  { %v3468_v9 = vmax.f32 %v784_v63, 0.0  ;;  %v985_v38 = vadd.f32 %v984_v56, %v980_v53  ;;  %v994_v25 = vmul.f32 %v993_v13, %v3364_v26  ;;  %v896_v35 = vmul.f32 %v895_v42, %v3449_v19  ;;  %s3553_s2 = sld [smem:[#allocation3 + $0x10a]] }
  0xd1   :  { %v892_v6 = vadd.f32 %v891_v14, %v887_v54  ;;  %v901_v30 = vmul.f32 %v900_v11, %v3452_v15  ;;  %v910_v4 = vstv %s3422_s25  ;;  %v999_v46 = vmul.f32 %v998_v33, %v3227_v44  ;;  %s3557_s25 = sld [smem:[#allocation3 + $0x11b]] }
  0xd2   :  { %789 = vst [vmem:[#allocation2 + $0x71] sm:$0xff] %v3468_v9  ;;  %v990_v58 = vadd.f32 %v989_v48, %v985_v38  ;;  %v1003_v55 = vstv %s3428_s7  ;;  %v1008_v5 = vstv %s3430_s9  ;;  %v3998_v51 = vstv %s2973_s6  ;;  %s3507_s6 = sld [smem:[#allocation3 + $0x96]]  ;;  %s3559_s7 = sld [smem:[#allocation3 + $0x11c]] }
  0xd3   :  { %v3492_v49 = vmul.f32 %v3998_v51, %v3338_v60  ;;  %v897_v20 = vadd.f32 %v896_v35, %v892_v6  ;;  %v906_v41 = vmul.f32 %v905_v7, %v3358_v3  ;;  %v915_v52 = vstv %s3433_s17  ;;  %s3564_s9 = sld [smem:[#allocation3 + $0x10b]]  ;;  %s3568_s17 = sld [smem:[#allocation3 + $0x11d]] }
  0xd4   :  { %v911_v16 = vmul.f32 %v910_v4, %v3474_v40  ;;  %v920_v34 = vstv %s3439_s27  ;;  %v925_v18 = vstv %s3441_s15  ;;  %v995_v39 = vadd.f32 %v994_v25, %v990_v58  ;;  %s3575_s27 = sld [smem:[#allocation3 + $0x10c]]  ;;  %s3577_s15 = sld [smem:[#allocation3 + $0x10d]] }
  0xd5   :  { %v902_v17 = vadd.f32 %v901_v30, %v897_v20  ;;  %v1004_v57 = vmul.f32 %v1003_v55, %v3401_v36  ;;  %v1009_v37 = vmul.f32 %v1008_v5, %v3416_v47  ;;  %v1013_v2 = vstv %s3447_s26  ;;  %s3581_s26 = sld [smem:[#allocation3 + $0x10e]] }
  0xd6   :  { %v1000_v14 = vadd.f32 %v999_v46, %v995_v39  ;;  %v1018_v61 = vstv %s3455_s8  ;;  %v1594_v32 = vadd.f32 %v3018_v23, %v1589_v28  ;;  %v1602_v56 = vstv %s3457_s22  ;;  %s3588_s8 = sld [smem:[#allocation3 + $0x11e]]  ;;  %s3590_s22 = sld [smem:[#allocation3 + $0x11f]] }
  0xd7   :  { %v907_v27 = vadd.f32 %v906_v41, %v902_v17  ;;  %v1023_v13 = vstv %s3464_s10  ;;  %v1603_v63 = vmul.f32 %v1602_v56, %v3338_v60  ;;  %v1607_v42 = vstv %s3466_s16  ;;  %s3595_s10 = sld [smem:[#allocation3 + $0x120]]  ;;  %s3598_s16 = sld [smem:[#allocation3 + $0x10f]] }
  0xd8   :  { %v921_v11 = vmul.f32 %v920_v34, %v3468_v9  ;;  %v1005_v53 = vadd.f32 %v1004_v57, %v1000_v14  ;;  %v1014_v54 = vmul.f32 %v1013_v2, %v3280_v24  ;;  %v1599_v23 = vadd.f32 %v3398_v22, %v1594_v32 }
  0xd9   :  { %v912_v28 = vadd.f32 %v911_v16, %v907_v27  ;;  %v3525_v7 = vld [vmem:[#allocation2 + $0x70] sm:$0xff]  ;;  %v1028_v33 = vstv %s3477_s13  ;;  %v1033_v38 = vstv %s3479_s11  ;;  %v1608_v48 = vmul.f32 %v1607_v42, %v3139_v0  ;;  %s3606_s13 = sld [smem:[#allocation3 + $0x121]]  ;;  %s3608_s11 = sld [smem:[#allocation3 + $0xa2]] }
  0xda   :  { %v916_v25 = vmul.f32 %v915_v52, %v3525_v7  ;;  %v1010_v6 = vadd.f32 %v1009_v37, %v1005_v53  ;;  %v1612_v35 = vstv %s3485_s29  ;;  %v1617_v30 = vstv %s3487_s1  ;;  %v3537_v22 = vld [vmem:[#allocation2 + $0x72] sm:$0xff]  ;;  %s3610_s29 = sld [smem:[#allocation3 + $0x12e]]  ;;  %s3614_s1 = sld [smem:[#allocation3 + $0xa3]] }
  0xdb   :  { %v929_v4 = vstv %s3496_s5  ;;  %v1019_v58 = vmul.f32 %v1018_v61, %v3449_v19  ;;  %v1024_v46 = vmul.f32 %v1023_v13, %v3452_v15  ;;  %v1604_v55 = vadd.f32 %v1603_v63, %v1599_v23  ;;  %s3619_s5 = sld [smem:[#allocation3 + $0x122]] }
  0xdc   :  { %v917_v5 = vadd.f32 %v916_v25, %v912_v28  ;;  %v1015_v51 = vadd.f32 %v1014_v54, %v1010_v6  ;;  %v1029_v20 = vmul.f32 %v1028_v33, %v3358_v3  ;;  %v1622_v41 = vstv %s3501_s0  ;;  %s3621_s0 = sld [smem:[#allocation3 + $0xa4]] }
  0xdd   :  { %v1034_v52 = vmul.f32 %v1033_v38, %v3474_v40  ;;  %v1609_v16 = vadd.f32 %v1608_v48, %v1604_v55  ;;  %v1613_v34 = vmul.f32 %v1612_v35, %v3361_v1  ;;  %v1618_v39 = vmul.f32 %v1617_v30, %v3364_v26 }
  0xde   :  { %v922_v17 = vadd.f32 %v921_v11, %v917_v5  ;;  %v926_v57 = vmul.f32 %v925_v18, %v3537_v22  ;;  %v1020_v37 = vadd.f32 %v1019_v58, %v1015_v51  ;;  %v1043_v2 = vstv %s3507_s6  ;;  %s3625_s6 = sld [smem:[#allocation3 + $0x123]] }
  0xdf   :  { %v1038_v14 = vstv %s3512_s19  ;;  %v1614_v61 = vadd.f32 %v1613_v34, %v1609_v16  ;;  %v1623_v32 = vmul.f32 %v1622_v41, %v3227_v44  ;;  %v1627_v56 = vstv %s3516_s4  ;;  %s3640_s19 = sld [smem:[#allocation3 + $0xa5]]  ;;  %s3652_s4 = sld [smem:[#allocation3 + $0xa6]] }
  0xe0   :  { %v927_v27 = vadd.f32 %v926_v57, %v922_v17  ;;  %v1025_v13 = vadd.f32 %v1024_v46, %v1020_v37  ;;  %v1048_v63 = vstv %s3520_s24  ;;  %v1632_v18 = vstv %s3523_s3  ;;  %v1730_v46 = vld [vmem:[#allocation2 + $0x31] sm:$0xff]  ;;  %s3654_s24 = sld [smem:[#allocation3 + $0xa7]]  ;;  %s3658_s3 = sld [smem:[#allocation3 + $0x126]] }
  0xe1   :  { %v1044_v42 = vmul.f32 %v1043_v2, %v3468_v9  ;;  %v1052_v11 = vstv %s3529_s12  ;;  %v1619_v53 = vadd.f32 %v1618_v39, %v1614_v61  ;;  %v1637_v54 = vstv %s3532_s28  ;;  %s3663_s12 = sld [smem:[#allocation3 + $0xa8]]  ;;  %s3673_s28 = sld [smem:[#allocation3 + $0xa9]] }
  0xe2   :  { %v930_v23 = vadd.f32 %v929_v4, %v927_v27  ;;  %v1030_v28 = vadd.f32 %v1029_v20, %v1025_v13  ;;  %v1039_v33 = vmul.f32 %v1038_v14, %v3525_v7  ;;  %v1628_v38 = vmul.f32 %v1627_v56, %v3401_v36 }
  0xe3   :  { %v1624_v48 = vadd.f32 %v1623_v32, %v1619_v53  ;;  %v1633_v25 = vmul.f32 %v1632_v18, %v3416_v47  ;;  %v1642_v6 = vstv %s3542_s30  ;;  %v1718_v35 = vadd.f32 %v3020_v8, %v3460_v10  ;;  %s3678_s30 = sld [smem:[#allocation3 + $0xaa]] }
  0xe4   :  { %931 = vst [vmem:[#allocation6] sm:$0xff] %v930_v23  ;;  %v1035_v30 = vadd.f32 %v1034_v52, %v1030_v28  ;;  %v1638_v4 = vmul.f32 %v1637_v54, %v3280_v24  ;;  %v1726_v58 = vstv %s3546_s20  ;;  %v1731_v55 = vstv %s3548_s23  ;;  %s3680_s20 = sld [smem:[#allocation3 + $0xba]]  ;;  %s3686_s23 = sld [smem:[#allocation3 + $0xbb]] }
  0xe5   :  { %v1629_v5 = vadd.f32 %v1628_v38, %v1624_v48  ;;  %v1647_v51 = vstv %s3553_s2  ;;  %v1723_v20 = vadd.f32 %v3414_v50, %v1718_v35  ;;  %v1727_v8 = vmul.f32 %v1726_v58, %v3338_v60  ;;  %s3688_s2 = sld [smem:[#allocation3 + $0xbc]] }
  0xe6   :  { %v1040_v10 = vadd.f32 %v1039_v33, %v1035_v30  ;;  %v1049_v41 = vmul.f32 %v1048_v63, %v3537_v22  ;;  %v1736_v52 = vstv %s3557_s25  ;;  %v1741_v16 = vstv %s3559_s7  ;;  %s3693_s25 = sld [smem:[#allocation3 + $0x127]] }
  0xe7   :  { %v1634_v34 = vadd.f32 %v1633_v25, %v1629_v5  ;;  %v1652_v39 = vstv %s3564_s9  ;;  %v1728_v17 = vadd.f32 %v1727_v8, %v1723_v20  ;;  %v1732_v57 = vmul.f32 %v1731_v55, %v1730_v46  ;;  %s3695_s7 = sld [smem:[#allocation3 + $0x12f]]  ;;  %s3699_s9 = sld [smem:[#allocation3 + $0xab]] }
  0xe8   :  { %v1045_v37 = vadd.f32 %v1044_v42, %v1040_v10  ;;  %v1643_v50 = vmul.f32 %v1642_v6, %v3449_v19  ;;  %v1648_v2 = vmul.f32 %v1647_v51, %v3452_v15  ;;  %v1746_v14 = vstv %s3568_s17  ;;  %s3710_s17 = sld [smem:[#allocation3 + $0xac]] }
  0xe9   :  { %v1639_v61 = vadd.f32 %v1638_v4, %v1634_v34  ;;  %v1733_v32 = vadd.f32 %v1732_v57, %v1728_v17  ;;  %v1737_v56 = vmul.f32 %v1736_v52, %v3361_v1  ;;  %v1742_v27 = vmul.f32 %v1741_v16, %v3364_v26 }
  0xea   :  { %v1050_v13 = vadd.f32 %v1049_v41, %v1045_v37  ;;  %v1653_v63 = vmul.f32 %v1652_v39, %v3358_v3  ;;  %v1657_v18 = vstv %s3575_s27  ;;  %v1662_v42 = vstv %s3577_s15  ;;  %s3712_s27 = sld [smem:[#allocation3 + $0xbd]]  ;;  %s3722_s15 = sld [smem:[#allocation3 + $0xbe]] }
  0xeb   :  { %v1644_v53 = vadd.f32 %v1643_v50, %v1639_v61  ;;  %v1667_v54 = vstv %s3581_s26  ;;  %v1738_v23 = vadd.f32 %v1737_v56, %v1733_v32  ;;  %v1747_v28 = vmul.f32 %v1746_v14, %v3227_v44  ;;  %s3724_s26 = sld [smem:[#allocation3 + $0xbf]] }
  0xec   :  { %v3999_v33 = vstv %s2979_s21  ;;  %v1053_v48 = vadd.f32 %v1052_v11, %v1050_v13  ;;  %v1751_v25 = vstv %s3588_s8  ;;  %v1756_v6 = vstv %s3590_s22  ;;  %s3646_s21 = sld [smem:[#allocation3 + $0x124]]  ;;  %s3727_s8 = sld [smem:[#allocation3 + $0xae]] }
  0xed   :  { %v3630_v38 = vmul.f32 %v3999_v33, %v3338_v60  ;;  %v4000_v35 = vstv %s3012_s14  ;;  %v1649_v4 = vadd.f32 %v1648_v2, %v1644_v53  ;;  %v1743_v58 = vadd.f32 %v1742_v27, %v1738_v23  ;;  %s3648_s14 = sld [smem:[#allocation3 + $0x125]]  ;;  %v3683_v53 = vld [vmem:[#allocation2 + $0x41] sm:$0xff]  ;;  %s3732_s22 = sld [smem:[#allocation3 + $0xaf]] }
  0xee   :  { %v3637_v30 = vmul.f32 %v4000_v35, %v3338_v60  ;;  %v1761_v46 = vstv %s3595_s10  ;;  %1055 = vst [vmem:[#allocation6 + $0x8] sm:$0xff] %v1053_v48  ;;  %v1658_v44 = vmul.f32 %v1657_v18, %v3474_v40  ;;  %v1663_v55 = vmul.f32 %v1662_v42, %v3525_v7  ;;  %s3745_s10 = sld [smem:[#allocation3 + $0xc0]] }
  0xef   :  { %v1668_v11 = vmul.f32 %v1667_v54, %v3468_v9  ;;  %v1672_v5 = vstv %s3598_s16  ;;  %v1654_v51 = vadd.f32 %v1653_v63, %v1649_v4  ;;  %v1748_v20 = vadd.f32 %v1747_v28, %v1743_v58  ;;  %s3747_s16 = sld [smem:[#allocation3 + $0xc1]] }
  0xf0   :  { %v1752_v8 = vmul.f32 %v1751_v25, %v3401_v36  ;;  %v1757_v10 = vmul.f32 %v1756_v6, %v3416_v47  ;;  %v1762_v41 = vmul.f32 %v1761_v46, %v3280_v24  ;;  %v1766_v52 = vstv %s3606_s13  ;;  %s3876_s13 = sld [smem:[#allocation3 + $0xde]] }
  0xf1   :  { %v1099_v16 = vadd.f32 %v3190_v12, %v3062_v29  ;;  %v1107_v34 = vstv %s3608_s11  ;;  %v1659_v39 = vadd.f32 %v1658_v44, %v1654_v51  ;;  %v1112_v37 = vstv %s3614_s1 }
  0xf2   :  { %v1753_v17 = vadd.f32 %v1752_v8, %v1748_v20  ;;  %v1108_v57 = vmul.f32 %v1107_v34, %v3139_v0  ;;  %v1676_v50 = vstv %s3610_s29  ;;  %v1771_v2 = vstv %s3619_s5  ;;  %s4002_s29 = sld [smem:[#allocation17_spill]] }
  0xf3   :  { %v1104_v14 = vadd.f32 %v3492_v49, %v1099_v16  ;;  %v1117_v61 = vstv %s3621_s0  ;;  %v1664_v32 = vadd.f32 %v1663_v55, %v1659_v39  ;;  %v1673_v56 = vmul.f32 %v1672_v5, %v3537_v22  ;;  %s3761_s0 = sld [smem:[#allocation3 + $0xc2]] }
  0xf4   :  { %v1758_v27 = vadd.f32 %v1757_v10, %v1753_v17  ;;  %v1776_v13 = vstv %s3625_s6  ;;  %v1767_v29 = vmul.f32 %v1766_v52, %v3449_v19  ;;  %v1113_v0 = vmul.f32 %v1112_v37, %v3361_v1  ;;  %s3763_s6 = sld [smem:[#allocation3 + $0xd2]] }
  0xf5   :  { %v1109_v12 = vadd.f32 %v1108_v57, %v1104_v14  ;;  %v1118_v63 = vmul.f32 %v1117_v61, %v3364_v26  ;;  %v1669_v49 = vadd.f32 %v1668_v11, %v1664_v32  ;;  %v1772_v42 = vmul.f32 %v1771_v2, %v3452_v15  ;;  %v3734_v61 = vld [vmem:[#allocation2 + $0x31] sm:$0xff] }
  0xf6   :  { %v1763_v18 = vadd.f32 %v1762_v41, %v1758_v27  ;;  %v1122_v54 = vstv %s3640_s19  ;;  %v1777_v23 = vmul.f32 %v1776_v13, %v3358_v3  ;;  %v1781_v28 = vstv %s3646_s21  ;;  %s3768_s19 = sld [smem:[#allocation3 + $0xd3]]  ;;  %s3770_s21 = sld [smem:[#allocation3 + $0xd4]] }
  0xf7   :  { %v1786_v33 = vstv %s3648_s14  ;;  %v1114_v48 = vadd.f32 %v1113_v0, %v1109_v12  ;;  %v1674_v25 = vadd.f32 %v1673_v56, %v1669_v49  ;;  %v1127_v35 = vstv %s3652_s4  ;;  %s3779_s14 = sld [smem:[#allocation3 + $0x12a]]  ;;  %s3782_s4 = sld [smem:[#allocation3 + $0xd5]] }
  0xf8   :  { %v1768_v6 = vadd.f32 %v1767_v29, %v1763_v18  ;;  %v1132_v4 = vstv %s3654_s24  ;;  %v1791_v58 = vstv %s3658_s3  ;;  %v1123_v44 = vmul.f32 %v1122_v54, %v3683_v53  ;;  %v3752_v49 = vld [vmem:[%s4002_s29] sm:$0xff]  ;;  %s3787_s24 = sld [smem:[#allocation3 + $0xc3]]  ;;  %s3789_s3 = sld [smem:[#allocation3 + $0xc4]] }
  0xf9   :  { %v1119_v46 = vadd.f32 %v1118_v63, %v1114_v48  ;;  %v1137_v55 = vstv %s3663_s12  ;;  %v4001_v11 = vstv %s3014_s18  ;;  %v1677_v51 = vadd.f32 %v1676_v50, %v1674_v25  ;;  %s3717_s18 = sld [smem:[#allocation3 + $0xad]]  ;;  %s3793_s12 = sld [smem:[#allocation3 + $0xd6]] }
  0xfa   :  { %v3707_v5 = vmul.f32 %v4001_v11, %v3338_v60  ;;  %v1773_v20 = vadd.f32 %v1772_v42, %v1768_v6  ;;  %v1782_v8 = vmul.f32 %v1781_v28, %v3474_v40  ;;  %v1787_v10 = vmul.f32 %v1786_v33, %v3525_v7 }
  0xfb   :  { %v1124_v41 = vadd.f32 %v1123_v44, %v1119_v46  ;;  %v1128_v52 = vmul.f32 %v1127_v35, %v3401_v36  ;;  %v1133_v16 = vmul.f32 %v1132_v4, %v3416_v47  ;;  %1679 = vst [vmem:[#allocation6 + $0x30] sm:$0xff] %v1677_v51  ;;  %v1792_v34 = vmul.f32 %v1791_v58, %v3468_v9 }
  0xfc   :  { %v1778_v60 = vadd.f32 %v1777_v23, %v1773_v20  ;;  %v1138_v39 = vmul.f32 %v1137_v55, %v3280_v24  ;;  %v1142_v17 = vstv %s3673_s28  ;;  %v1147_v37 = vstv %s3678_s30  ;;  %s3795_s28 = sld [smem:[#allocation3 + $0xd7]]  ;;  %s3802_s30 = sld [smem:[#allocation3 + $0xc5]] }
  0xfd   :  { %v1129_v57 = vadd.f32 %v1128_v52, %v1124_v41  ;;  %v1224_v50 = vadd.f32 %v3326_v59, %v3064_v21  ;;  %v1232_v2 = vstv %s3680_s20  ;;  %v1237_v32 = vstv %s3686_s23  ;;  %s3804_s20 = sld [smem:[#allocation3 + $0xc6]]  ;;  %s3810_s23 = sld [smem:[#allocation3 + $0xd8]] }
  0xfe   :  { %v1783_v14 = vadd.f32 %v1782_v8, %v1778_v60  ;;  %v1233_v24 = vmul.f32 %v3734_v61, %v1232_v2  ;;  %v1242_v56 = vstv %s3688_s2  ;;  %v1796_v27 = vstv %s3693_s25  ;;  %s3819_s2 = sld [smem:[#allocation3 + $0xc7]]  ;;  %s3823_s25 = sld [smem:[#allocation3 + $0xd9]] }
  0xff   :  { %v1800_v13 = vstv %s3695_s7  ;;  %v1134_v29 = vadd.f32 %v1133_v16, %v1129_v57  ;;  %v1229_v12 = vadd.f32 %v3630_v38, %v1224_v50  ;;  %v1143_v63 = vmul.f32 %v1142_v17, %v3449_v19  ;;  %v3757_v38 = vld [vmem:[%s4002_s29 + $0x20] sm:$0xff]  ;;  %s3827_s7 = sld [smem:[#allocation3 + $0xda]] }
 0x100   :  { %v1788_v0 = vadd.f32 %v1787_v10, %v1783_v14  ;;  %v1148_v21 = vmul.f32 %v1147_v37, %v3452_v15  ;;  %v1152_v59 = vstv %s3699_s9  ;;  %v1238_v54 = vmul.f32 %v1237_v32, %v3361_v1  ;;  %v3798_v37 = vld [vmem:[#allocation2 + $0x51] sm:$0xff]  ;;  %s3829_s9 = sld [smem:[#allocation3 + $0xea]] }
 0x101   :  { %v1139_v18 = vadd.f32 %v1138_v39, %v1134_v29  ;;  %v1234_v42 = vadd.f32 %v1233_v24, %v1229_v12  ;;  %v1243_v23 = vmul.f32 %v1242_v56, %v3364_v26  ;;  %v1797_v33 = vmul.f32 %v1796_v27, %v3537_v22 }
 0x102   :  { %v1793_v28 = vadd.f32 %v1792_v34, %v1788_v0  ;;  %v1157_v48 = vstv %s3710_s17  ;;  %v1247_v25 = vstv %s3712_s27  ;;  %v1153_v35 = vmul.f32 %v1152_v59, %v3358_v3  ;;  %s3836_s17 = sld [smem:[#allocation3 + $0xeb]]  ;;  %s3838_s27 = sld [smem:[#allocation3 + $0xec]] }
 0x103   :  { %v1144_v6 = vadd.f32 %v1143_v63, %v1139_v18  ;;  %v1162_v4 = vstv %s3717_s18  ;;  %v1239_v58 = vadd.f32 %v1238_v54, %v1234_v42  ;;  %v793_v44 = vmax.f32 %v3752_v49, %v3757_v38  ;;  %s3845_s18 = sld [smem:[#allocation3 + $0xdb]] }
 0x104   :  { %v1798_v46 = vadd.f32 %v1797_v33, %v1793_v28  ;;  %v1252_v55 = vstv %s3722_s15  ;;  %v1257_v11 = vstv %s3724_s26  ;;  %v1167_v20 = vstv %s3727_s8  ;;  %s3850_s15 = sld [smem:[#allocation3 + $0x12b]]  ;;  %s3854_s26 = sld [smem:[#allocation3 + $0xed]] }
 0x105   :  { %v1149_v51 = vadd.f32 %v1148_v21, %v1144_v6  ;;  %v1244_v8 = vadd.f32 %v1243_v23, %v1239_v58  ;;  %v1248_v10 = vmul.f32 %v1247_v25, %v3683_v53  ;;  %v1158_v41 = vmul.f32 %v1157_v48, %v3474_v40  ;;  %v3832_v25 = vld [vmem:[#allocation2 + $0x61] sm:$0xff]  ;;  %s3861_s8 = sld [smem:[#allocation3 + $0xdc]] }
 0x106   :  { %v1801_v3 = vadd.f32 %v1800_v13, %v1798_v46  ;;  %v1163_v52 = vmul.f32 %v1162_v4, %v3525_v7  ;;  %v1172_v16 = vstv %s3732_s22  ;;  %v1253_v39 = vmul.f32 %v1252_v55, %v3401_v36  ;;  %s3863_s22 = sld [smem:[#allocation3 + $0xdd]] }
 0x107   :  { %v1154_v60 = vadd.f32 %v1153_v35, %v1149_v51  ;;  %v1249_v34 = vadd.f32 %v1248_v10, %v1244_v8  ;;  %v1258_v17 = vmul.f32 %v1257_v11, %v3416_v47  ;;  %v1168_v57 = vmul.f32 %v1167_v20, %v3468_v9 }
 0x108   :  { %1803 = vst [vmem:[#allocation6 + $0x38] sm:$0xff] %v1801_v3  ;;  %v1262_v50 = vstv %s3745_s10  ;;  %v1267_v2 = vstv %s3747_s16  ;;  %v1349_v14 = vadd.f32 %v3333_v62, %v3068_v43  ;;  %v1272_v56 = vstv %s3761_s0  ;;  %s3868_s10 = sld [smem:[#allocation3 + $0xee]]  ;;  %s3870_s16 = sld [smem:[#allocation3 + $0xef]] }
 0x109   :  { %v1159_v24 = vadd.f32 %v1158_v41, %v1154_v60  ;;  %v1254_v32 = vadd.f32 %v1253_v39, %v1249_v34  ;;  %v1357_v27 = vstv %s3763_s6  ;;  %v1362_v12 = vstv %s3768_s19  ;;  %s3892_s6 = sld [smem:[#allocation3 + $0xf0]]  ;;  %s3894_s19 = sld [smem:[#allocation3 + $0xdf]] }
 0x10a   :  { %v1354_v13 = vadd.f32 %v3637_v30, %v1349_v14  ;;  %v1358_v29 = vmul.f32 %v3734_v61, %v1357_v27  ;;  %v1367_v0 = vstv %s3770_s21  ;;  %v1173_v21 = vmul.f32 %v1172_v16, %v3537_v22  ;;  %s3898_s21 = sld [smem:[#allocation3 + $0xf1]] }
 0x10b   :  { %v1164_v63 = vadd.f32 %v1163_v52, %v1159_v24  ;;  %v1259_v59 = vadd.f32 %v1258_v17, %v1254_v32  ;;  %v1263_v43 = vmul.f32 %v1262_v50, %v3798_v37  ;;  %v1268_v62 = vmul.f32 %v1267_v2, %v3449_v19 }
 0x10c   :  { %v1359_v18 = vadd.f32 %v1358_v29, %v1354_v13  ;;  %v1363_v30 = vmul.f32 %v1362_v12, %v3361_v1  ;;  %v1368_v42 = vmul.f32 %v1367_v0, %v3364_v26  ;;  %v1273_v28 = vmul.f32 %v1272_v56, %v3452_v15  ;;  %v1486_v56 = vld [vmem:[#allocation2 + $0x32] sm:$0xff]  ;;  %v1491_v13 = vld [vmem:[#allocation2 + $0x40] sm:$0xff]  ;;  %v1943_v12 = vld [vmem:[%s4002_s29 + $0x8] sm:$0xff] }
 0x10d   :  { %v1169_v54 = vadd.f32 %v1168_v57, %v1164_v63  ;;  %v1264_v23 = vadd.f32 %v1263_v43, %v1259_v59  ;;  %v1372_v33 = vstv %s3782_s4  ;;  %v1176_v48 = vstv %s3779_s14  ;;  %s3900_s14 = sld [smem:[#allocation3 + $0xf2]]  ;;  %s3907_s4 = sld [smem:[#allocation3 + $0x12c]] }
 0x10e   :  { %v1277_v1 = vstv %s3787_s24  ;;  %v1282_v26 = vstv %s3789_s3  ;;  %v1364_v6 = vadd.f32 %v1363_v30, %v1359_v18  ;;  %v1377_v58 = vstv %s3793_s12  ;;  %s3913_s24 = sld [smem:[#allocation3 + $0xf3]]  ;;  %s3916_s3 = sld [smem:[#allocation3 + $0xf4]] }
 0x10f   :  { %v1174_v35 = vadd.f32 %v1173_v21, %v1169_v54  ;;  %v1269_v4 = vadd.f32 %v1268_v62, %v1264_v23  ;;  %v1382_v46 = vstv %s3795_s28  ;;  %v1287_v55 = vstv %s3802_s30  ;;  %s3918_s12 = sld [smem:[#allocation3 + $0xf5]] }
 0x110   :  { %v1292_v11 = vstv %s3804_s20  ;;  %v1369_v51 = vadd.f32 %v1368_v42, %v1364_v6  ;;  %v1373_v20 = vmul.f32 %v1372_v33, %v3683_v53  ;;  %v1278_v3 = vmul.f32 %v1277_v1, %v3832_v25  ;;  %v1501_v6 = vld [vmem:[#allocation2 + $0x42] sm:$0xff] }
 0x111   :  { %v1177_v8 = vadd.f32 %v1176_v48, %v1174_v35  ;;  %v1274_v10 = vadd.f32 %v1273_v28, %v1269_v4  ;;  %v1387_v41 = vstv %s3810_s23  ;;  %v1283_v52 = vmul.f32 %v1282_v26, %v3474_v40  ;;  %v1506_v4 = vld [vmem:[#allocation2 + $0x50] sm:$0xff] }
 0x112   :  { %v1374_v16 = vadd.f32 %v1373_v20, %v1369_v51  ;;  %v1378_v60 = vmul.f32 %v1377_v58, %v3401_v36  ;;  %v1383_v34 = vmul.f32 %v1382_v46, %v3416_v47  ;;  %v1288_v57 = vmul.f32 %v1287_v55, %v3525_v7 }
 0x113   :  { %v1178_v39 = vadd.f32 %v1177_v8, %v793_v44  ;;  %v1279_v17 = vadd.f32 %v1278_v3, %v1274_v10  ;;  %v1293_v50 = vmul.f32 %v1292_v11, %v3468_v9  ;;  %v1297_v36 = vstv %s3819_s2  ;;  %s2096_s2 = sld [smem:[#allocation3 + $0xf6]] }
 0x114   :  { %v1379_v47 = vadd.f32 %v1378_v60, %v1374_v16  ;;  %v1388_v2 = vmul.f32 %v1387_v41, %v3798_v37  ;;  %v1392_v14 = vstv %s3823_s25  ;;  %v1397_v38 = vstv %s3827_s7  ;;  %v1416_v41 = vld [vmem:[#allocation2 + $0x71] sm:$0xff]  ;;  %s2097_s25 = sld [smem:[#allocation3 + $0xf7]]  ;;  %s2098_s7 = sld [smem:[#allocation3 + $0x12d]] }
 0x115   :  { %1180 = vst [vmem:[#allocation6 + $0x10] sm:$0xff] %v1178_v39  ;;  %v1284_v49 = vadd.f32 %v1283_v52, %v1279_v17  ;;  %v1474_v9 = vadd.f32 %v3385_v31, %v3074_v45  ;;  %v1482_v44 = vstv %s3829_s9  ;;  %v1487_v27 = vstv %s3836_s17  ;;  %v1944_v45 = vld [vmem:[%s4002_s29 + $0x28] sm:$0xff] }
 0x116   :  { %v1384_v24 = vadd.f32 %v1383_v34, %v1379_v47  ;;  %v1483_v32 = vmul.f32 %v3734_v61, %v1482_v44  ;;  %v1492_v29 = vstv %s3838_s27  ;;  %v1298_v0 = vmul.f32 %v1297_v36, %v3537_v22  ;;  %v1521_v36 = vld [vmem:[#allocation2 + $0x60] sm:$0xff] }
 0x117   :  { %v1289_v31 = vadd.f32 %v1288_v57, %v1284_v49  ;;  %v1479_v63 = vadd.f32 %v3707_v5, %v1474_v9  ;;  %v1393_v21 = vmul.f32 %v1392_v14, %v3449_v19  ;;  %v1398_v59 = vmul.f32 %v1397_v38, %v3452_v15  ;;  %v1516_v57 = vld [vmem:[#allocation2 + $0x52] sm:$0xff] }
 0x118   :  { %v1389_v61 = vadd.f32 %v1388_v2, %v1384_v24  ;;  %v1402_v43 = vstv %s3845_s18  ;;  %v1488_v30 = vmul.f32 %v1487_v27, %v1486_v56  ;;  %v1493_v42 = vmul.f32 %v1492_v29, %v1491_v13  ;;  %v1945_v2 = vld [vmem:[%s4002_s29 + $0x10] sm:$0xff] }
 0x119   :  { %v1294_v62 = vadd.f32 %v1293_v50, %v1289_v31  ;;  %v1484_v18 = vadd.f32 %v1483_v32, %v1479_v63  ;;  %v798_v54 = vmax.f32 %v1943_v12, %v1944_v45  ;;  %v1301_v5 = vstv %s3850_s15  ;;  %v1946_v14 = vld [vmem:[%s4002_s29 + $0x30] sm:$0xff]  ;;  %s2195_s15 = smov [#allocation6]  }
 0x11a   :  { %v1394_v23 = vadd.f32 %v1393_v21, %v1389_v61  ;;  %v1497_v28 = vstv %s3854_s26  ;;  %v1407_v15 = vstv %s3861_s8  ;;  %v1412_v33 = vstv %s3863_s22  ;;  %v1536_v61 = vld [vmem:[#allocation2 + $0x70] sm:$0xff]  ;;  %s1809_s26 = sshll.u32 %s2195_s15, 4  ;;  %s1810_s26 = int_to_ptr.vmem [resolvable:$true] %s1809_s26 }
 0x11b   :  { %v1299_v19 = vadd.f32 %v1298_v0, %v1294_v62  ;;  %v1489_v48 = vadd.f32 %v1488_v30, %v1484_v18  ;;  %v1403_v26 = vmul.f32 %v1402_v43, %v3832_v25  ;;  %v1502_v35 = vstv %s3868_s10  ;;  %v1531_v0 = vld [vmem:[#allocation2 + $0x62] sm:$0xff]  ;;  %s2167_s8 = scalar_lea.vmem %s1810_s26, 1024  ;;  %p2172_p6 = scmp.lt.s32.totalorder %s1810_s26, %s1810_s26 }
 0x11c   :  { %v1399_v1 = vadd.f32 %v1398_v59, %v1394_v23  ;;  %v1507_v58 = vstv %s3870_s16  ;;  %v1498_v11 = vmul.f32 %v1497_v28, %v3683_v53  ;;  %v1408_v20 = vmul.f32 %v1407_v15, %v3474_v40  ;;  %p2168_p5 = scmp.ne.s32.totalorder %s1810_s26, %s2167_s8  ;;  %p2173_p7 = scmp.lt.s32.totalorder %s2167_s8, %s2167_s8 }
 0x11d   :  { %v1302_v46 = vadd.f32 %v1301_v5, %v1299_v19  ;;  %v1494_v55 = vadd.f32 %v1493_v42, %v1489_v48  ;;  %v1413_v8 = vmul.f32 %v1412_v33, %v3525_v7  ;;  %v1417_v10 = vstv %s3876_s13  ;;  %v1947_v19 = vld [vmem:[%s4002_s29 + $0x18] sm:$0xff] }
 0x11e   :  { %v1404_v51 = vadd.f32 %v1403_v26, %v1399_v1  ;;  %v1503_v16 = vmul.f32 %v1502_v35, %v1501_v6  ;;  %v1508_v60 = vmul.f32 %v1507_v58, %v1506_v4  ;;  %v1512_v39 = vstv %s3892_s6  ;;  %p2174_p8 = por %p2173_p7, %p2172_p6 }
 0x11f   :  { %v1303_v3 = vadd.f32 %v1302_v46, %v798_v54  ;;  %v1499_v52 = vadd.f32 %v1498_v11, %v1494_v55  ;;  %v1422_v40 = vstv %s3894_s19  ;;  %v1418_v17 = vmul.f32 %v1417_v10, %v1416_v41  ;;  %v1546_v54 = vld [vmem:[#allocation2 + $0x72] sm:$0xff] }
 0x120   :  { %v1409_v34 = vadd.f32 %v1408_v20, %v1404_v51  ;;  %v1517_v50 = vstv %s3898_s21  ;;  %v1522_v47 = vstv %s3900_s14  ;;  %v1513_v38 = vmul.f32 %v1512_v39, %v3798_v37  ;;  %p2175_p9 = pnand %p2174_p8, %p2168_p5 }
 0x121   :  { %1305 = vst [vmem:[#allocation6 + $0x18] sm:$0xff] %v1303_v3  ;;  %v1504_v7 = vadd.f32 %v1503_v16, %v1499_v52  ;;  %v1423_v44 = vmul.f32 %v1422_v40, %v3537_v22  ;;  %v1426_v24 = vstv %s3907_s4  ;;  %v1518_v56 = vmul.f32 %v1517_v50, %v1516_v57 }
 0x122   :  { %v1414_v53 = vadd.f32 %v1413_v8, %v1409_v34  ;;  %v1523_v27 = vmul.f32 %v1522_v47, %v1521_v36  ;;  %v803_v13 = vmax.f32 %v1945_v2, %v1946_v14  ;;  %v1527_v12 = vstv %s3913_s24 }
 0x123   :  { %v1509_v49 = vadd.f32 %v1508_v60, %v1504_v7  ;;  %v1532_v63 = vstv %s3916_s3  ;;  %v1537_v21 = vstv %s3918_s12  ;;  %v1528_v59 = vmul.f32 %v1527_v12, %v3832_v25  ;;  %v1948_v25 = vld [vmem:[%s4002_s29 + $0x38] sm:$0xff] }
 0x124   :  { %v1419_v9 = vadd.f32 %v1418_v17, %v1414_v53  ;;  %v1533_v62 = vmul.f32 %v1532_v63, %v1531_v0  ;;  %v1538_v18 = vmul.f32 %v1537_v21, %v1536_v61  ;;  %v1542_v30 = vstv %s2096_s2 }
 0x125   :  { %v1514_v32 = vadd.f32 %v1513_v38, %v1509_v49  ;;  %v1547_v5 = vstv %s2097_s25  ;;  %v1543_v28 = vmul.f32 %v1542_v30, %v1416_v41  ;;  %v1551_v48 = vstv %s2098_s7 }
 0x126   :  { %v1424_v29 = vadd.f32 %v1423_v44, %v1419_v9  ;;  %v1548_v33 = vmul.f32 %v1547_v5, %v1546_v54  ;;  %v808_v1 = vmax.f32 %v1947_v19, %v1948_v25 }
 0x127   :  { %v1519_v45 = vadd.f32 %v1518_v56, %v1514_v32 }
 0x128   :  { %v1427_v31 = vadd.f32 %v1426_v24, %v1424_v29 }
 0x129   :  { %v1524_v37 = vadd.f32 %v1523_v27, %v1519_v45 }
 0x12a   :  { %v1428_v43 = vadd.f32 %v1427_v31, %v803_v13 }
 0x12b   :  { %v1529_v22 = vadd.f32 %v1528_v59, %v1524_v37 }
 0x12c   :  { %1430 = vst [vmem:[#allocation6 + $0x20] sm:$0xff] %v1428_v43 }
 0x12d   :  { %v1534_v42 = vadd.f32 %v1533_v62, %v1529_v22 }
 0x12f   :  { %v1539_v23 = vadd.f32 %v1538_v18, %v1534_v42 }
 0x131   :  { %v1544_v15 = vadd.f32 %v1543_v28, %v1539_v23 }
 0x133   :  { %v1549_v26 = vadd.f32 %v1548_v33, %v1544_v15 }
 0x135   :  { %v1552_v6 = vadd.f32 %v1551_v48, %v1549_v26 }
 0x137   :  { %v1553_v35 = vadd.f32 %v1552_v6, %v808_v1 }
 0x139   :  { %1555 = vst [vmem:[#allocation6 + $0x28] sm:$0xff] %v1553_v35 }
 0x13a   :  { %2178 = shalt.err (!%p2175_p9)
}
 0x13b   :  { %s4003_s10 = sld [smem:[#allocation18_spill]] }
 0x141   :  { %s2179_s16 = scalar_lea.hbm %s4003_s10, 1024 }
 0x142   :  { %p2180_p10 = scmp.ne.s32.totalorder %s4003_s10, %s2179_s16  ;;  %p2183_p11 = scmp.lt.u32.totalorder %s2179_s16, %s4003_s10 }
 0x144   :  { %p2185_p12 = pnand %p2183_p11, %p2180_p10 }
 0x146   :  { %2188 = shalt.err (!%p2185_p12)
}
 0x147   :  { %s2196_s0 = smov 128   ;;  %s2197_s6 = smov 8  }
 0x148   :  { %1815 = dma.vmem_to_hbm [thread:$0]  %s1810_s26, 1024, %s4003_s10, [#allocation4], %s2196_s0, %s2196_s0, %s2197_s6  }
 0x149   :  { %2191 = dma.done.wait [#allocation4], 1024  }
 0x14a   :  { %2192 = vsyncadd [#allocation4], 4294966272 }
 0x14b   :  { %1819 = vsyncpa [#allocation4], 1 }
 0x14c   :  { %1820 = vsyncpa [#allocation5], 1 }

</bundles_post_ra>
